<compile_context>
chip_gen: v6e
topology: v6e:2x2x1
jax: 0.10.0
libtpu: 0.0.40
codegen_flags: <defaults>
</compile_context>

<pallas_src>
import math
import jax
import jax.numpy as jnp
from jax.experimental import pallas as pl
from jax.experimental.pallas import tpu as pltpu

# Small synthetic BartConfig analogue:
#   d_model=32, decoder_attention_heads=4, decoder_ffn_dim=64,
#   router_block_num=2, activation_function="gelu_new", dropout=0 (eval mode).
B, L, S = 2, 8, 8          # batch, decoder seq len, encoder seq len
D, H, F = 32, 4, 64        # d_model, num heads, ffn dim
HD = D // H                # head dim
E = 2                      # router_block_num (number of expert decoder layers)
LN_EPS = 1e-5
NEG_INF = -1e9

# dtype fed to the MXU (accumulation is always f32).
MXU_DTYPE = jnp.bfloat16


# ----------------------------- shared math helpers -----------------------------
def _layer_norm(x, g, b):
    mu = jnp.mean(x, axis=-1, keepdims=True)
    var = jnp.mean(jnp.square(x - mu), axis=-1, keepdims=True)
    return (x - mu) * jax.lax.rsqrt(var + LN_EPS) * g + b


def _gelu_new(x):
    # HF "gelu_new" (tanh approximation), matching config.activation_function.
    c = math.sqrt(2.0 / math.pi)
    return 0.5 * x * (1.0 + jnp.tanh(c * (x + 0.044715 * x * x * x)))


# ------------------------------- kernel-side math -------------------------------
def _mm(x, w):
    # (M, K) @ (K, N) on the MXU: bf16 operands (w is pre-cast), f32 accumulate.
    return jnp.dot(x.astype(MXU_DTYPE), w, preferred_element_type=jnp.float32)


def _split_heads(t):
    # (lx, D) -> (H, lx, HD): lane slices stacked on a new leading dim
    # (no 4-D transpose, which Mosaic may not lower).
    return jnp.stack([t[:, h * HD:(h + 1) * HD] for h in range(H)], axis=0)


def _attn_core(q, k, v, bias, w_out, b_out):
    # q: (lq, D); k, v: (lkv, D); bias: (lq, lkv) additive or None.
    qh, kh, vh = _split_heads(q), _split_heads(k), _split_heads(v)   # (H, lx, HD)
    scores = jnp.einsum('hqd,hkd->hqk', qh.astype(MXU_DTYPE), kh.astype(MXU_DTYPE),
                        preferred_element_type=jnp.float32)          # (H, lq, lkv)
    if bias is not None:
        scores = scores + bias           # implicit broadcast over the leading H dim
    m = jnp.max(scores, axis=-1, keepdims=True)
    p = jnp.exp(scores - m)
    # denom >= 1 (max subtraction + rows never fully masked), so the EUP approx
    # reciprocal cannot blow up.
    p = p * pl.reciprocal(jnp.sum(p, axis=-1, keepdims=True), approx=True)
    ctx = jnp.einsum('hqk,hkd->hqd', p.astype(MXU_DTYPE), vh.astype(MXU_DTYPE),
                     preferred_element_type=jnp.float32)             # (H, lq, HD)
    # Per-head out_proj accumulation: avoids the lane-concat relayout of ctx heads.
    out = jnp.zeros((q.shape[0], D), jnp.float32)
    for h in range(H):
        out = out + _mm(ctx[h], w_out[h * HD:(h + 1) * HD, :])
    return out + b_out


def _decoder_expert(x, enc, causal_bias, e,
                    sa_qkv_w_ref, sa_qkv_b_ref, sa_out_w_ref, sa_out_b_ref, sln_ref,
                    ca_q_w_ref, ca_q_b_ref, ca_kv_w_ref, ca_kv_b_ref,
                    ca_out_w_ref, ca_out_b_ref, cln_ref,
                    fc1_w_ref, fc1_b_ref, fc2_w_ref, fc2_b_ref, fln_ref):
    # One BartDecoderLayer forward (eval mode, dropout = identity).
    # --- self attention: fused QKV projection, scaling pre-folded into Wq/bq ---
    qkv = _mm(x, sa_qkv_w_ref[e]) + sa_qkv_b_ref[e]                  # (L, 3D)
    a = _attn_core(qkv[:, :D], qkv[:, D:2 * D], qkv[:, 2 * D:], causal_bias,
                   sa_out_w_ref[e], sa_out_b_ref[e])
    sln = sln_ref[e]
    x = _layer_norm(x + a, sln[0], sln[1])
    # --- cross attention: fused KV projection on encoder states, no mask ---
    q = _mm(x, ca_q_w_ref[e]) + ca_q_b_ref[e]                        # (L, D)
    kv = _mm(enc, ca_kv_w_ref[e]) + ca_kv_b_ref[e]                   # (S, 2D)
    a = _attn_core(q, kv[:, :D], kv[:, D:], None,
                   ca_out_w_ref[e], ca_out_b_ref[e])
    cln = cln_ref[e]
    x = _layer_norm(x + a, cln[0], cln[1])
    # --- feed-forward ---
    h = _gelu_new(_mm(x, fc1_w_ref[e]) + fc1_b_ref[e])
    h = _mm(h, fc2_w_ref[e]) + fc2_b_ref[e]
    fln = fln_ref[e]
    return _layer_norm(x + h, fln[0], fln[1])


# --------------------------------- Pallas kernel --------------------------------
def routing_kernel(hs_ref, enc_ref, dist_ref,
                   sa_qkv_w_ref, sa_qkv_b_ref, sa_out_w_ref, sa_out_b_ref, sln_ref,
                   ca_q_w_ref, ca_q_b_ref, ca_kv_w_ref, ca_kv_b_ref,
                   ca_out_w_ref, ca_out_b_ref, cln_ref,
                   fc1_w_ref, fc1_b_ref, fc2_w_ref, fc2_b_ref, fln_ref,
                   out_ref):
    b = pl.program_id(0)
    x0 = hs_ref[0]                                  # (L, D) f32
    enc = enc_ref[0]                                # (S, D) f32

    # Causal additive bias built in-kernel (no HBM mask transfer, no head broadcast).
    rows = jax.lax.broadcasted_iota(jnp.int32, (L, L), 0)
    cols = jax.lax.broadcasted_iota(jnp.int32, (L, L), 1)
    causal_bias = jnp.where(rows >= cols, 0.0, NEG_INF).astype(jnp.float32)

    acc = jnp.zeros((L, D), jnp.float32)
    for e in range(E):                              # static unroll, E = 2
        xe = _decoder_expert(
            x0, enc, causal_bias, e,
            sa_qkv_w_ref, sa_qkv_b_ref, sa_out_w_ref, sa_out_b_ref, sln_ref,
            ca_q_w_ref, ca_q_b_ref, ca_kv_w_ref, ca_kv_b_ref,
            ca_out_w_ref, ca_out_b_ref, cln_ref,
            fc1_w_ref, fc1_b_ref, fc2_w_ref, fc2_b_ref, fln_ref)
        # einsum('blde,be->bld'): per-batch scalar routing weight from SMEM.
        acc = acc + xe * dist_ref[b, e]

    out_ref[0] = acc


def routing_bart_decoder_layer(hidden_states, encoder_hidden_states,
                               block_distribution, kp):
    vmem = pltpu.MemorySpace.VMEM
    smem = pltpu.MemorySpace.SMEM

    inputs = (
        hidden_states, encoder_hidden_states,
        block_distribution.astype(jnp.float32),
        kp['sa_qkv_w'], kp['sa_qkv_b'], kp['sa_out_w'], kp['sa_out_b'], kp['sln'],
        kp['ca_q_w'], kp['ca_q_b'], kp['ca_kv_w'], kp['ca_kv_b'],
        kp['ca_out_w'], kp['ca_out_b'], kp['cln'],
        kp['fc1_w'], kp['fc1_b'], kp['fc2_w'], kp['fc2_b'], kp['fln'],
    )

    in_specs = (
        [pl.BlockSpec((1, L, D), lambda b: (b, 0, 0)),      # hidden_states per batch
         pl.BlockSpec((1, S, D), lambda b: (b, 0, 0)),      # encoder_hidden per batch
         pl.BlockSpec(memory_space=smem)]                   # block_distribution scalars
        + [pl.BlockSpec(memory_space=vmem)] * 17            # expert weights (resident)
    )

    return pl.pallas_call(
        routing_kernel,
        out_shape=jax.ShapeDtypeStruct((B, L, D), jnp.float32),
        grid=(B,),
        in_specs=in_specs,
        out_specs=pl.BlockSpec((1, L, D), lambda b: (b, 0, 0)),
        compiler_params=pltpu.CompilerParams(
            dimension_semantics=("parallel",)),              # v7x: one batch per TC
    )(*inputs)


# ------------------------------ params & preparation ----------------------------
def init_params(key):
    # "PyTorch layout" reference parameters: attn weights (E, 4, D, D) = [q, k, v, out]
    # stored (in, out); biases zero; LayerNorm gamma=1, beta=0 (BART init_std=0.02).
    ks = jax.random.split(key, 4)
    std = 0.02
    ln = jnp.stack([jnp.ones((E, D), jnp.float32),
                    jnp.zeros((E, D), jnp.float32)], axis=1)   # (E, 2, D)
    return dict(
        sa_w=std * jax.random.normal(ks[0], (E, 4, D, D), jnp.float32),
        sa_b=jnp.zeros((E, 4, D), jnp.float32),
        sln=ln,
        ca_w=std * jax.random.normal(ks[1], (E, 4, D, D), jnp.float32),
        ca_b=jnp.zeros((E, 4, D), jnp.float32),
        cln=ln,
        fc1_w=std * jax.random.normal(ks[2], (E, D, F), jnp.float32),
        fc1_b=jnp.zeros((E, F), jnp.float32),
        fc2_w=std * jax.random.normal(ks[3], (E, F, D), jnp.float32),
        fc2_b=jnp.zeros((E, D), jnp.float32),
        fln=ln,
    )


def prepare_params(p):
    # One-time kernel-side param prep: fold 1/sqrt(HD) into Wq/bq, fuse QKV (self) and
    # KV (cross) along N, and cast MXU weight operands to bf16. Biases / LN stay f32.
    s = HD ** -0.5
    sa_qkv_w = jnp.concatenate([p['sa_w'][:, 0] * s, p['sa_w'][:, 1], p['sa_w'][:, 2]],
                               axis=-1)                               # (E, D, 3D)
    sa_qkv_b = jnp.concatenate([p['sa_b'][:, 0] * s, p['sa_b'][:, 1], p['sa_b'][:, 2]],
                               axis=-1)                               # (E, 3D)
    ca_kv_w = jnp.concatenate([p['ca_w'][:, 1], p['ca_w'][:, 2]], axis=-1)  # (E, D, 2D)
    ca_kv_b = jnp.concatenate([p['ca_b'][:, 1], p['ca_b'][:, 2]], axis=-1)  # (E, 2D)
    return dict(
        sa_qkv_w=sa_qkv_w.astype(MXU_DTYPE), sa_qkv_b=sa_qkv_b,
        sa_out_w=p['sa_w'][:, 3].astype(MXU_DTYPE), sa_out_b=p['sa_b'][:, 3],
        sln=p['sln'],
        ca_q_w=(p['ca_w'][:, 0] * s).astype(MXU_DTYPE), ca_q_b=p['ca_b'][:, 0] * s,
        ca_kv_w=ca_kv_w.astype(MXU_DTYPE), ca_kv_b=ca_kv_b,
        ca_out_w=p['ca_w'][:, 3].astype(MXU_DTYPE), ca_out_b=p['ca_b'][:, 3],
        cln=p['cln'],
        fc1_w=p['fc1_w'].astype(MXU_DTYPE), fc1_b=p['fc1_b'],
        fc2_w=p['fc2_w'].astype(MXU_DTYPE), fc2_b=p['fc2_b'],
        fln=p['fln'],
    )


# --------------------------------- f32 reference --------------------------------
def _ref_attention(xq, xkv, mask, w, b):
    scaling = HD ** -0.5
    q = (xq @ w[0] + b[0]) * scaling
    k = xkv @ w[1] + b[1]
    v = xkv @ w[2] + b[2]

    def heads(t):
        return t.reshape(t.shape[0], t.shape[1], H, HD).transpose(0, 2, 1, 3)

    qh, kh, vh = heads(q), heads(k), heads(v)
    s = jnp.einsum('bhqd,bhkd->bhqk', qh, kh) + mask[:, None]
    p = jax.nn.softmax(s, axis=-1)
    ctx = jnp.einsum('bhqk,bhkd->bhqd', p, vh)
    ctx = ctx.transpose(0, 2, 1, 3).reshape(xq.shape[0], xq.shape[1], D)
    return ctx @ w[3] + b[3]


def _ref_decoder_layer(hs, enc, smask, cmask, sa_w, sa_b, sln, ca_w, ca_b, cln,
                       fc1_w, fc1_b, fc2_w, fc2_b, fln):
    x = _layer_norm(hs + _ref_attention(hs, hs, smask, sa_w, sa_b), sln[0], sln[1])
    x = _layer_norm(x + _ref_attention(x, enc, cmask, ca_w, ca_b), cln[0], cln[1])
    h = _gelu_new(x @ fc1_w + fc1_b)
    h = h @ fc2_w + fc2_b
    return _layer_norm(x + h, fln[0], fln[1])


def reference(hidden_states, enc, smask, cmask, dist, params):
    outs = []
    for e in range(E):
        outs.append(_ref_decoder_layer(
            hidden_states, enc, smask, cmask,
            params['sa_w'][e], params['sa_b'][e], params['sln'][e],
            params['ca_w'][e], params['ca_b'][e], params['cln'][e],
            params['fc1_w'][e], params['fc1_b'][e], params['fc2_w'][e],
            params['fc2_b'][e], params['fln'][e]))
    stacked = jnp.stack(outs, axis=-1)            # (B, L, D, E)
    return jnp.einsum('blde,be->bld', stacked, dist)


if __name__ == "__main__":
    key = jax.random.PRNGKey(0)
    k1, k2, k3, kp_key = jax.random.split(key, 4)

    hidden_states = jax.random.normal(k1, (B, L, D), jnp.float32)
    encoder_hidden_states = jax.random.normal(k2, (B, S, D), jnp.float32)
    block_distribution = jax.nn.softmax(
        jax.random.normal(k3, (B, E), jnp.float32), axis=-1)

    params = init_params(kp_key)
    kparams = prepare_params(params)   # one-time prep (bf16 cast, QKV fuse, scale fold)

    out = routing_bart_decoder_layer(hidden_states, encoder_hidden_states,
                                     block_distribution, kparams)
    out = jax.block_until_ready(out)
    assert out.shape == (B, L, D)

    # Reference with the explicit causal self-attention mask and an all-zero
    # (i.e. absent) cross-attention mask — the semantics the kernel implements.
    causal = jnp.where(jnp.arange(L)[:, None] >= jnp.arange(L)[None, :], 0.0, NEG_INF)
    self_attn_mask = jnp.broadcast_to(causal, (B, L, L)).astype(jnp.float32)
    cross_attn_mask = jnp.zeros((B, L, S), jnp.float32)

    with jax.default_matmul_precision("highest"):
        ref = reference(hidden_states, encoder_hidden_states, self_attn_mask,
                        cross_attn_mask, block_distribution, params)
    err = float(jnp.max(jnp.abs(out - ref)))
    # 2e-2 tolerance accounts for bf16 MXU operands (f32 accumulate) vs. the
    # f32 highest-precision reference; observed error is ~1e-3 at these shapes.
    assert err < 2e-2, f"max abs diff {err}"

    print("KERNEL_OK")
</pallas_src>

<mosaic_0001>
module attributes {stable_mosaic.version = 11 : i64} {
  func.func @routing_kernel(%arg0: i32, %arg1: memref<1x8x32xf32, #tpu.memory_space<vmem>>, %arg2: memref<1x8x32xf32, #tpu.memory_space<vmem>>, %arg3: memref<2x2xf32, #tpu.memory_space<smem>>, %arg4: memref<2x32x96xbf16, #tpu.memory_space<vmem>>, %arg5: memref<2x96xf32, #tpu.memory_space<vmem>>, %arg6: memref<2x32x32xbf16, #tpu.memory_space<vmem>>, %arg7: memref<2x32xf32, #tpu.memory_space<vmem>>, %arg8: memref<2x2x32xf32, #tpu.memory_space<vmem>>, %arg9: memref<2x32x32xbf16, #tpu.memory_space<vmem>>, %arg10: memref<2x32xf32, #tpu.memory_space<vmem>>, %arg11: memref<2x32x64xbf16, #tpu.memory_space<vmem>>, %arg12: memref<2x64xf32, #tpu.memory_space<vmem>>, %arg13: memref<2x32x32xbf16, #tpu.memory_space<vmem>>, %arg14: memref<2x32xf32, #tpu.memory_space<vmem>>, %arg15: memref<2x2x32xf32, #tpu.memory_space<vmem>>, %arg16: memref<2x32x64xbf16, #tpu.memory_space<vmem>>, %arg17: memref<2x64xf32, #tpu.memory_space<vmem>>, %arg18: memref<2x64x32xbf16, #tpu.memory_space<vmem>>, %arg19: memref<2x32xf32, #tpu.memory_space<vmem>>, %arg20: memref<2x2x32xf32, #tpu.memory_space<vmem>>, %arg21: memref<1x8x32xf32, #tpu.memory_space<vmem>>) attributes {dimension_semantics = [#tpu.dimension_semantics<parallel>], iteration_bounds = array<i64: 2>, scalar_prefetch = 0 : i64, scratch_operands = 0 : i64, tpu.core_type = #tpu.core_type<tc>, window_params = [{transform_indices = @transform_0, window_bounds = array<i64: 1, 8, 32>}, {transform_indices = @transform_1, window_bounds = array<i64: 1, 8, 32>}, {transform_indices = @transform_2, window_bounds = array<i64: 2, 2>}, {pipeline_mode = #tpu.pipeline_mode<synchronous>, transform_indices = @transform_3, window_bounds = array<i64: 2, 32, 96>}, {pipeline_mode = #tpu.pipeline_mode<synchronous>, transform_indices = @transform_4, window_bounds = array<i64: 2, 96>}, {pipeline_mode = #tpu.pipeline_mode<synchronous>, transform_indices = @transform_5, window_bounds = array<i64: 2, 32, 32>}, {pipeline_mode = #tpu.pipeline_mode<synchronous>, transform_indices = @transform_6, window_bounds = array<i64: 2, 32>}, {pipeline_mode = #tpu.pipeline_mode<synchronous>, transform_indices = @transform_7, window_bounds = array<i64: 2, 2, 32>}, {pipeline_mode = #tpu.pipeline_mode<synchronous>, transform_indices = @transform_8, window_bounds = array<i64: 2, 32, 32>}, {pipeline_mode = #tpu.pipeline_mode<synchronous>, transform_indices = @transform_9, window_bounds = array<i64: 2, 32>}, {pipeline_mode = #tpu.pipeline_mode<synchronous>, transform_indices = @transform_10, window_bounds = array<i64: 2, 32, 64>}, {pipeline_mode = #tpu.pipeline_mode<synchronous>, transform_indices = @transform_11, window_bounds = array<i64: 2, 64>}, {pipeline_mode = #tpu.pipeline_mode<synchronous>, transform_indices = @transform_12, window_bounds = array<i64: 2, 32, 32>}, {pipeline_mode = #tpu.pipeline_mode<synchronous>, transform_indices = @transform_13, window_bounds = array<i64: 2, 32>}, {pipeline_mode = #tpu.pipeline_mode<synchronous>, transform_indices = @transform_14, window_bounds = array<i64: 2, 2, 32>}, {pipeline_mode = #tpu.pipeline_mode<synchronous>, transform_indices = @transform_15, window_bounds = array<i64: 2, 32, 64>}, {pipeline_mode = #tpu.pipeline_mode<synchronous>, transform_indices = @transform_16, window_bounds = array<i64: 2, 64>}, {pipeline_mode = #tpu.pipeline_mode<synchronous>, transform_indices = @transform_17, window_bounds = array<i64: 2, 64, 32>}, {pipeline_mode = #tpu.pipeline_mode<synchronous>, transform_indices = @transform_18, window_bounds = array<i64: 2, 32>}, {pipeline_mode = #tpu.pipeline_mode<synchronous>, transform_indices = @transform_19, window_bounds = array<i64: 2, 2, 32>}, {transform_indices = @transform_20, window_bounds = array<i64: 1, 8, 32>}]} {
    %c0 = arith.constant 0 : index
    %c0_0 = arith.constant 0 : index
    %c0_1 = arith.constant 0 : index
    %0 = vector.load %arg1[%c0, %c0_0, %c0_1] : memref<1x8x32xf32, #tpu.memory_space<vmem>>, vector<1x8x32xf32>
    %1 = vector.shape_cast %0 : vector<1x8x32xf32> to vector<8x32xf32>
    %c0_2 = arith.constant 0 : index
    %c0_3 = arith.constant 0 : index
    %c0_4 = arith.constant 0 : index
    %2 = vector.load %arg2[%c0_2, %c0_3, %c0_4] : memref<1x8x32xf32, #tpu.memory_space<vmem>>, vector<1x8x32xf32>
    %3 = vector.shape_cast %2 : vector<1x8x32xf32> to vector<8x32xf32>
    %4 = tpu.iota {dimensions = array<i32: 0>} : vector<8x8xi32>
    %5 = tpu.iota {dimensions = array<i32: 1>} : vector<8x8xi32>
    %6 = arith.cmpi sge, %4, %5 : vector<8x8xi32>
    %cst = arith.constant 0.000000e+00 : f32
    %cst_5 = arith.constant -1.000000e+09 : f32
    %7 = vector.broadcast %cst : f32 to vector<8x8xf32>
    %8 = vector.broadcast %cst_5 : f32 to vector<8x8xf32>
    %9 = arith.select %6, %7, %8 : vector<8x8xi1>, vector<8x8xf32>
    %cst_6 = arith.constant 0.000000e+00 : f32
    %10 = vector.broadcast %cst_6 : f32 to vector<8x32xf32>
    %c0_7 = arith.constant 0 : index
    %c0_8 = arith.constant 0 : index
    %c0_9 = arith.constant 0 : index
    %11 = vector.load %arg4[%c0_7, %c0_8, %c0_9] : memref<2x32x96xbf16, #tpu.memory_space<vmem>>, vector<1x32x96xbf16>
    %12 = vector.shape_cast %11 : vector<1x32x96xbf16> to vector<32x96xbf16>
    %13 = arith.truncf %1 : vector<8x32xf32> to vector<8x32xbf16>
    %cst_10 = arith.constant dense<0.000000e+00> : vector<8x96xf32>
    %14 = tpu.matmul %13, %12, %cst_10 {dimension_numbers = #tpu.dot_dimension_numbers<[1], [0], [0], [1], [0, 0, 1, 1], [], []>} : vector<8x32xbf16>, vector<32x96xbf16>, vector<8x96xf32> -> vector<8x96xf32>
    %c0_11 = arith.constant 0 : index
    %c0_12 = arith.constant 0 : index
    %15 = vector.load %arg5[%c0_11, %c0_12] : memref<2x96xf32, #tpu.memory_space<vmem>>, vector<1x96xf32>
    %16 = vector.shape_cast %15 : vector<1x96xf32> to vector<96xf32>
    %17 = vector.shape_cast %16 : vector<96xf32> to vector<1x96xf32>
    %18 = vector.broadcast %17 : vector<1x96xf32> to vector<8x96xf32>
    %19 = arith.addf %14, %18 : vector<8x96xf32>
    %20 = vector.extract_strided_slice %19 {offsets = [0, 0], sizes = [8, 32], strides = [1, 1]} : vector<8x96xf32> to vector<8x32xf32>
    %21 = vector.extract_strided_slice %19 {offsets = [0, 32], sizes = [8, 32], strides = [1, 1]} : vector<8x96xf32> to vector<8x32xf32>
    %22 = vector.extract_strided_slice %19 {offsets = [0, 64], sizes = [8, 32], strides = [1, 1]} : vector<8x96xf32> to vector<8x32xf32>
    %c0_13 = arith.constant 0 : index
    %c0_14 = arith.constant 0 : index
    %c0_15 = arith.constant 0 : index
    %23 = vector.load %arg6[%c0_13, %c0_14, %c0_15] : memref<2x32x32xbf16, #tpu.memory_space<vmem>>, vector<1x32x32xbf16>
    %24 = vector.shape_cast %23 : vector<1x32x32xbf16> to vector<32x32xbf16>
    %c0_16 = arith.constant 0 : index
    %c0_17 = arith.constant 0 : index
    %25 = vector.load %arg7[%c0_16, %c0_17] : memref<2x32xf32, #tpu.memory_space<vmem>>, vector<1x32xf32>
    %26 = vector.shape_cast %25 : vector<1x32xf32> to vector<32xf32>
    %27 = vector.extract_strided_slice %20 {offsets = [0, 0], sizes = [8, 8], strides = [1, 1]} : vector<8x32xf32> to vector<8x8xf32>
    %28 = vector.extract_strided_slice %20 {offsets = [0, 8], sizes = [8, 8], strides = [1, 1]} : vector<8x32xf32> to vector<8x8xf32>
    %29 = vector.extract_strided_slice %20 {offsets = [0, 16], sizes = [8, 8], strides = [1, 1]} : vector<8x32xf32> to vector<8x8xf32>
    %30 = vector.extract_strided_slice %20 {offsets = [0, 24], sizes = [8, 8], strides = [1, 1]} : vector<8x32xf32> to vector<8x8xf32>
    %31 = vector.shape_cast %27 : vector<8x8xf32> to vector<1x8x8xf32>
    %32 = vector.shape_cast %28 : vector<8x8xf32> to vector<1x8x8xf32>
    %33 = vector.shape_cast %29 : vector<8x8xf32> to vector<1x8x8xf32>
    %34 = vector.shape_cast %30 : vector<8x8xf32> to vector<1x8x8xf32>
    %35 = tpu.concatenate %31, %32, %33, %34 in 0 : vector<1x8x8xf32>, vector<1x8x8xf32>, vector<1x8x8xf32>, vector<1x8x8xf32> -> vector<4x8x8xf32>
    %36 = vector.extract_strided_slice %21 {offsets = [0, 0], sizes = [8, 8], strides = [1, 1]} : vector<8x32xf32> to vector<8x8xf32>
    %37 = vector.extract_strided_slice %21 {offsets = [0, 8], sizes = [8, 8], strides = [1, 1]} : vector<8x32xf32> to vector<8x8xf32>
    %38 = vector.extract_strided_slice %21 {offsets = [0, 16], sizes = [8, 8], strides = [1, 1]} : vector<8x32xf32> to vector<8x8xf32>
    %39 = vector.extract_strided_slice %21 {offsets = [0, 24], sizes = [8, 8], strides = [1, 1]} : vector<8x32xf32> to vector<8x8xf32>
    %40 = vector.shape_cast %36 : vector<8x8xf32> to vector<1x8x8xf32>
    %41 = vector.shape_cast %37 : vector<8x8xf32> to vector<1x8x8xf32>
    %42 = vector.shape_cast %38 : vector<8x8xf32> to vector<1x8x8xf32>
    %43 = vector.shape_cast %39 : vector<8x8xf32> to vector<1x8x8xf32>
    %44 = tpu.concatenate %40, %41, %42, %43 in 0 : vector<1x8x8xf32>, vector<1x8x8xf32>, vector<1x8x8xf32>, vector<1x8x8xf32> -> vector<4x8x8xf32>
    %45 = vector.extract_strided_slice %22 {offsets = [0, 0], sizes = [8, 8], strides = [1, 1]} : vector<8x32xf32> to vector<8x8xf32>
    %46 = vector.extract_strided_slice %22 {offsets = [0, 8], sizes = [8, 8], strides = [1, 1]} : vector<8x32xf32> to vector<8x8xf32>
    %47 = vector.extract_strided_slice %22 {offsets = [0, 16], sizes = [8, 8], strides = [1, 1]} : vector<8x32xf32> to vector<8x8xf32>
    %48 = vector.extract_strided_slice %22 {offsets = [0, 24], sizes = [8, 8], strides = [1, 1]} : vector<8x32xf32> to vector<8x8xf32>
    %49 = vector.shape_cast %45 : vector<8x8xf32> to vector<1x8x8xf32>
    %50 = vector.shape_cast %46 : vector<8x8xf32> to vector<1x8x8xf32>
    %51 = vector.shape_cast %47 : vector<8x8xf32> to vector<1x8x8xf32>
    %52 = vector.shape_cast %48 : vector<8x8xf32> to vector<1x8x8xf32>
    %53 = tpu.concatenate %49, %50, %51, %52 in 0 : vector<1x8x8xf32>, vector<1x8x8xf32>, vector<1x8x8xf32>, vector<1x8x8xf32> -> vector<4x8x8xf32>
    %54 = arith.truncf %35 : vector<4x8x8xf32> to vector<4x8x8xbf16>
    %55 = arith.truncf %44 : vector<4x8x8xf32> to vector<4x8x8xbf16>
    "tpu.trace_start"() <{level = 10 : i32, message = "hqd,hkd->hqk"}> : () -> ()
    %cst_18 = arith.constant dense<0.000000e+00> : vector<4x8x8xf32>
    %56 = tpu.matmul %54, %55, %cst_18 {dimension_numbers = #tpu.dot_dimension_numbers<[2], [2], [1], [1], [0, 0, 0, 1, 1, 1], [0], [0]>} : vector<4x8x8xbf16>, vector<4x8x8xbf16>, vector<4x8x8xf32> -> vector<4x8x8xf32>
    "tpu.trace_stop"() : () -> ()
    %57 = vector.shape_cast %9 : vector<8x8xf32> to vector<1x8x8xf32>
    %58 = vector.broadcast %57 : vector<1x8x8xf32> to vector<4x8x8xf32>
    %59 = arith.addf %56, %58 : vector<4x8x8xf32>
    %cst_19 = arith.constant dense<0xFF800000> : vector<4x8xf32>
    %60 = vector.multi_reduction <maximumf>, %59, %cst_19 [2] : vector<4x8x8xf32> to vector<4x8xf32>
    %61 = vector.shape_cast %60 : vector<4x8xf32> to vector<4x8x1xf32>
    %62 = vector.broadcast %61 : vector<4x8x1xf32> to vector<4x8x8xf32>
    %63 = arith.subf %59, %62 : vector<4x8x8xf32>
    %64 = math.exp %63 : vector<4x8x8xf32>
    %cst_20 = arith.constant dense<0.000000e+00> : vector<4x8xf32>
    %65 = vector.multi_reduction <add>, %64, %cst_20 [2] : vector<4x8x8xf32> to vector<4x8xf32>
    %66 = vector.shape_cast %65 : vector<4x8xf32> to vector<4x8x1xf32>
    %67 = tpu.reciprocal %66 {approx = true} : vector<4x8x1xf32> -> vector<4x8x1xf32>
    %68 = vector.broadcast %67 : vector<4x8x1xf32> to vector<4x8x8xf32>
    %69 = arith.mulf %64, %68 : vector<4x8x8xf32>
    %70 = arith.truncf %69 : vector<4x8x8xf32> to vector<4x8x8xbf16>
    %71 = arith.truncf %53 : vector<4x8x8xf32> to vector<4x8x8xbf16>
    "tpu.trace_start"() <{level = 10 : i32, message = "hqk,hkd->hqd"}> : () -> ()
    %cst_21 = arith.constant dense<0.000000e+00> : vector<4x8x8xf32>
    %72 = tpu.matmul %70, %71, %cst_21 {dimension_numbers = #tpu.dot_dimension_numbers<[2], [1], [1], [2], [0, 0, 0, 1, 1, 2], [0], [0]>} : vector<4x8x8xbf16>, vector<4x8x8xbf16>, vector<4x8x8xf32> -> vector<4x8x8xf32>
    %cst_22 = arith.constant 0.000000e+00 : f32
    "tpu.trace_stop"() : () -> ()
    %73 = vector.broadcast %cst_22 : f32 to vector<8x32xf32>
    %74 = vector.extract_strided_slice %72 {offsets = [0, 0, 0], sizes = [1, 8, 8], strides = [1, 1, 1]} : vector<4x8x8xf32> to vector<1x8x8xf32>
    %75 = vector.shape_cast %74 : vector<1x8x8xf32> to vector<8x8xf32>
    %76 = vector.extract_strided_slice %24 {offsets = [0, 0], sizes = [8, 32], strides = [1, 1]} : vector<32x32xbf16> to vector<8x32xbf16>
    %77 = arith.truncf %75 : vector<8x8xf32> to vector<8x8xbf16>
    %cst_23 = arith.constant dense<0.000000e+00> : vector<8x32xf32>
    %78 = tpu.matmul %77, %76, %cst_23 {dimension_numbers = #tpu.dot_dimension_numbers<[1], [0], [0], [1], [0, 0, 1, 1], [], []>} : vector<8x8xbf16>, vector<8x32xbf16>, vector<8x32xf32> -> vector<8x32xf32>
    %79 = arith.addf %73, %78 : vector<8x32xf32>
    %80 = vector.extract_strided_slice %72 {offsets = [1, 0, 0], sizes = [1, 8, 8], strides = [1, 1, 1]} : vector<4x8x8xf32> to vector<1x8x8xf32>
    %81 = vector.shape_cast %80 : vector<1x8x8xf32> to vector<8x8xf32>
    %82 = vector.extract_strided_slice %24 {offsets = [8, 0], sizes = [8, 32], strides = [1, 1]} : vector<32x32xbf16> to vector<8x32xbf16>
    %83 = arith.truncf %81 : vector<8x8xf32> to vector<8x8xbf16>
    %cst_24 = arith.constant dense<0.000000e+00> : vector<8x32xf32>
    %84 = tpu.matmul %83, %82, %cst_24 {dimension_numbers = #tpu.dot_dimension_numbers<[1], [0], [0], [1], [0, 0, 1, 1], [], []>} : vector<8x8xbf16>, vector<8x32xbf16>, vector<8x32xf32> -> vector<8x32xf32>
    %85 = arith.addf %79, %84 : vector<8x32xf32>
    %86 = vector.extract_strided_slice %72 {offsets = [2, 0, 0], sizes = [1, 8, 8], strides = [1, 1, 1]} : vector<4x8x8xf32> to vector<1x8x8xf32>
    %87 = vector.shape_cast %86 : vector<1x8x8xf32> to vector<8x8xf32>
    %88 = vector.extract_strided_slice %24 {offsets = [16, 0], sizes = [8, 32], strides = [1, 1]} : vector<32x32xbf16> to vector<8x32xbf16>
    %89 = arith.truncf %87 : vector<8x8xf32> to vector<8x8xbf16>
    %cst_25 = arith.constant dense<0.000000e+00> : vector<8x32xf32>
    %90 = tpu.matmul %89, %88, %cst_25 {dimension_numbers = #tpu.dot_dimension_numbers<[1], [0], [0], [1], [0, 0, 1, 1], [], []>} : vector<8x8xbf16>, vector<8x32xbf16>, vector<8x32xf32> -> vector<8x32xf32>
    %91 = arith.addf %85, %90 : vector<8x32xf32>
    %92 = vector.extract_strided_slice %72 {offsets = [3, 0, 0], sizes = [1, 8, 8], strides = [1, 1, 1]} : vector<4x8x8xf32> to vector<1x8x8xf32>
    %93 = vector.shape_cast %92 : vector<1x8x8xf32> to vector<8x8xf32>
    %94 = vector.extract_strided_slice %24 {offsets = [24, 0], sizes = [8, 32], strides = [1, 1]} : vector<32x32xbf16> to vector<8x32xbf16>
    %95 = arith.truncf %93 : vector<8x8xf32> to vector<8x8xbf16>
    %cst_26 = arith.constant dense<0.000000e+00> : vector<8x32xf32>
    %96 = tpu.matmul %95, %94, %cst_26 {dimension_numbers = #tpu.dot_dimension_numbers<[1], [0], [0], [1], [0, 0, 1, 1], [], []>} : vector<8x8xbf16>, vector<8x32xbf16>, vector<8x32xf32> -> vector<8x32xf32>
    %97 = arith.addf %91, %96 : vector<8x32xf32>
    %98 = vector.shape_cast %26 : vector<32xf32> to vector<1x32xf32>
    %99 = vector.broadcast %98 : vector<1x32xf32> to vector<8x32xf32>
    %100 = arith.addf %97, %99 : vector<8x32xf32>
    %c0_27 = arith.constant 0 : index
    %c0_28 = arith.constant 0 : index
    %c0_29 = arith.constant 0 : index
    %101 = vector.load %arg8[%c0_27, %c0_28, %c0_29] : memref<2x2x32xf32, #tpu.memory_space<vmem>>, vector<1x2x32xf32>
    %102 = vector.shape_cast %101 : vector<1x2x32xf32> to vector<2x32xf32>
    %103 = arith.addf %1, %100 : vector<8x32xf32>
    %104 = vector.extract_strided_slice %102 {offsets = [0, 0], sizes = [1, 32], strides = [1, 1]} : vector<2x32xf32> to vector<1x32xf32>
    %105 = vector.shape_cast %104 : vector<1x32xf32> to vector<32xf32>
    %106 = vector.extract_strided_slice %102 {offsets = [1, 0], sizes = [1, 32], strides = [1, 1]} : vector<2x32xf32> to vector<1x32xf32>
    %107 = vector.shape_cast %106 : vector<1x32xf32> to vector<32xf32>
    %cst_30 = arith.constant dense<0.000000e+00> : vector<8xf32>
    %108 = vector.multi_reduction <add>, %103, %cst_30 [1] : vector<8x32xf32> to vector<8xf32>
    %109 = vector.shape_cast %108 : vector<8xf32> to vector<8x1xf32>
    %cst_31 = arith.constant 3.200000e+01 : f32
    %110 = vector.broadcast %cst_31 : f32 to vector<8x1xf32>
    %111 = arith.divf %109, %110 : vector<8x1xf32>
    %112 = vector.broadcast %111 : vector<8x1xf32> to vector<8x32xf32>
    %113 = arith.subf %103, %112 : vector<8x32xf32>
    %114 = arith.mulf %113, %113 : vector<8x32xf32>
    %cst_32 = arith.constant dense<0.000000e+00> : vector<8xf32>
    %115 = vector.multi_reduction <add>, %114, %cst_32 [1] : vector<8x32xf32> to vector<8xf32>
    %116 = vector.shape_cast %115 : vector<8xf32> to vector<8x1xf32>
    %cst_33 = arith.constant 3.200000e+01 : f32
    %117 = vector.broadcast %cst_33 : f32 to vector<8x1xf32>
    %118 = arith.divf %116, %117 : vector<8x1xf32>
    %119 = vector.broadcast %111 : vector<8x1xf32> to vector<8x32xf32>
    %120 = arith.subf %103, %119 : vector<8x32xf32>
    %cst_34 = arith.constant 9.99999974E-6 : f32
    %121 = vector.broadcast %cst_34 : f32 to vector<8x1xf32>
    %122 = arith.addf %118, %121 : vector<8x1xf32>
    %123 = math.rsqrt %122 : vector<8x1xf32>
    %124 = vector.broadcast %123 : vector<8x1xf32> to vector<8x32xf32>
    %125 = arith.mulf %120, %124 : vector<8x32xf32>
    %126 = vector.shape_cast %105 : vector<32xf32> to vector<1x32xf32>
    %127 = vector.broadcast %126 : vector<1x32xf32> to vector<8x32xf32>
    %128 = arith.mulf %125, %127 : vector<8x32xf32>
    %129 = vector.shape_cast %107 : vector<32xf32> to vector<1x32xf32>
    %130 = vector.broadcast %129 : vector<1x32xf32> to vector<8x32xf32>
    %131 = arith.addf %128, %130 : vector<8x32xf32>
    %c0_35 = arith.constant 0 : index
    %c0_36 = arith.constant 0 : index
    %c0_37 = arith.constant 0 : index
    %132 = vector.load %arg9[%c0_35, %c0_36, %c0_37] : memref<2x32x32xbf16, #tpu.memory_space<vmem>>, vector<1x32x32xbf16>
    %133 = vector.shape_cast %132 : vector<1x32x32xbf16> to vector<32x32xbf16>
    %134 = arith.truncf %131 : vector<8x32xf32> to vector<8x32xbf16>
    %cst_38 = arith.constant dense<0.000000e+00> : vector<8x32xf32>
    %135 = tpu.matmul %134, %133, %cst_38 {dimension_numbers = #tpu.dot_dimension_numbers<[1], [0], [0], [1], [0, 0, 1, 1], [], []>} : vector<8x32xbf16>, vector<32x32xbf16>, vector<8x32xf32> -> vector<8x32xf32>
    %c0_39 = arith.constant 0 : index
    %c0_40 = arith.constant 0 : index
    %136 = vector.load %arg10[%c0_39, %c0_40] : memref<2x32xf32, #tpu.memory_space<vmem>>, vector<1x32xf32>
    %137 = vector.shape_cast %136 : vector<1x32xf32> to vector<32xf32>
    %138 = vector.shape_cast %137 : vector<32xf32> to vector<1x32xf32>
    %139 = vector.broadcast %138 : vector<1x32xf32> to vector<8x32xf32>
    %140 = arith.addf %135, %139 : vector<8x32xf32>
    %c0_41 = arith.constant 0 : index
    %c0_42 = arith.constant 0 : index
    %c0_43 = arith.constant 0 : index
    %141 = vector.load %arg11[%c0_41, %c0_42, %c0_43] : memref<2x32x64xbf16, #tpu.memory_space<vmem>>, vector<1x32x64xbf16>
    %142 = vector.shape_cast %141 : vector<1x32x64xbf16> to vector<32x64xbf16>
    %143 = arith.truncf %3 : vector<8x32xf32> to vector<8x32xbf16>
    %cst_44 = arith.constant dense<0.000000e+00> : vector<8x64xf32>
    %144 = tpu.matmul %143, %142, %cst_44 {dimension_numbers = #tpu.dot_dimension_numbers<[1], [0], [0], [1], [0, 0, 1, 1], [], []>} : vector<8x32xbf16>, vector<32x64xbf16>, vector<8x64xf32> -> vector<8x64xf32>
    %c0_45 = arith.constant 0 : index
    %c0_46 = arith.constant 0 : index
    %145 = vector.load %arg12[%c0_45, %c0_46] : memref<2x64xf32, #tpu.memory_space<vmem>>, vector<1x64xf32>
    %146 = vector.shape_cast %145 : vector<1x64xf32> to vector<64xf32>
    %147 = vector.shape_cast %146 : vector<64xf32> to vector<1x64xf32>
    %148 = vector.broadcast %147 : vector<1x64xf32> to vector<8x64xf32>
    %149 = arith.addf %144, %148 : vector<8x64xf32>
    %150 = vector.extract_strided_slice %149 {offsets = [0, 0], sizes = [8, 32], strides = [1, 1]} : vector<8x64xf32> to vector<8x32xf32>
    %151 = vector.extract_strided_slice %149 {offsets = [0, 32], sizes = [8, 32], strides = [1, 1]} : vector<8x64xf32> to vector<8x32xf32>
    %c0_47 = arith.constant 0 : index
    %c0_48 = arith.constant 0 : index
    %c0_49 = arith.constant 0 : index
    %152 = vector.load %arg13[%c0_47, %c0_48, %c0_49] : memref<2x32x32xbf16, #tpu.memory_space<vmem>>, vector<1x32x32xbf16>
    %153 = vector.shape_cast %152 : vector<1x32x32xbf16> to vector<32x32xbf16>
    %c0_50 = arith.constant 0 : index
    %c0_51 = arith.constant 0 : index
    %154 = vector.load %arg14[%c0_50, %c0_51] : memref<2x32xf32, #tpu.memory_space<vmem>>, vector<1x32xf32>
    %155 = vector.shape_cast %154 : vector<1x32xf32> to vector<32xf32>
    %156 = vector.extract_strided_slice %140 {offsets = [0, 0], sizes = [8, 8], strides = [1, 1]} : vector<8x32xf32> to vector<8x8xf32>
    %157 = vector.extract_strided_slice %140 {offsets = [0, 8], sizes = [8, 8], strides = [1, 1]} : vector<8x32xf32> to vector<8x8xf32>
    %158 = vector.extract_strided_slice %140 {offsets = [0, 16], sizes = [8, 8], strides = [1, 1]} : vector<8x32xf32> to vector<8x8xf32>
    %159 = vector.extract_strided_slice %140 {offsets = [0, 24], sizes = [8, 8], strides = [1, 1]} : vector<8x32xf32> to vector<8x8xf32>
    %160 = vector.shape_cast %156 : vector<8x8xf32> to vector<1x8x8xf32>
    %161 = vector.shape_cast %157 : vector<8x8xf32> to vector<1x8x8xf32>
    %162 = vector.shape_cast %158 : vector<8x8xf32> to vector<1x8x8xf32>
    %163 = vector.shape_cast %159 : vector<8x8xf32> to vector<1x8x8xf32>
    %164 = tpu.concatenate %160, %161, %162, %163 in 0 : vector<1x8x8xf32>, vector<1x8x8xf32>, vector<1x8x8xf32>, vector<1x8x8xf32> -> vector<4x8x8xf32>
    %165 = vector.extract_strided_slice %150 {offsets = [0, 0], sizes = [8, 8], strides = [1, 1]} : vector<8x32xf32> to vector<8x8xf32>
    %166 = vector.extract_strided_slice %150 {offsets = [0, 8], sizes = [8, 8], strides = [1, 1]} : vector<8x32xf32> to vector<8x8xf32>
    %167 = vector.extract_strided_slice %150 {offsets = [0, 16], sizes = [8, 8], strides = [1, 1]} : vector<8x32xf32> to vector<8x8xf32>
    %168 = vector.extract_strided_slice %150 {offsets = [0, 24], sizes = [8, 8], strides = [1, 1]} : vector<8x32xf32> to vector<8x8xf32>
    %169 = vector.shape_cast %165 : vector<8x8xf32> to vector<1x8x8xf32>
    %170 = vector.shape_cast %166 : vector<8x8xf32> to vector<1x8x8xf32>
    %171 = vector.shape_cast %167 : vector<8x8xf32> to vector<1x8x8xf32>
    %172 = vector.shape_cast %168 : vector<8x8xf32> to vector<1x8x8xf32>
    %173 = tpu.concatenate %169, %170, %171, %172 in 0 : vector<1x8x8xf32>, vector<1x8x8xf32>, vector<1x8x8xf32>, vector<1x8x8xf32> -> vector<4x8x8xf32>
    %174 = vector.extract_strided_slice %151 {offsets = [0, 0], sizes = [8, 8], strides = [1, 1]} : vector<8x32xf32> to vector<8x8xf32>
    %175 = vector.extract_strided_slice %151 {offsets = [0, 8], sizes = [8, 8], strides = [1, 1]} : vector<8x32xf32> to vector<8x8xf32>
    %176 = vector.extract_strided_slice %151 {offsets = [0, 16], sizes = [8, 8], strides = [1, 1]} : vector<8x32xf32> to vector<8x8xf32>
    %177 = vector.extract_strided_slice %151 {offsets = [0, 24], sizes = [8, 8], strides = [1, 1]} : vector<8x32xf32> to vector<8x8xf32>
    %178 = vector.shape_cast %174 : vector<8x8xf32> to vector<1x8x8xf32>
    %179 = vector.shape_cast %175 : vector<8x8xf32> to vector<1x8x8xf32>
    %180 = vector.shape_cast %176 : vector<8x8xf32> to vector<1x8x8xf32>
    %181 = vector.shape_cast %177 : vector<8x8xf32> to vector<1x8x8xf32>
    %182 = tpu.concatenate %178, %179, %180, %181 in 0 : vector<1x8x8xf32>, vector<1x8x8xf32>, vector<1x8x8xf32>, vector<1x8x8xf32> -> vector<4x8x8xf32>
    %183 = arith.truncf %164 : vector<4x8x8xf32> to vector<4x8x8xbf16>
    %184 = arith.truncf %173 : vector<4x8x8xf32> to vector<4x8x8xbf16>
    "tpu.trace_start"() <{level = 10 : i32, message = "hqd,hkd->hqk"}> : () -> ()
    %cst_52 = arith.constant dense<0.000000e+00> : vector<4x8x8xf32>
    %185 = tpu.matmul %183, %184, %cst_52 {dimension_numbers = #tpu.dot_dimension_numbers<[2], [2], [1], [1], [0, 0, 0, 1, 1, 1], [0], [0]>} : vector<4x8x8xbf16>, vector<4x8x8xbf16>, vector<4x8x8xf32> -> vector<4x8x8xf32>
    "tpu.trace_stop"() : () -> ()
    %cst_53 = arith.constant dense<0xFF800000> : vector<4x8xf32>
    %186 = vector.multi_reduction <maximumf>, %185, %cst_53 [2] : vector<4x8x8xf32> to vector<4x8xf32>
    %187 = vector.shape_cast %186 : vector<4x8xf32> to vector<4x8x1xf32>
    %188 = vector.broadcast %187 : vector<4x8x1xf32> to vector<4x8x8xf32>
    %189 = arith.subf %185, %188 : vector<4x8x8xf32>
    %190 = math.exp %189 : vector<4x8x8xf32>
    %cst_54 = arith.constant dense<0.000000e+00> : vector<4x8xf32>
    %191 = vector.multi_reduction <add>, %190, %cst_54 [2] : vector<4x8x8xf32> to vector<4x8xf32>
    %192 = vector.shape_cast %191 : vector<4x8xf32> to vector<4x8x1xf32>
    %193 = tpu.reciprocal %192 {approx = true} : vector<4x8x1xf32> -> vector<4x8x1xf32>
    %194 = vector.broadcast %193 : vector<4x8x1xf32> to vector<4x8x8xf32>
    %195 = arith.mulf %190, %194 : vector<4x8x8xf32>
    %196 = arith.truncf %195 : vector<4x8x8xf32> to vector<4x8x8xbf16>
    %197 = arith.truncf %182 : vector<4x8x8xf32> to vector<4x8x8xbf16>
    "tpu.trace_start"() <{level = 10 : i32, message = "hqk,hkd->hqd"}> : () -> ()
    %cst_55 = arith.constant dense<0.000000e+00> : vector<4x8x8xf32>
    %198 = tpu.matmul %196, %197, %cst_55 {dimension_numbers = #tpu.dot_dimension_numbers<[2], [1], [1], [2], [0, 0, 0, 1, 1, 2], [0], [0]>} : vector<4x8x8xbf16>, vector<4x8x8xbf16>, vector<4x8x8xf32> -> vector<4x8x8xf32>
    %cst_56 = arith.constant 0.000000e+00 : f32
    "tpu.trace_stop"() : () -> ()
    %199 = vector.broadcast %cst_56 : f32 to vector<8x32xf32>
    %200 = vector.extract_strided_slice %198 {offsets = [0, 0, 0], sizes = [1, 8, 8], strides = [1, 1, 1]} : vector<4x8x8xf32> to vector<1x8x8xf32>
    %201 = vector.shape_cast %200 : vector<1x8x8xf32> to vector<8x8xf32>
    %202 = vector.extract_strided_slice %153 {offsets = [0, 0], sizes = [8, 32], strides = [1, 1]} : vector<32x32xbf16> to vector<8x32xbf16>
    %203 = arith.truncf %201 : vector<8x8xf32> to vector<8x8xbf16>
    %cst_57 = arith.constant dense<0.000000e+00> : vector<8x32xf32>
    %204 = tpu.matmul %203, %202, %cst_57 {dimension_numbers = #tpu.dot_dimension_numbers<[1], [0], [0], [1], [0, 0, 1, 1], [], []>} : vector<8x8xbf16>, vector<8x32xbf16>, vector<8x32xf32> -> vector<8x32xf32>
    %205 = arith.addf %199, %204 : vector<8x32xf32>
    %206 = vector.extract_strided_slice %198 {offsets = [1, 0, 0], sizes = [1, 8, 8], strides = [1, 1, 1]} : vector<4x8x8xf32> to vector<1x8x8xf32>
    %207 = vector.shape_cast %206 : vector<1x8x8xf32> to vector<8x8xf32>
    %208 = vector.extract_strided_slice %153 {offsets = [8, 0], sizes = [8, 32], strides = [1, 1]} : vector<32x32xbf16> to vector<8x32xbf16>
    %209 = arith.truncf %207 : vector<8x8xf32> to vector<8x8xbf16>
    %cst_58 = arith.constant dense<0.000000e+00> : vector<8x32xf32>
    %210 = tpu.matmul %209, %208, %cst_58 {dimension_numbers = #tpu.dot_dimension_numbers<[1], [0], [0], [1], [0, 0, 1, 1], [], []>} : vector<8x8xbf16>, vector<8x32xbf16>, vector<8x32xf32> -> vector<8x32xf32>
    %211 = arith.addf %205, %210 : vector<8x32xf32>
    %212 = vector.extract_strided_slice %198 {offsets = [2, 0, 0], sizes = [1, 8, 8], strides = [1, 1, 1]} : vector<4x8x8xf32> to vector<1x8x8xf32>
    %213 = vector.shape_cast %212 : vector<1x8x8xf32> to vector<8x8xf32>
    %214 = vector.extract_strided_slice %153 {offsets = [16, 0], sizes = [8, 32], strides = [1, 1]} : vector<32x32xbf16> to vector<8x32xbf16>
    %215 = arith.truncf %213 : vector<8x8xf32> to vector<8x8xbf16>
    %cst_59 = arith.constant dense<0.000000e+00> : vector<8x32xf32>
    %216 = tpu.matmul %215, %214, %cst_59 {dimension_numbers = #tpu.dot_dimension_numbers<[1], [0], [0], [1], [0, 0, 1, 1], [], []>} : vector<8x8xbf16>, vector<8x32xbf16>, vector<8x32xf32> -> vector<8x32xf32>
    %217 = arith.addf %211, %216 : vector<8x32xf32>
    %218 = vector.extract_strided_slice %198 {offsets = [3, 0, 0], sizes = [1, 8, 8], strides = [1, 1, 1]} : vector<4x8x8xf32> to vector<1x8x8xf32>
    %219 = vector.shape_cast %218 : vector<1x8x8xf32> to vector<8x8xf32>
    %220 = vector.extract_strided_slice %153 {offsets = [24, 0], sizes = [8, 32], strides = [1, 1]} : vector<32x32xbf16> to vector<8x32xbf16>
    %221 = arith.truncf %219 : vector<8x8xf32> to vector<8x8xbf16>
    %cst_60 = arith.constant dense<0.000000e+00> : vector<8x32xf32>
    %222 = tpu.matmul %221, %220, %cst_60 {dimension_numbers = #tpu.dot_dimension_numbers<[1], [0], [0], [1], [0, 0, 1, 1], [], []>} : vector<8x8xbf16>, vector<8x32xbf16>, vector<8x32xf32> -> vector<8x32xf32>
    %223 = arith.addf %217, %222 : vector<8x32xf32>
    %224 = vector.shape_cast %155 : vector<32xf32> to vector<1x32xf32>
    %225 = vector.broadcast %224 : vector<1x32xf32> to vector<8x32xf32>
    %226 = arith.addf %223, %225 : vector<8x32xf32>
    %c0_61 = arith.constant 0 : index
    %c0_62 = arith.constant 0 : index
    %c0_63 = arith.constant 0 : index
    %227 = vector.load %arg15[%c0_61, %c0_62, %c0_63] : memref<2x2x32xf32, #tpu.memory_space<vmem>>, vector<1x2x32xf32>
    %228 = vector.shape_cast %227 : vector<1x2x32xf32> to vector<2x32xf32>
    %229 = arith.addf %131, %226 : vector<8x32xf32>
    %230 = vector.extract_strided_slice %228 {offsets = [0, 0], sizes = [1, 32], strides = [1, 1]} : vector<2x32xf32> to vector<1x32xf32>
    %231 = vector.shape_cast %230 : vector<1x32xf32> to vector<32xf32>
    %232 = vector.extract_strided_slice %228 {offsets = [1, 0], sizes = [1, 32], strides = [1, 1]} : vector<2x32xf32> to vector<1x32xf32>
    %233 = vector.shape_cast %232 : vector<1x32xf32> to vector<32xf32>
    %cst_64 = arith.constant dense<0.000000e+00> : vector<8xf32>
    %234 = vector.multi_reduction <add>, %229, %cst_64 [1] : vector<8x32xf32> to vector<8xf32>
    %235 = vector.shape_cast %234 : vector<8xf32> to vector<8x1xf32>
    %cst_65 = arith.constant 3.200000e+01 : f32
    %236 = vector.broadcast %cst_65 : f32 to vector<8x1xf32>
    %237 = arith.divf %235, %236 : vector<8x1xf32>
    %238 = vector.broadcast %237 : vector<8x1xf32> to vector<8x32xf32>
    %239 = arith.subf %229, %238 : vector<8x32xf32>
    %240 = arith.mulf %239, %239 : vector<8x32xf32>
    %cst_66 = arith.constant dense<0.000000e+00> : vector<8xf32>
    %241 = vector.multi_reduction <add>, %240, %cst_66 [1] : vector<8x32xf32> to vector<8xf32>
    %242 = vector.shape_cast %241 : vector<8xf32> to vector<8x1xf32>
    %cst_67 = arith.constant 3.200000e+01 : f32
    %243 = vector.broadcast %cst_67 : f32 to vector<8x1xf32>
    %244 = arith.divf %242, %243 : vector<8x1xf32>
    %245 = vector.broadcast %237 : vector<8x1xf32> to vector<8x32xf32>
    %246 = arith.subf %229, %245 : vector<8x32xf32>
    %cst_68 = arith.constant 9.99999974E-6 : f32
    %247 = vector.broadcast %cst_68 : f32 to vector<8x1xf32>
    %248 = arith.addf %244, %247 : vector<8x1xf32>
    %249 = math.rsqrt %248 : vector<8x1xf32>
    %250 = vector.broadcast %249 : vector<8x1xf32> to vector<8x32xf32>
    %251 = arith.mulf %246, %250 : vector<8x32xf32>
    %252 = vector.shape_cast %231 : vector<32xf32> to vector<1x32xf32>
    %253 = vector.broadcast %252 : vector<1x32xf32> to vector<8x32xf32>
    %254 = arith.mulf %251, %253 : vector<8x32xf32>
    %255 = vector.shape_cast %233 : vector<32xf32> to vector<1x32xf32>
    %256 = vector.broadcast %255 : vector<1x32xf32> to vector<8x32xf32>
    %257 = arith.addf %254, %256 : vector<8x32xf32>
    %c0_69 = arith.constant 0 : index
    %c0_70 = arith.constant 0 : index
    %c0_71 = arith.constant 0 : index
    %258 = vector.load %arg16[%c0_69, %c0_70, %c0_71] : memref<2x32x64xbf16, #tpu.memory_space<vmem>>, vector<1x32x64xbf16>
    %259 = vector.shape_cast %258 : vector<1x32x64xbf16> to vector<32x64xbf16>
    %260 = arith.truncf %257 : vector<8x32xf32> to vector<8x32xbf16>
    %cst_72 = arith.constant dense<0.000000e+00> : vector<8x64xf32>
    %261 = tpu.matmul %260, %259, %cst_72 {dimension_numbers = #tpu.dot_dimension_numbers<[1], [0], [0], [1], [0, 0, 1, 1], [], []>} : vector<8x32xbf16>, vector<32x64xbf16>, vector<8x64xf32> -> vector<8x64xf32>
    %c0_73 = arith.constant 0 : index
    %c0_74 = arith.constant 0 : index
    %262 = vector.load %arg17[%c0_73, %c0_74] : memref<2x64xf32, #tpu.memory_space<vmem>>, vector<1x64xf32>
    %263 = vector.shape_cast %262 : vector<1x64xf32> to vector<64xf32>
    %264 = vector.shape_cast %263 : vector<64xf32> to vector<1x64xf32>
    %265 = vector.broadcast %264 : vector<1x64xf32> to vector<8x64xf32>
    %266 = arith.addf %261, %265 : vector<8x64xf32>
    %cst_75 = arith.constant 5.000000e-01 : f32
    %267 = vector.broadcast %cst_75 : f32 to vector<8x64xf32>
    %268 = arith.mulf %267, %266 : vector<8x64xf32>
    %cst_76 = arith.constant 4.471500e-02 : f32
    %269 = vector.broadcast %cst_76 : f32 to vector<8x64xf32>
    %270 = arith.mulf %269, %266 : vector<8x64xf32>
    %271 = arith.mulf %270, %266 : vector<8x64xf32>
    %272 = arith.mulf %271, %266 : vector<8x64xf32>
    %273 = arith.addf %266, %272 : vector<8x64xf32>
    %cst_77 = arith.constant 0.797884583 : f32
    %274 = vector.broadcast %cst_77 : f32 to vector<8x64xf32>
    %275 = arith.mulf %274, %273 : vector<8x64xf32>
    %276 = math.tanh %275 : vector<8x64xf32>
    %cst_78 = arith.constant 1.000000e+00 : f32
    %277 = vector.broadcast %cst_78 : f32 to vector<8x64xf32>
    %278 = arith.addf %277, %276 : vector<8x64xf32>
    %279 = arith.mulf %268, %278 : vector<8x64xf32>
    %c0_79 = arith.constant 0 : index
    %c0_80 = arith.constant 0 : index
    %c0_81 = arith.constant 0 : index
    %280 = vector.load %arg18[%c0_79, %c0_80, %c0_81] : memref<2x64x32xbf16, #tpu.memory_space<vmem>>, vector<1x64x32xbf16>
    %281 = vector.shape_cast %280 : vector<1x64x32xbf16> to vector<64x32xbf16>
    %282 = arith.truncf %279 : vector<8x64xf32> to vector<8x64xbf16>
    %cst_82 = arith.constant dense<0.000000e+00> : vector<8x32xf32>
    %283 = tpu.matmul %282, %281, %cst_82 {dimension_numbers = #tpu.dot_dimension_numbers<[1], [0], [0], [1], [0, 0, 1, 1], [], []>} : vector<8x64xbf16>, vector<64x32xbf16>, vector<8x32xf32> -> vector<8x32xf32>
    %c0_83 = arith.constant 0 : index
    %c0_84 = arith.constant 0 : index
    %284 = vector.load %arg19[%c0_83, %c0_84] : memref<2x32xf32, #tpu.memory_space<vmem>>, vector<1x32xf32>
    %285 = vector.shape_cast %284 : vector<1x32xf32> to vector<32xf32>
    %286 = vector.shape_cast %285 : vector<32xf32> to vector<1x32xf32>
    %287 = vector.broadcast %286 : vector<1x32xf32> to vector<8x32xf32>
    %288 = arith.addf %283, %287 : vector<8x32xf32>
    %c0_85 = arith.constant 0 : index
    %c0_86 = arith.constant 0 : index
    %c0_87 = arith.constant 0 : index
    %289 = vector.load %arg20[%c0_85, %c0_86, %c0_87] : memref<2x2x32xf32, #tpu.memory_space<vmem>>, vector<1x2x32xf32>
    %290 = vector.shape_cast %289 : vector<1x2x32xf32> to vector<2x32xf32>
    %291 = arith.addf %257, %288 : vector<8x32xf32>
    %292 = vector.extract_strided_slice %290 {offsets = [0, 0], sizes = [1, 32], strides = [1, 1]} : vector<2x32xf32> to vector<1x32xf32>
    %293 = vector.shape_cast %292 : vector<1x32xf32> to vector<32xf32>
    %294 = vector.extract_strided_slice %290 {offsets = [1, 0], sizes = [1, 32], strides = [1, 1]} : vector<2x32xf32> to vector<1x32xf32>
    %295 = vector.shape_cast %294 : vector<1x32xf32> to vector<32xf32>
    %cst_88 = arith.constant dense<0.000000e+00> : vector<8xf32>
    %296 = vector.multi_reduction <add>, %291, %cst_88 [1] : vector<8x32xf32> to vector<8xf32>
    %297 = vector.shape_cast %296 : vector<8xf32> to vector<8x1xf32>
    %cst_89 = arith.constant 3.200000e+01 : f32
    %298 = vector.broadcast %cst_89 : f32 to vector<8x1xf32>
    %299 = arith.divf %297, %298 : vector<8x1xf32>
    %300 = vector.broadcast %299 : vector<8x1xf32> to vector<8x32xf32>
    %301 = arith.subf %291, %300 : vector<8x32xf32>
    %302 = arith.mulf %301, %301 : vector<8x32xf32>
    %cst_90 = arith.constant dense<0.000000e+00> : vector<8xf32>
    %303 = vector.multi_reduction <add>, %302, %cst_90 [1] : vector<8x32xf32> to vector<8xf32>
    %304 = vector.shape_cast %303 : vector<8xf32> to vector<8x1xf32>
    %cst_91 = arith.constant 3.200000e+01 : f32
    %305 = vector.broadcast %cst_91 : f32 to vector<8x1xf32>
    %306 = arith.divf %304, %305 : vector<8x1xf32>
    %307 = vector.broadcast %299 : vector<8x1xf32> to vector<8x32xf32>
    %308 = arith.subf %291, %307 : vector<8x32xf32>
    %cst_92 = arith.constant 9.99999974E-6 : f32
    %309 = vector.broadcast %cst_92 : f32 to vector<8x1xf32>
    %310 = arith.addf %306, %309 : vector<8x1xf32>
    %311 = math.rsqrt %310 : vector<8x1xf32>
    %312 = vector.broadcast %311 : vector<8x1xf32> to vector<8x32xf32>
    %313 = arith.mulf %308, %312 : vector<8x32xf32>
    %314 = vector.shape_cast %293 : vector<32xf32> to vector<1x32xf32>
    %315 = vector.broadcast %314 : vector<1x32xf32> to vector<8x32xf32>
    %316 = arith.mulf %313, %315 : vector<8x32xf32>
    %317 = vector.shape_cast %295 : vector<32xf32> to vector<1x32xf32>
    %318 = vector.broadcast %317 : vector<1x32xf32> to vector<8x32xf32>
    %319 = arith.addf %316, %318 : vector<8x32xf32>
    %320 = arith.index_cast %arg0 : i32 to index
    %c0_93 = arith.constant 0 : index
    %321 = memref.load %arg3[%320, %c0_93] : memref<2x2xf32, #tpu.memory_space<smem>>
    %322 = vector.broadcast %321 : f32 to vector<8x32xf32>
    %323 = arith.mulf %319, %322 : vector<8x32xf32>
    %324 = arith.addf %10, %323 : vector<8x32xf32>
    %c1 = arith.constant 1 : index
    %c0_94 = arith.constant 0 : index
    %c0_95 = arith.constant 0 : index
    %325 = vector.load %arg4[%c1, %c0_94, %c0_95] : memref<2x32x96xbf16, #tpu.memory_space<vmem>>, vector<1x32x96xbf16>
    %326 = vector.shape_cast %325 : vector<1x32x96xbf16> to vector<32x96xbf16>
    %327 = arith.truncf %1 : vector<8x32xf32> to vector<8x32xbf16>
    %cst_96 = arith.constant dense<0.000000e+00> : vector<8x96xf32>
    %328 = tpu.matmul %327, %326, %cst_96 {dimension_numbers = #tpu.dot_dimension_numbers<[1], [0], [0], [1], [0, 0, 1, 1], [], []>} : vector<8x32xbf16>, vector<32x96xbf16>, vector<8x96xf32> -> vector<8x96xf32>
    %c1_97 = arith.constant 1 : index
    %c0_98 = arith.constant 0 : index
    %329 = vector.load %arg5[%c1_97, %c0_98] : memref<2x96xf32, #tpu.memory_space<vmem>>, vector<1x96xf32>
    %330 = vector.shape_cast %329 : vector<1x96xf32> to vector<96xf32>
    %331 = vector.shape_cast %330 : vector<96xf32> to vector<1x96xf32>
    %332 = vector.broadcast %331 : vector<1x96xf32> to vector<8x96xf32>
    %333 = arith.addf %328, %332 : vector<8x96xf32>
    %334 = vector.extract_strided_slice %333 {offsets = [0, 0], sizes = [8, 32], strides = [1, 1]} : vector<8x96xf32> to vector<8x32xf32>
    %335 = vector.extract_strided_slice %333 {offsets = [0, 32], sizes = [8, 32], strides = [1, 1]} : vector<8x96xf32> to vector<8x32xf32>
    %336 = vector.extract_strided_slice %333 {offsets = [0, 64], sizes = [8, 32], strides = [1, 1]} : vector<8x96xf32> to vector<8x32xf32>
    %c1_99 = arith.constant 1 : index
    %c0_100 = arith.constant 0 : index
    %c0_101 = arith.constant 0 : index
    %337 = vector.load %arg6[%c1_99, %c0_100, %c0_101] : memref<2x32x32xbf16, #tpu.memory_space<vmem>>, vector<1x32x32xbf16>
    %338 = vector.shape_cast %337 : vector<1x32x32xbf16> to vector<32x32xbf16>
    %c1_102 = arith.constant 1 : index
    %c0_103 = arith.constant 0 : index
    %339 = vector.load %arg7[%c1_102, %c0_103] : memref<2x32xf32, #tpu.memory_space<vmem>>, vector<1x32xf32>
    %340 = vector.shape_cast %339 : vector<1x32xf32> to vector<32xf32>
    %341 = vector.extract_strided_slice %334 {offsets = [0, 0], sizes = [8, 8], strides = [1, 1]} : vector<8x32xf32> to vector<8x8xf32>
    %342 = vector.extract_strided_slice %334 {offsets = [0, 8], sizes = [8, 8], strides = [1, 1]} : vector<8x32xf32> to vector<8x8xf32>
    %343 = vector.extract_strided_slice %334 {offsets = [0, 16], sizes = [8, 8], strides = [1, 1]} : vector<8x32xf32> to vector<8x8xf32>
    %344 = vector.extract_strided_slice %334 {offsets = [0, 24], sizes = [8, 8], strides = [1, 1]} : vector<8x32xf32> to vector<8x8xf32>
    %345 = vector.shape_cast %341 : vector<8x8xf32> to vector<1x8x8xf32>
    %346 = vector.shape_cast %342 : vector<8x8xf32> to vector<1x8x8xf32>
    %347 = vector.shape_cast %343 : vector<8x8xf32> to vector<1x8x8xf32>
    %348 = vector.shape_cast %344 : vector<8x8xf32> to vector<1x8x8xf32>
    %349 = tpu.concatenate %345, %346, %347, %348 in 0 : vector<1x8x8xf32>, vector<1x8x8xf32>, vector<1x8x8xf32>, vector<1x8x8xf32> -> vector<4x8x8xf32>
    %350 = vector.extract_strided_slice %335 {offsets = [0, 0], sizes = [8, 8], strides = [1, 1]} : vector<8x32xf32> to vector<8x8xf32>
    %351 = vector.extract_strided_slice %335 {offsets = [0, 8], sizes = [8, 8], strides = [1, 1]} : vector<8x32xf32> to vector<8x8xf32>
    %352 = vector.extract_strided_slice %335 {offsets = [0, 16], sizes = [8, 8], strides = [1, 1]} : vector<8x32xf32> to vector<8x8xf32>
    %353 = vector.extract_strided_slice %335 {offsets = [0, 24], sizes = [8, 8], strides = [1, 1]} : vector<8x32xf32> to vector<8x8xf32>
    %354 = vector.shape_cast %350 : vector<8x8xf32> to vector<1x8x8xf32>
    %355 = vector.shape_cast %351 : vector<8x8xf32> to vector<1x8x8xf32>
    %356 = vector.shape_cast %352 : vector<8x8xf32> to vector<1x8x8xf32>
    %357 = vector.shape_cast %353 : vector<8x8xf32> to vector<1x8x8xf32>
    %358 = tpu.concatenate %354, %355, %356, %357 in 0 : vector<1x8x8xf32>, vector<1x8x8xf32>, vector<1x8x8xf32>, vector<1x8x8xf32> -> vector<4x8x8xf32>
    %359 = vector.extract_strided_slice %336 {offsets = [0, 0], sizes = [8, 8], strides = [1, 1]} : vector<8x32xf32> to vector<8x8xf32>
    %360 = vector.extract_strided_slice %336 {offsets = [0, 8], sizes = [8, 8], strides = [1, 1]} : vector<8x32xf32> to vector<8x8xf32>
    %361 = vector.extract_strided_slice %336 {offsets = [0, 16], sizes = [8, 8], strides = [1, 1]} : vector<8x32xf32> to vector<8x8xf32>
    %362 = vector.extract_strided_slice %336 {offsets = [0, 24], sizes = [8, 8], strides = [1, 1]} : vector<8x32xf32> to vector<8x8xf32>
    %363 = vector.shape_cast %359 : vector<8x8xf32> to vector<1x8x8xf32>
    %364 = vector.shape_cast %360 : vector<8x8xf32> to vector<1x8x8xf32>
    %365 = vector.shape_cast %361 : vector<8x8xf32> to vector<1x8x8xf32>
    %366 = vector.shape_cast %362 : vector<8x8xf32> to vector<1x8x8xf32>
    %367 = tpu.concatenate %363, %364, %365, %366 in 0 : vector<1x8x8xf32>, vector<1x8x8xf32>, vector<1x8x8xf32>, vector<1x8x8xf32> -> vector<4x8x8xf32>
    %368 = arith.truncf %349 : vector<4x8x8xf32> to vector<4x8x8xbf16>
    %369 = arith.truncf %358 : vector<4x8x8xf32> to vector<4x8x8xbf16>
    "tpu.trace_start"() <{level = 10 : i32, message = "hqd,hkd->hqk"}> : () -> ()
    %cst_104 = arith.constant dense<0.000000e+00> : vector<4x8x8xf32>
    %370 = tpu.matmul %368, %369, %cst_104 {dimension_numbers = #tpu.dot_dimension_numbers<[2], [2], [1], [1], [0, 0, 0, 1, 1, 1], [0], [0]>} : vector<4x8x8xbf16>, vector<4x8x8xbf16>, vector<4x8x8xf32> -> vector<4x8x8xf32>
    "tpu.trace_stop"() : () -> ()
    %371 = vector.shape_cast %9 : vector<8x8xf32> to vector<1x8x8xf32>
    %372 = vector.broadcast %371 : vector<1x8x8xf32> to vector<4x8x8xf32>
    %373 = arith.addf %370, %372 : vector<4x8x8xf32>
    %cst_105 = arith.constant dense<0xFF800000> : vector<4x8xf32>
    %374 = vector.multi_reduction <maximumf>, %373, %cst_105 [2] : vector<4x8x8xf32> to vector<4x8xf32>
    %375 = vector.shape_cast %374 : vector<4x8xf32> to vector<4x8x1xf32>
    %376 = vector.broadcast %375 : vector<4x8x1xf32> to vector<4x8x8xf32>
    %377 = arith.subf %373, %376 : vector<4x8x8xf32>
    %378 = math.exp %377 : vector<4x8x8xf32>
    %cst_106 = arith.constant dense<0.000000e+00> : vector<4x8xf32>
    %379 = vector.multi_reduction <add>, %378, %cst_106 [2] : vector<4x8x8xf32> to vector<4x8xf32>
    %380 = vector.shape_cast %379 : vector<4x8xf32> to vector<4x8x1xf32>
    %381 = tpu.reciprocal %380 {approx = true} : vector<4x8x1xf32> -> vector<4x8x1xf32>
    %382 = vector.broadcast %381 : vector<4x8x1xf32> to vector<4x8x8xf32>
    %383 = arith.mulf %378, %382 : vector<4x8x8xf32>
    %384 = arith.truncf %383 : vector<4x8x8xf32> to vector<4x8x8xbf16>
    %385 = arith.truncf %367 : vector<4x8x8xf32> to vector<4x8x8xbf16>
    "tpu.trace_start"() <{level = 10 : i32, message = "hqk,hkd->hqd"}> : () -> ()
    %cst_107 = arith.constant dense<0.000000e+00> : vector<4x8x8xf32>
    %386 = tpu.matmul %384, %385, %cst_107 {dimension_numbers = #tpu.dot_dimension_numbers<[2], [1], [1], [2], [0, 0, 0, 1, 1, 2], [0], [0]>} : vector<4x8x8xbf16>, vector<4x8x8xbf16>, vector<4x8x8xf32> -> vector<4x8x8xf32>
    %cst_108 = arith.constant 0.000000e+00 : f32
    "tpu.trace_stop"() : () -> ()
    %387 = vector.broadcast %cst_108 : f32 to vector<8x32xf32>
    %388 = vector.extract_strided_slice %386 {offsets = [0, 0, 0], sizes = [1, 8, 8], strides = [1, 1, 1]} : vector<4x8x8xf32> to vector<1x8x8xf32>
    %389 = vector.shape_cast %388 : vector<1x8x8xf32> to vector<8x8xf32>
    %390 = vector.extract_strided_slice %338 {offsets = [0, 0], sizes = [8, 32], strides = [1, 1]} : vector<32x32xbf16> to vector<8x32xbf16>
    %391 = arith.truncf %389 : vector<8x8xf32> to vector<8x8xbf16>
    %cst_109 = arith.constant dense<0.000000e+00> : vector<8x32xf32>
    %392 = tpu.matmul %391, %390, %cst_109 {dimension_numbers = #tpu.dot_dimension_numbers<[1], [0], [0], [1], [0, 0, 1, 1], [], []>} : vector<8x8xbf16>, vector<8x32xbf16>, vector<8x32xf32> -> vector<8x32xf32>
    %393 = arith.addf %387, %392 : vector<8x32xf32>
    %394 = vector.extract_strided_slice %386 {offsets = [1, 0, 0], sizes = [1, 8, 8], strides = [1, 1, 1]} : vector<4x8x8xf32> to vector<1x8x8xf32>
    %395 = vector.shape_cast %394 : vector<1x8x8xf32> to vector<8x8xf32>
    %396 = vector.extract_strided_slice %338 {offsets = [8, 0], sizes = [8, 32], strides = [1, 1]} : vector<32x32xbf16> to vector<8x32xbf16>
    %397 = arith.truncf %395 : vector<8x8xf32> to vector<8x8xbf16>
    %cst_110 = arith.constant dense<0.000000e+00> : vector<8x32xf32>
    %398 = tpu.matmul %397, %396, %cst_110 {dimension_numbers = #tpu.dot_dimension_numbers<[1], [0], [0], [1], [0, 0, 1, 1], [], []>} : vector<8x8xbf16>, vector<8x32xbf16>, vector<8x32xf32> -> vector<8x32xf32>
    %399 = arith.addf %393, %398 : vector<8x32xf32>
    %400 = vector.extract_strided_slice %386 {offsets = [2, 0, 0], sizes = [1, 8, 8], strides = [1, 1, 1]} : vector<4x8x8xf32> to vector<1x8x8xf32>
    %401 = vector.shape_cast %400 : vector<1x8x8xf32> to vector<8x8xf32>
    %402 = vector.extract_strided_slice %338 {offsets = [16, 0], sizes = [8, 32], strides = [1, 1]} : vector<32x32xbf16> to vector<8x32xbf16>
    %403 = arith.truncf %401 : vector<8x8xf32> to vector<8x8xbf16>
    %cst_111 = arith.constant dense<0.000000e+00> : vector<8x32xf32>
    %404 = tpu.matmul %403, %402, %cst_111 {dimension_numbers = #tpu.dot_dimension_numbers<[1], [0], [0], [1], [0, 0, 1, 1], [], []>} : vector<8x8xbf16>, vector<8x32xbf16>, vector<8x32xf32> -> vector<8x32xf32>
    %405 = arith.addf %399, %404 : vector<8x32xf32>
    %406 = vector.extract_strided_slice %386 {offsets = [3, 0, 0], sizes = [1, 8, 8], strides = [1, 1, 1]} : vector<4x8x8xf32> to vector<1x8x8xf32>
    %407 = vector.shape_cast %406 : vector<1x8x8xf32> to vector<8x8xf32>
    %408 = vector.extract_strided_slice %338 {offsets = [24, 0], sizes = [8, 32], strides = [1, 1]} : vector<32x32xbf16> to vector<8x32xbf16>
    %409 = arith.truncf %407 : vector<8x8xf32> to vector<8x8xbf16>
    %cst_112 = arith.constant dense<0.000000e+00> : vector<8x32xf32>
    %410 = tpu.matmul %409, %408, %cst_112 {dimension_numbers = #tpu.dot_dimension_numbers<[1], [0], [0], [1], [0, 0, 1, 1], [], []>} : vector<8x8xbf16>, vector<8x32xbf16>, vector<8x32xf32> -> vector<8x32xf32>
    %411 = arith.addf %405, %410 : vector<8x32xf32>
    %412 = vector.shape_cast %340 : vector<32xf32> to vector<1x32xf32>
    %413 = vector.broadcast %412 : vector<1x32xf32> to vector<8x32xf32>
    %414 = arith.addf %411, %413 : vector<8x32xf32>
    %c1_113 = arith.constant 1 : index
    %c0_114 = arith.constant 0 : index
    %c0_115 = arith.constant 0 : index
    %415 = vector.load %arg8[%c1_113, %c0_114, %c0_115] : memref<2x2x32xf32, #tpu.memory_space<vmem>>, vector<1x2x32xf32>
    %416 = vector.shape_cast %415 : vector<1x2x32xf32> to vector<2x32xf32>
    %417 = arith.addf %1, %414 : vector<8x32xf32>
    %418 = vector.extract_strided_slice %416 {offsets = [0, 0], sizes = [1, 32], strides = [1, 1]} : vector<2x32xf32> to vector<1x32xf32>
    %419 = vector.shape_cast %418 : vector<1x32xf32> to vector<32xf32>
    %420 = vector.extract_strided_slice %416 {offsets = [1, 0], sizes = [1, 32], strides = [1, 1]} : vector<2x32xf32> to vector<1x32xf32>
    %421 = vector.shape_cast %420 : vector<1x32xf32> to vector<32xf32>
    %cst_116 = arith.constant dense<0.000000e+00> : vector<8xf32>
    %422 = vector.multi_reduction <add>, %417, %cst_116 [1] : vector<8x32xf32> to vector<8xf32>
    %423 = vector.shape_cast %422 : vector<8xf32> to vector<8x1xf32>
    %cst_117 = arith.constant 3.200000e+01 : f32
    %424 = vector.broadcast %cst_117 : f32 to vector<8x1xf32>
    %425 = arith.divf %423, %424 : vector<8x1xf32>
    %426 = vector.broadcast %425 : vector<8x1xf32> to vector<8x32xf32>
    %427 = arith.subf %417, %426 : vector<8x32xf32>
    %428 = arith.mulf %427, %427 : vector<8x32xf32>
    %cst_118 = arith.constant dense<0.000000e+00> : vector<8xf32>
    %429 = vector.multi_reduction <add>, %428, %cst_118 [1] : vector<8x32xf32> to vector<8xf32>
    %430 = vector.shape_cast %429 : vector<8xf32> to vector<8x1xf32>
    %cst_119 = arith.constant 3.200000e+01 : f32
    %431 = vector.broadcast %cst_119 : f32 to vector<8x1xf32>
    %432 = arith.divf %430, %431 : vector<8x1xf32>
    %433 = vector.broadcast %425 : vector<8x1xf32> to vector<8x32xf32>
    %434 = arith.subf %417, %433 : vector<8x32xf32>
    %cst_120 = arith.constant 9.99999974E-6 : f32
    %435 = vector.broadcast %cst_120 : f32 to vector<8x1xf32>
    %436 = arith.addf %432, %435 : vector<8x1xf32>
    %437 = math.rsqrt %436 : vector<8x1xf32>
    %438 = vector.broadcast %437 : vector<8x1xf32> to vector<8x32xf32>
    %439 = arith.mulf %434, %438 : vector<8x32xf32>
    %440 = vector.shape_cast %419 : vector<32xf32> to vector<1x32xf32>
    %441 = vector.broadcast %440 : vector<1x32xf32> to vector<8x32xf32>
    %442 = arith.mulf %439, %441 : vector<8x32xf32>
    %443 = vector.shape_cast %421 : vector<32xf32> to vector<1x32xf32>
    %444 = vector.broadcast %443 : vector<1x32xf32> to vector<8x32xf32>
    %445 = arith.addf %442, %444 : vector<8x32xf32>
    %c1_121 = arith.constant 1 : index
    %c0_122 = arith.constant 0 : index
    %c0_123 = arith.constant 0 : index
    %446 = vector.load %arg9[%c1_121, %c0_122, %c0_123] : memref<2x32x32xbf16, #tpu.memory_space<vmem>>, vector<1x32x32xbf16>
    %447 = vector.shape_cast %446 : vector<1x32x32xbf16> to vector<32x32xbf16>
    %448 = arith.truncf %445 : vector<8x32xf32> to vector<8x32xbf16>
    %cst_124 = arith.constant dense<0.000000e+00> : vector<8x32xf32>
    %449 = tpu.matmul %448, %447, %cst_124 {dimension_numbers = #tpu.dot_dimension_numbers<[1], [0], [0], [1], [0, 0, 1, 1], [], []>} : vector<8x32xbf16>, vector<32x32xbf16>, vector<8x32xf32> -> vector<8x32xf32>
    %c1_125 = arith.constant 1 : index
    %c0_126 = arith.constant 0 : index
    %450 = vector.load %arg10[%c1_125, %c0_126] : memref<2x32xf32, #tpu.memory_space<vmem>>, vector<1x32xf32>
    %451 = vector.shape_cast %450 : vector<1x32xf32> to vector<32xf32>
    %452 = vector.shape_cast %451 : vector<32xf32> to vector<1x32xf32>
    %453 = vector.broadcast %452 : vector<1x32xf32> to vector<8x32xf32>
    %454 = arith.addf %449, %453 : vector<8x32xf32>
    %c1_127 = arith.constant 1 : index
    %c0_128 = arith.constant 0 : index
    %c0_129 = arith.constant 0 : index
    %455 = vector.load %arg11[%c1_127, %c0_128, %c0_129] : memref<2x32x64xbf16, #tpu.memory_space<vmem>>, vector<1x32x64xbf16>
    %456 = vector.shape_cast %455 : vector<1x32x64xbf16> to vector<32x64xbf16>
    %457 = arith.truncf %3 : vector<8x32xf32> to vector<8x32xbf16>
    %cst_130 = arith.constant dense<0.000000e+00> : vector<8x64xf32>
    %458 = tpu.matmul %457, %456, %cst_130 {dimension_numbers = #tpu.dot_dimension_numbers<[1], [0], [0], [1], [0, 0, 1, 1], [], []>} : vector<8x32xbf16>, vector<32x64xbf16>, vector<8x64xf32> -> vector<8x64xf32>
    %c1_131 = arith.constant 1 : index
    %c0_132 = arith.constant 0 : index
    %459 = vector.load %arg12[%c1_131, %c0_132] : memref<2x64xf32, #tpu.memory_space<vmem>>, vector<1x64xf32>
    %460 = vector.shape_cast %459 : vector<1x64xf32> to vector<64xf32>
    %461 = vector.shape_cast %460 : vector<64xf32> to vector<1x64xf32>
    %462 = vector.broadcast %461 : vector<1x64xf32> to vector<8x64xf32>
    %463 = arith.addf %458, %462 : vector<8x64xf32>
    %464 = vector.extract_strided_slice %463 {offsets = [0, 0], sizes = [8, 32], strides = [1, 1]} : vector<8x64xf32> to vector<8x32xf32>
    %465 = vector.extract_strided_slice %463 {offsets = [0, 32], sizes = [8, 32], strides = [1, 1]} : vector<8x64xf32> to vector<8x32xf32>
    %c1_133 = arith.constant 1 : index
    %c0_134 = arith.constant 0 : index
    %c0_135 = arith.constant 0 : index
    %466 = vector.load %arg13[%c1_133, %c0_134, %c0_135] : memref<2x32x32xbf16, #tpu.memory_space<vmem>>, vector<1x32x32xbf16>
    %467 = vector.shape_cast %466 : vector<1x32x32xbf16> to vector<32x32xbf16>
    %c1_136 = arith.constant 1 : index
    %c0_137 = arith.constant 0 : index
    %468 = vector.load %arg14[%c1_136, %c0_137] : memref<2x32xf32, #tpu.memory_space<vmem>>, vector<1x32xf32>
    %469 = vector.shape_cast %468 : vector<1x32xf32> to vector<32xf32>
    %470 = vector.extract_strided_slice %454 {offsets = [0, 0], sizes = [8, 8], strides = [1, 1]} : vector<8x32xf32> to vector<8x8xf32>
    %471 = vector.extract_strided_slice %454 {offsets = [0, 8], sizes = [8, 8], strides = [1, 1]} : vector<8x32xf32> to vector<8x8xf32>
    %472 = vector.extract_strided_slice %454 {offsets = [0, 16], sizes = [8, 8], strides = [1, 1]} : vector<8x32xf32> to vector<8x8xf32>
    %473 = vector.extract_strided_slice %454 {offsets = [0, 24], sizes = [8, 8], strides = [1, 1]} : vector<8x32xf32> to vector<8x8xf32>
    %474 = vector.shape_cast %470 : vector<8x8xf32> to vector<1x8x8xf32>
    %475 = vector.shape_cast %471 : vector<8x8xf32> to vector<1x8x8xf32>
    %476 = vector.shape_cast %472 : vector<8x8xf32> to vector<1x8x8xf32>
    %477 = vector.shape_cast %473 : vector<8x8xf32> to vector<1x8x8xf32>
    %478 = tpu.concatenate %474, %475, %476, %477 in 0 : vector<1x8x8xf32>, vector<1x8x8xf32>, vector<1x8x8xf32>, vector<1x8x8xf32> -> vector<4x8x8xf32>
    %479 = vector.extract_strided_slice %464 {offsets = [0, 0], sizes = [8, 8], strides = [1, 1]} : vector<8x32xf32> to vector<8x8xf32>
    %480 = vector.extract_strided_slice %464 {offsets = [0, 8], sizes = [8, 8], strides = [1, 1]} : vector<8x32xf32> to vector<8x8xf32>
    %481 = vector.extract_strided_slice %464 {offsets = [0, 16], sizes = [8, 8], strides = [1, 1]} : vector<8x32xf32> to vector<8x8xf32>
    %482 = vector.extract_strided_slice %464 {offsets = [0, 24], sizes = [8, 8], strides = [1, 1]} : vector<8x32xf32> to vector<8x8xf32>
    %483 = vector.shape_cast %479 : vector<8x8xf32> to vector<1x8x8xf32>
    %484 = vector.shape_cast %480 : vector<8x8xf32> to vector<1x8x8xf32>
    %485 = vector.shape_cast %481 : vector<8x8xf32> to vector<1x8x8xf32>
    %486 = vector.shape_cast %482 : vector<8x8xf32> to vector<1x8x8xf32>
    %487 = tpu.concatenate %483, %484, %485, %486 in 0 : vector<1x8x8xf32>, vector<1x8x8xf32>, vector<1x8x8xf32>, vector<1x8x8xf32> -> vector<4x8x8xf32>
    %488 = vector.extract_strided_slice %465 {offsets = [0, 0], sizes = [8, 8], strides = [1, 1]} : vector<8x32xf32> to vector<8x8xf32>
    %489 = vector.extract_strided_slice %465 {offsets = [0, 8], sizes = [8, 8], strides = [1, 1]} : vector<8x32xf32> to vector<8x8xf32>
    %490 = vector.extract_strided_slice %465 {offsets = [0, 16], sizes = [8, 8], strides = [1, 1]} : vector<8x32xf32> to vector<8x8xf32>
    %491 = vector.extract_strided_slice %465 {offsets = [0, 24], sizes = [8, 8], strides = [1, 1]} : vector<8x32xf32> to vector<8x8xf32>
    %492 = vector.shape_cast %488 : vector<8x8xf32> to vector<1x8x8xf32>
    %493 = vector.shape_cast %489 : vector<8x8xf32> to vector<1x8x8xf32>
    %494 = vector.shape_cast %490 : vector<8x8xf32> to vector<1x8x8xf32>
    %495 = vector.shape_cast %491 : vector<8x8xf32> to vector<1x8x8xf32>
    %496 = tpu.concatenate %492, %493, %494, %495 in 0 : vector<1x8x8xf32>, vector<1x8x8xf32>, vector<1x8x8xf32>, vector<1x8x8xf32> -> vector<4x8x8xf32>
    %497 = arith.truncf %478 : vector<4x8x8xf32> to vector<4x8x8xbf16>
    %498 = arith.truncf %487 : vector<4x8x8xf32> to vector<4x8x8xbf16>
    "tpu.trace_start"() <{level = 10 : i32, message = "hqd,hkd->hqk"}> : () -> ()
    %cst_138 = arith.constant dense<0.000000e+00> : vector<4x8x8xf32>
    %499 = tpu.matmul %497, %498, %cst_138 {dimension_numbers = #tpu.dot_dimension_numbers<[2], [2], [1], [1], [0, 0, 0, 1, 1, 1], [0], [0]>} : vector<4x8x8xbf16>, vector<4x8x8xbf16>, vector<4x8x8xf32> -> vector<4x8x8xf32>
    "tpu.trace_stop"() : () -> ()
    %cst_139 = arith.constant dense<0xFF800000> : vector<4x8xf32>
    %500 = vector.multi_reduction <maximumf>, %499, %cst_139 [2] : vector<4x8x8xf32> to vector<4x8xf32>
    %501 = vector.shape_cast %500 : vector<4x8xf32> to vector<4x8x1xf32>
    %502 = vector.broadcast %501 : vector<4x8x1xf32> to vector<4x8x8xf32>
    %503 = arith.subf %499, %502 : vector<4x8x8xf32>
    %504 = math.exp %503 : vector<4x8x8xf32>
    %cst_140 = arith.constant dense<0.000000e+00> : vector<4x8xf32>
    %505 = vector.multi_reduction <add>, %504, %cst_140 [2] : vector<4x8x8xf32> to vector<4x8xf32>
    %506 = vector.shape_cast %505 : vector<4x8xf32> to vector<4x8x1xf32>
    %507 = tpu.reciprocal %506 {approx = true} : vector<4x8x1xf32> -> vector<4x8x1xf32>
    %508 = vector.broadcast %507 : vector<4x8x1xf32> to vector<4x8x8xf32>
    %509 = arith.mulf %504, %508 : vector<4x8x8xf32>
    %510 = arith.truncf %509 : vector<4x8x8xf32> to vector<4x8x8xbf16>
    %511 = arith.truncf %496 : vector<4x8x8xf32> to vector<4x8x8xbf16>
    "tpu.trace_start"() <{level = 10 : i32, message = "hqk,hkd->hqd"}> : () -> ()
    %cst_141 = arith.constant dense<0.000000e+00> : vector<4x8x8xf32>
    %512 = tpu.matmul %510, %511, %cst_141 {dimension_numbers = #tpu.dot_dimension_numbers<[2], [1], [1], [2], [0, 0, 0, 1, 1, 2], [0], [0]>} : vector<4x8x8xbf16>, vector<4x8x8xbf16>, vector<4x8x8xf32> -> vector<4x8x8xf32>
    %cst_142 = arith.constant 0.000000e+00 : f32
    "tpu.trace_stop"() : () -> ()
    %513 = vector.broadcast %cst_142 : f32 to vector<8x32xf32>
    %514 = vector.extract_strided_slice %512 {offsets = [0, 0, 0], sizes = [1, 8, 8], strides = [1, 1, 1]} : vector<4x8x8xf32> to vector<1x8x8xf32>
    %515 = vector.shape_cast %514 : vector<1x8x8xf32> to vector<8x8xf32>
    %516 = vector.extract_strided_slice %467 {offsets = [0, 0], sizes = [8, 32], strides = [1, 1]} : vector<32x32xbf16> to vector<8x32xbf16>
    %517 = arith.truncf %515 : vector<8x8xf32> to vector<8x8xbf16>
    %cst_143 = arith.constant dense<0.000000e+00> : vector<8x32xf32>
    %518 = tpu.matmul %517, %516, %cst_143 {dimension_numbers = #tpu.dot_dimension_numbers<[1], [0], [0], [1], [0, 0, 1, 1], [], []>} : vector<8x8xbf16>, vector<8x32xbf16>, vector<8x32xf32> -> vector<8x32xf32>
    %519 = arith.addf %513, %518 : vector<8x32xf32>
    %520 = vector.extract_strided_slice %512 {offsets = [1, 0, 0], sizes = [1, 8, 8], strides = [1, 1, 1]} : vector<4x8x8xf32> to vector<1x8x8xf32>
    %521 = vector.shape_cast %520 : vector<1x8x8xf32> to vector<8x8xf32>
    %522 = vector.extract_strided_slice %467 {offsets = [8, 0], sizes = [8, 32], strides = [1, 1]} : vector<32x32xbf16> to vector<8x32xbf16>
    %523 = arith.truncf %521 : vector<8x8xf32> to vector<8x8xbf16>
    %cst_144 = arith.constant dense<0.000000e+00> : vector<8x32xf32>
    %524 = tpu.matmul %523, %522, %cst_144 {dimension_numbers = #tpu.dot_dimension_numbers<[1], [0], [0], [1], [0, 0, 1, 1], [], []>} : vector<8x8xbf16>, vector<8x32xbf16>, vector<8x32xf32> -> vector<8x32xf32>
    %525 = arith.addf %519, %524 : vector<8x32xf32>
    %526 = vector.extract_strided_slice %512 {offsets = [2, 0, 0], sizes = [1, 8, 8], strides = [1, 1, 1]} : vector<4x8x8xf32> to vector<1x8x8xf32>
    %527 = vector.shape_cast %526 : vector<1x8x8xf32> to vector<8x8xf32>
    %528 = vector.extract_strided_slice %467 {offsets = [16, 0], sizes = [8, 32], strides = [1, 1]} : vector<32x32xbf16> to vector<8x32xbf16>
    %529 = arith.truncf %527 : vector<8x8xf32> to vector<8x8xbf16>
    %cst_145 = arith.constant dense<0.000000e+00> : vector<8x32xf32>
    %530 = tpu.matmul %529, %528, %cst_145 {dimension_numbers = #tpu.dot_dimension_numbers<[1], [0], [0], [1], [0, 0, 1, 1], [], []>} : vector<8x8xbf16>, vector<8x32xbf16>, vector<8x32xf32> -> vector<8x32xf32>
    %531 = arith.addf %525, %530 : vector<8x32xf32>
    %532 = vector.extract_strided_slice %512 {offsets = [3, 0, 0], sizes = [1, 8, 8], strides = [1, 1, 1]} : vector<4x8x8xf32> to vector<1x8x8xf32>
    %533 = vector.shape_cast %532 : vector<1x8x8xf32> to vector<8x8xf32>
    %534 = vector.extract_strided_slice %467 {offsets = [24, 0], sizes = [8, 32], strides = [1, 1]} : vector<32x32xbf16> to vector<8x32xbf16>
    %535 = arith.truncf %533 : vector<8x8xf32> to vector<8x8xbf16>
    %cst_146 = arith.constant dense<0.000000e+00> : vector<8x32xf32>
    %536 = tpu.matmul %535, %534, %cst_146 {dimension_numbers = #tpu.dot_dimension_numbers<[1], [0], [0], [1], [0, 0, 1, 1], [], []>} : vector<8x8xbf16>, vector<8x32xbf16>, vector<8x32xf32> -> vector<8x32xf32>
    %537 = arith.addf %531, %536 : vector<8x32xf32>
    %538 = vector.shape_cast %469 : vector<32xf32> to vector<1x32xf32>
    %539 = vector.broadcast %538 : vector<1x32xf32> to vector<8x32xf32>
    %540 = arith.addf %537, %539 : vector<8x32xf32>
    %c1_147 = arith.constant 1 : index
    %c0_148 = arith.constant 0 : index
    %c0_149 = arith.constant 0 : index
    %541 = vector.load %arg15[%c1_147, %c0_148, %c0_149] : memref<2x2x32xf32, #tpu.memory_space<vmem>>, vector<1x2x32xf32>
    %542 = vector.shape_cast %541 : vector<1x2x32xf32> to vector<2x32xf32>
    %543 = arith.addf %445, %540 : vector<8x32xf32>
    %544 = vector.extract_strided_slice %542 {offsets = [0, 0], sizes = [1, 32], strides = [1, 1]} : vector<2x32xf32> to vector<1x32xf32>
    %545 = vector.shape_cast %544 : vector<1x32xf32> to vector<32xf32>
    %546 = vector.extract_strided_slice %542 {offsets = [1, 0], sizes = [1, 32], strides = [1, 1]} : vector<2x32xf32> to vector<1x32xf32>
    %547 = vector.shape_cast %546 : vector<1x32xf32> to vector<32xf32>
    %cst_150 = arith.constant dense<0.000000e+00> : vector<8xf32>
    %548 = vector.multi_reduction <add>, %543, %cst_150 [1] : vector<8x32xf32> to vector<8xf32>
    %549 = vector.shape_cast %548 : vector<8xf32> to vector<8x1xf32>
    %cst_151 = arith.constant 3.200000e+01 : f32
    %550 = vector.broadcast %cst_151 : f32 to vector<8x1xf32>
    %551 = arith.divf %549, %550 : vector<8x1xf32>
    %552 = vector.broadcast %551 : vector<8x1xf32> to vector<8x32xf32>
    %553 = arith.subf %543, %552 : vector<8x32xf32>
    %554 = arith.mulf %553, %553 : vector<8x32xf32>
    %cst_152 = arith.constant dense<0.000000e+00> : vector<8xf32>
    %555 = vector.multi_reduction <add>, %554, %cst_152 [1] : vector<8x32xf32> to vector<8xf32>
    %556 = vector.shape_cast %555 : vector<8xf32> to vector<8x1xf32>
    %cst_153 = arith.constant 3.200000e+01 : f32
    %557 = vector.broadcast %cst_153 : f32 to vector<8x1xf32>
    %558 = arith.divf %556, %557 : vector<8x1xf32>
    %559 = vector.broadcast %551 : vector<8x1xf32> to vector<8x32xf32>
    %560 = arith.subf %543, %559 : vector<8x32xf32>
    %cst_154 = arith.constant 9.99999974E-6 : f32
    %561 = vector.broadcast %cst_154 : f32 to vector<8x1xf32>
    %562 = arith.addf %558, %561 : vector<8x1xf32>
    %563 = math.rsqrt %562 : vector<8x1xf32>
    %564 = vector.broadcast %563 : vector<8x1xf32> to vector<8x32xf32>
    %565 = arith.mulf %560, %564 : vector<8x32xf32>
    %566 = vector.shape_cast %545 : vector<32xf32> to vector<1x32xf32>
    %567 = vector.broadcast %566 : vector<1x32xf32> to vector<8x32xf32>
    %568 = arith.mulf %565, %567 : vector<8x32xf32>
    %569 = vector.shape_cast %547 : vector<32xf32> to vector<1x32xf32>
    %570 = vector.broadcast %569 : vector<1x32xf32> to vector<8x32xf32>
    %571 = arith.addf %568, %570 : vector<8x32xf32>
    %c1_155 = arith.constant 1 : index
    %c0_156 = arith.constant 0 : index
    %c0_157 = arith.constant 0 : index
    %572 = vector.load %arg16[%c1_155, %c0_156, %c0_157] : memref<2x32x64xbf16, #tpu.memory_space<vmem>>, vector<1x32x64xbf16>
    %573 = vector.shape_cast %572 : vector<1x32x64xbf16> to vector<32x64xbf16>
    %574 = arith.truncf %571 : vector<8x32xf32> to vector<8x32xbf16>
    %cst_158 = arith.constant dense<0.000000e+00> : vector<8x64xf32>
    %575 = tpu.matmul %574, %573, %cst_158 {dimension_numbers = #tpu.dot_dimension_numbers<[1], [0], [0], [1], [0, 0, 1, 1], [], []>} : vector<8x32xbf16>, vector<32x64xbf16>, vector<8x64xf32> -> vector<8x64xf32>
    %c1_159 = arith.constant 1 : index
    %c0_160 = arith.constant 0 : index
    %576 = vector.load %arg17[%c1_159, %c0_160] : memref<2x64xf32, #tpu.memory_space<vmem>>, vector<1x64xf32>
    %577 = vector.shape_cast %576 : vector<1x64xf32> to vector<64xf32>
    %578 = vector.shape_cast %577 : vector<64xf32> to vector<1x64xf32>
    %579 = vector.broadcast %578 : vector<1x64xf32> to vector<8x64xf32>
    %580 = arith.addf %575, %579 : vector<8x64xf32>
    %cst_161 = arith.constant 5.000000e-01 : f32
    %581 = vector.broadcast %cst_161 : f32 to vector<8x64xf32>
    %582 = arith.mulf %581, %580 : vector<8x64xf32>
    %cst_162 = arith.constant 4.471500e-02 : f32
    %583 = vector.broadcast %cst_162 : f32 to vector<8x64xf32>
    %584 = arith.mulf %583, %580 : vector<8x64xf32>
    %585 = arith.mulf %584, %580 : vector<8x64xf32>
    %586 = arith.mulf %585, %580 : vector<8x64xf32>
    %587 = arith.addf %580, %586 : vector<8x64xf32>
    %cst_163 = arith.constant 0.797884583 : f32
    %588 = vector.broadcast %cst_163 : f32 to vector<8x64xf32>
    %589 = arith.mulf %588, %587 : vector<8x64xf32>
    %590 = math.tanh %589 : vector<8x64xf32>
    %cst_164 = arith.constant 1.000000e+00 : f32
    %591 = vector.broadcast %cst_164 : f32 to vector<8x64xf32>
    %592 = arith.addf %591, %590 : vector<8x64xf32>
    %593 = arith.mulf %582, %592 : vector<8x64xf32>
    %c1_165 = arith.constant 1 : index
    %c0_166 = arith.constant 0 : index
    %c0_167 = arith.constant 0 : index
    %594 = vector.load %arg18[%c1_165, %c0_166, %c0_167] : memref<2x64x32xbf16, #tpu.memory_space<vmem>>, vector<1x64x32xbf16>
    %595 = vector.shape_cast %594 : vector<1x64x32xbf16> to vector<64x32xbf16>
    %596 = arith.truncf %593 : vector<8x64xf32> to vector<8x64xbf16>
    %cst_168 = arith.constant dense<0.000000e+00> : vector<8x32xf32>
    %597 = tpu.matmul %596, %595, %cst_168 {dimension_numbers = #tpu.dot_dimension_numbers<[1], [0], [0], [1], [0, 0, 1, 1], [], []>} : vector<8x64xbf16>, vector<64x32xbf16>, vector<8x32xf32> -> vector<8x32xf32>
    %c1_169 = arith.constant 1 : index
    %c0_170 = arith.constant 0 : index
    %598 = vector.load %arg19[%c1_169, %c0_170] : memref<2x32xf32, #tpu.memory_space<vmem>>, vector<1x32xf32>
    %599 = vector.shape_cast %598 : vector<1x32xf32> to vector<32xf32>
    %600 = vector.shape_cast %599 : vector<32xf32> to vector<1x32xf32>
    %601 = vector.broadcast %600 : vector<1x32xf32> to vector<8x32xf32>
    %602 = arith.addf %597, %601 : vector<8x32xf32>
    %c1_171 = arith.constant 1 : index
    %c0_172 = arith.constant 0 : index
    %c0_173 = arith.constant 0 : index
    %603 = vector.load %arg20[%c1_171, %c0_172, %c0_173] : memref<2x2x32xf32, #tpu.memory_space<vmem>>, vector<1x2x32xf32>
    %604 = vector.shape_cast %603 : vector<1x2x32xf32> to vector<2x32xf32>
    %605 = arith.addf %571, %602 : vector<8x32xf32>
    %606 = vector.extract_strided_slice %604 {offsets = [0, 0], sizes = [1, 32], strides = [1, 1]} : vector<2x32xf32> to vector<1x32xf32>
    %607 = vector.shape_cast %606 : vector<1x32xf32> to vector<32xf32>
    %608 = vector.extract_strided_slice %604 {offsets = [1, 0], sizes = [1, 32], strides = [1, 1]} : vector<2x32xf32> to vector<1x32xf32>
    %609 = vector.shape_cast %608 : vector<1x32xf32> to vector<32xf32>
    %cst_174 = arith.constant dense<0.000000e+00> : vector<8xf32>
    %610 = vector.multi_reduction <add>, %605, %cst_174 [1] : vector<8x32xf32> to vector<8xf32>
    %611 = vector.shape_cast %610 : vector<8xf32> to vector<8x1xf32>
    %cst_175 = arith.constant 3.200000e+01 : f32
    %612 = vector.broadcast %cst_175 : f32 to vector<8x1xf32>
    %613 = arith.divf %611, %612 : vector<8x1xf32>
    %614 = vector.broadcast %613 : vector<8x1xf32> to vector<8x32xf32>
    %615 = arith.subf %605, %614 : vector<8x32xf32>
    %616 = arith.mulf %615, %615 : vector<8x32xf32>
    %cst_176 = arith.constant dense<0.000000e+00> : vector<8xf32>
    %617 = vector.multi_reduction <add>, %616, %cst_176 [1] : vector<8x32xf32> to vector<8xf32>
    %618 = vector.shape_cast %617 : vector<8xf32> to vector<8x1xf32>
    %cst_177 = arith.constant 3.200000e+01 : f32
    %619 = vector.broadcast %cst_177 : f32 to vector<8x1xf32>
    %620 = arith.divf %618, %619 : vector<8x1xf32>
    %621 = vector.broadcast %613 : vector<8x1xf32> to vector<8x32xf32>
    %622 = arith.subf %605, %621 : vector<8x32xf32>
    %cst_178 = arith.constant 9.99999974E-6 : f32
    %623 = vector.broadcast %cst_178 : f32 to vector<8x1xf32>
    %624 = arith.addf %620, %623 : vector<8x1xf32>
    %625 = math.rsqrt %624 : vector<8x1xf32>
    %626 = vector.broadcast %625 : vector<8x1xf32> to vector<8x32xf32>
    %627 = arith.mulf %622, %626 : vector<8x32xf32>
    %628 = vector.shape_cast %607 : vector<32xf32> to vector<1x32xf32>
    %629 = vector.broadcast %628 : vector<1x32xf32> to vector<8x32xf32>
    %630 = arith.mulf %627, %629 : vector<8x32xf32>
    %631 = vector.shape_cast %609 : vector<32xf32> to vector<1x32xf32>
    %632 = vector.broadcast %631 : vector<1x32xf32> to vector<8x32xf32>
    %633 = arith.addf %630, %632 : vector<8x32xf32>
    %634 = arith.index_cast %arg0 : i32 to index
    %c1_179 = arith.constant 1 : index
    %635 = memref.load %arg3[%634, %c1_179] : memref<2x2xf32, #tpu.memory_space<smem>>
    %636 = vector.broadcast %635 : f32 to vector<8x32xf32>
    %637 = arith.mulf %633, %636 : vector<8x32xf32>
    %638 = arith.addf %324, %637 : vector<8x32xf32>
    %c0_180 = arith.constant 0 : index
    %c0_181 = arith.constant 0 : index
    %c0_182 = arith.constant 0 : index
    %639 = vector.load %arg21[%c0_180, %c0_181, %c0_182] : memref<1x8x32xf32, #tpu.memory_space<vmem>>, vector<1x8x32xf32>
    %640 = vector.shape_cast %639 : vector<1x8x32xf32> to vector<8x32xf32>
    %641 = vector.shape_cast %638 : vector<8x32xf32> to vector<1x8x32xf32>
    tpu.vector_store %arg21[%c0_180, %c0_181, %c0_182], %641 {strides = array<i32>} : memref<1x8x32xf32, #tpu.memory_space<vmem>>, vector<1x8x32xf32>,
    return
  }
  func.func @transform_0(%arg0: i32) -> (i32, i32, i32) {
    %c0_i32 = arith.constant 0 : i32
    %c0_i32_0 = arith.constant 0 : i32
    %c0_i32_1 = arith.constant 0 : i32
    return %arg0, %c0_i32, %c0_i32_0 : i32, i32, i32
  }
  func.func @transform_1(%arg0: i32) -> (i32, i32, i32) {
    %c0_i32 = arith.constant 0 : i32
    %c0_i32_0 = arith.constant 0 : i32
    %c0_i32_1 = arith.constant 0 : i32
    return %arg0, %c0_i32, %c0_i32_0 : i32, i32, i32
  }
  func.func @transform_2(%arg0: i32) -> (i32, i32) {
    %c0_i32 = arith.constant 0 : i32
    %c0_i32_0 = arith.constant 0 : i32
    %c0_i32_1 = arith.constant 0 : i32
    return %c0_i32, %c0_i32_0 : i32, i32
  }
  func.func @transform_3(%arg0: i32) -> (i32, i32, i32) {
    %c0_i32 = arith.constant 0 : i32
    %c0_i32_0 = arith.constant 0 : i32
    %c0_i32_1 = arith.constant 0 : i32
    %c0_i32_2 = arith.constant 0 : i32
    return %c0_i32, %c0_i32_0, %c0_i32_1 : i32, i32, i32
  }
  func.func @transform_4(%arg0: i32) -> (i32, i32) {
    %c0_i32 = arith.constant 0 : i32
    %c0_i32_0 = arith.constant 0 : i32
    %c0_i32_1 = arith.constant 0 : i32
    return %c0_i32, %c0_i32_0 : i32, i32
  }
  func.func @transform_5(%arg0: i32) -> (i32, i32, i32) {
    %c0_i32 = arith.constant 0 : i32
    %c0_i32_0 = arith.constant 0 : i32
    %c0_i32_1 = arith.constant 0 : i32
    %c0_i32_2 = arith.constant 0 : i32
    return %c0_i32, %c0_i32_0, %c0_i32_1 : i32, i32, i32
  }
  func.func @transform_6(%arg0: i32) -> (i32, i32) {
    %c0_i32 = arith.constant 0 : i32
    %c0_i32_0 = arith.constant 0 : i32
    %c0_i32_1 = arith.constant 0 : i32
    return %c0_i32, %c0_i32_0 : i32, i32
  }
  func.func @transform_7(%arg0: i32) -> (i32, i32, i32) {
    %c0_i32 = arith.constant 0 : i32
    %c0_i32_0 = arith.constant 0 : i32
    %c0_i32_1 = arith.constant 0 : i32
    %c0_i32_2 = arith.constant 0 : i32
    return %c0_i32, %c0_i32_0, %c0_i32_1 : i32, i32, i32
  }
  func.func @transform_8(%arg0: i32) -> (i32, i32, i32) {
    %c0_i32 = arith.constant 0 : i32
    %c0_i32_0 = arith.constant 0 : i32
    %c0_i32_1 = arith.constant 0 : i32
    %c0_i32_2 = arith.constant 0 : i32
    return %c0_i32, %c0_i32_0, %c0_i32_1 : i32, i32, i32
  }
  func.func @transform_9(%arg0: i32) -> (i32, i32) {
    %c0_i32 = arith.constant 0 : i32
    %c0_i32_0 = arith.constant 0 : i32
    %c0_i32_1 = arith.constant 0 : i32
    return %c0_i32, %c0_i32_0 : i32, i32
  }
  func.func @transform_10(%arg0: i32) -> (i32, i32, i32) {
    %c0_i32 = arith.constant 0 : i32
    %c0_i32_0 = arith.constant 0 : i32
    %c0_i32_1 = arith.constant 0 : i32
    %c0_i32_2 = arith.constant 0 : i32
    return %c0_i32, %c0_i32_0, %c0_i32_1 : i32, i32, i32
  }
  func.func @transform_11(%arg0: i32) -> (i32, i32) {
    %c0_i32 = arith.constant 0 : i32
    %c0_i32_0 = arith.constant 0 : i32
    %c0_i32_1 = arith.constant 0 : i32
    return %c0_i32, %c0_i32_0 : i32, i32
  }
  func.func @transform_12(%arg0: i32) -> (i32, i32, i32) {
    %c0_i32 = arith.constant 0 : i32
    %c0_i32_0 = arith.constant 0 : i32
    %c0_i32_1 = arith.constant 0 : i32
    %c0_i32_2 = arith.constant 0 : i32
    return %c0_i32, %c0_i32_0, %c0_i32_1 : i32, i32, i32
  }
  func.func @transform_13(%arg0: i32) -> (i32, i32) {
    %c0_i32 = arith.constant 0 : i32
    %c0_i32_0 = arith.constant 0 : i32
    %c0_i32_1 = arith.constant 0 : i32
    return %c0_i32, %c0_i32_0 : i32, i32
  }
  func.func @transform_14(%arg0: i32) -> (i32, i32, i32) {
    %c0_i32 = arith.constant 0 : i32
    %c0_i32_0 = arith.constant 0 : i32
    %c0_i32_1 = arith.constant 0 : i32
    %c0_i32_2 = arith.constant 0 : i32
    return %c0_i32, %c0_i32_0, %c0_i32_1 : i32, i32, i32
  }
  func.func @transform_15(%arg0: i32) -> (i32, i32, i32) {
    %c0_i32 = arith.constant 0 : i32
    %c0_i32_0 = arith.constant 0 : i32
    %c0_i32_1 = arith.constant 0 : i32
    %c0_i32_2 = arith.constant 0 : i32
    return %c0_i32, %c0_i32_0, %c0_i32_1 : i32, i32, i32
  }
  func.func @transform_16(%arg0: i32) -> (i32, i32) {
    %c0_i32 = arith.constant 0 : i32
    %c0_i32_0 = arith.constant 0 : i32
    %c0_i32_1 = arith.constant 0 : i32
    return %c0_i32, %c0_i32_0 : i32, i32
  }
  func.func @transform_17(%arg0: i32) -> (i32, i32, i32) {
    %c0_i32 = arith.constant 0 : i32
    %c0_i32_0 = arith.constant 0 : i32
    %c0_i32_1 = arith.constant 0 : i32
    %c0_i32_2 = arith.constant 0 : i32
    return %c0_i32, %c0_i32_0, %c0_i32_1 : i32, i32, i32
  }
  func.func @transform_18(%arg0: i32) -> (i32, i32) {
    %c0_i32 = arith.constant 0 : i32
    %c0_i32_0 = arith.constant 0 : i32
    %c0_i32_1 = arith.constant 0 : i32
    return %c0_i32, %c0_i32_0 : i32, i32
  }
  func.func @transform_19(%arg0: i32) -> (i32, i32, i32) {
    %c0_i32 = arith.constant 0 : i32
    %c0_i32_0 = arith.constant 0 : i32
    %c0_i32_1 = arith.constant 0 : i32
    %c0_i32_2 = arith.constant 0 : i32
    return %c0_i32, %c0_i32_0, %c0_i32_1 : i32, i32, i32
  }
  func.func @transform_20(%arg0: i32) -> (i32, i32, i32) {
    %c0_i32 = arith.constant 0 : i32
    %c0_i32_0 = arith.constant 0 : i32
    %c0_i32_1 = arith.constant 0 : i32
    return %arg0, %c0_i32, %c0_i32_0 : i32, i32, i32
  }
}

</mosaic_0001>

<bundles_post_ra>
// kernel: tpu_custom_call.1
= control target key start
LH: loop header
LB: loop body
LE: loop exit
PB: predicated region body
PF: predicated region fallthrough
CT: control target
= control target key end

     0   :  { %s6627_s0 = inlined_call_operand.hbm [shape: f32[2,8,32], index: 0, kind: input, shape index: {}]   ;;  %s6628_s1 = inlined_call_operand.hbm [shape: f32[2,8,32], index: 1, kind: input, shape index: {}]   ;;  %s6629_s2 = inlined_call_operand.hbm [shape: f32[2,2], index: 2, kind: input, shape index: {}]   ;;  %s6630_s3 = inlined_call_operand.vmem [shape: bf16[2,32,96], index: 3, kind: input, shape index: {}]   ;;  %s6631_s4 = inlined_call_operand.hbm [shape: f32[2,96], index: 4, kind: input, shape index: {}]   ;;  %s6632_s5 = inlined_call_operand.vmem [shape: bf16[2,32,32], index: 5, kind: input, shape index: {}]   ;;  %s6633_s6 = inlined_call_operand.hbm [shape: f32[2,32], index: 6, kind: input, shape index: {}]   ;;  %s6634_s7 = inlined_call_operand.vmem [shape: f32[2,2,32], index: 7, kind: input, shape index: {}]   ;;  %s6635_s8 = inlined_call_operand.vmem [shape: bf16[2,32,32], index: 8, kind: input, shape index: {}]   ;;  %s6636_s9 = inlined_call_operand.vmem [shape: f32[2,32], index: 9, kind: input, shape index: {}]   ;;  %s6637_s10 = inlined_call_operand.hbm [shape: bf16[2,32,64], index: 10, kind: input, shape index: {}]   ;;  %s6638_s11 = inlined_call_operand.vmem [shape: f32[2,64], index: 11, kind: input, shape index: {}]   ;;  %s6639_s12 = inlined_call_operand.hbm [shape: bf16[2,32,32], index: 12, kind: input, shape index: {}]   ;;  %s6640_s13 = inlined_call_operand.vmem [shape: f32[2,32], index: 13, kind: input, shape index: {}]   ;;  %s6641_s14 = inlined_call_operand.vmem [shape: f32[2,2,32], index: 14, kind: input, shape index: {}]   ;;  %s6642_s15 = inlined_call_operand.hbm [shape: bf16[2,32,64], index: 15, kind: input, shape index: {}]   ;;  %s6643_s16 = inlined_call_operand.vmem [shape: f32[2,64], index: 16, kind: input, shape index: {}]   ;;  %s6644_s17 = inlined_call_operand.vmem [shape: bf16[2,64,32], index: 17, kind: input, shape index: {}]   ;;  %s6645_s18 = inlined_call_operand.vmem [shape: f32[2,32], index: 18, kind: input, shape index: {}]   ;;  %s6646_s19 = inlined_call_operand.vmem [shape: f32[2,2,32], index: 19, kind: input, shape index: {}]   ;;  %s6647_s20 = inlined_call_operand.hbm [shape: f32[2,8,32], index: 20, kind: output, shape index: {}]  }
   0x1   :  { %6667 = sst [smem:[#allocation28_spill]] %s6627_s0 }
   0x2   :  { %6668 = sst [smem:[#allocation29_spill]] %s6628_s1 }
   0x3   :  { %6669 = sst [smem:[#allocation30_spill]] %s6629_s2 }
   0x4   :  { %6670 = sst [smem:[#allocation31_spill]] %s6630_s3 }
   0x5   :  { %6671 = sst [smem:[#allocation32_spill]] %s6631_s4 }
   0x6   :  { %6672 = sst [smem:[#allocation33_spill]] %s6633_s6 }
   0x7   :  { %6673 = sst [smem:[#allocation34_spill]] %s6637_s10 }
   0x8   :  { %6674 = sst [smem:[#allocation35_spill]] %s6639_s12 }
   0x9   :  { %6675 = sst [smem:[#allocation36_spill]] %s6641_s14 }
   0xa   :  { %6676 = sst [smem:[#allocation37_spill]] %s6642_s15 }
   0xb   :  { %6677 = sst [smem:[#allocation38_spill]] %s6643_s16 }
   0xc   :  { %6678 = sst [smem:[#allocation39_spill]] %s6644_s17 }
   0xd   :  { %6679 = sst [smem:[#allocation40_spill]] %s6645_s18 }
   0xe   :  { %6680 = sst [smem:[#allocation41_spill]] %s6646_s19 }
   0xf   :  { %6681 = sst [smem:[#allocation42_spill]] %s6647_s20 }
  0x10   :  { %25 = vsyncpa [#allocation3], 0 }
  0x11   :  { %27 = vsyncpa [#allocation3 + $0x1], 0 }
  0x12   :  { %28 = vsyncpa [#allocation7], 0 }
  0x13   :  { %30 = vsyncpa [#allocation7 + $0x1], 0 }
  0x14   :  { %31 = vsyncpa [#allocation5], 0 }
  0x15   :  { %32 = vsyncpa [#allocation11], 0 }
  0x16   :  { %33 = vsyncpa [#allocation14], 0 }
  0x17   :  { %34 = vsyncpa [#allocation4], 0 }
  0x18   :  { %36 = vsyncpa [#allocation4 + $0x1], 0  ;;  %s5704_s1 = smov 0   ;;  %s5706_s22 = smov 0  }
  0x19   :  { %s5708_s23 = smov 0   ;;  %s5710_s24 = smov 0  }
  0x1a LB: > { %6682 = sst [smem:[#allocation24_spill]] %s5574_s23  ;;  %s5580_s2 = smov [#allocation9]   ;;  %s5578_s24 = sphi %s5710_s24, %s6725_s24   ;;  %s5574_s23 = sphi %s5708_s23, %s6727_s23   ;;  %s5570_s22 = sphi %s5706_s22, %s6729_s22   ;;  %s5566_s1 = sphi %s5704_s1, %s6728_s1  }
  0x1b   : > { %s528_s25 = sshll.u32 %s5580_s2, 4  ;;  %s5725_s3 = sadd.s32 4294967295, %s5578_s24   ;;  %s529_s25 = int_to_ptr.vmem [resolvable:$true] %s528_s25 }
  0x1c   : > { %p4418_p0 = scmp.ge.s32.totalorder %s5578_s24, 1  ;;  %p6652_p1 = scmp.eq.s32.totalorder %s5725_s3, 0 }
  0x1d   : > { %p503_p2 = scmp.lt.s32.totalorder %s5578_s24, 3  ;;  %s5581_s27 = smov [#allocation10]  }
  0x1e   : > { %s542_s28 = sshll.u32 %s5581_s27, 4  ;;  %s5582_s29 = smov [#allocation13]   ;;  %s543_s28 = int_to_ptr.vmem [resolvable:$true] %s542_s28 }
  0x1f   : > { %p5730_p3 = pnand %p4418_p0, %p503_p2  ;;  %s577_s30 = sshll.u32 %s5582_s29, 4  ;;  %s5743_s30 = int_to_ptr.vmem [resolvable:$true] %s577_s30 }
  0x20   : > { %s5308_s21 = scalar_lea.vmem %s529_s25, 32  ;;  %p5316_p11 = scmp.lt.s32.totalorder %s529_s25, %s529_s25 }
  0x21   : > { %s6683_s26 = scalar_select %p5730_p3, 1, 0 }
  0x22   : > { %p5100_p5 = pneg %p5730_p3  ;;  %p5309_p8 = scmp.ne.s32.totalorder %s529_s25, %s5308_s21 }
  0x23   : > { %p5317_p12 = scmp.lt.s32.totalorder %s5308_s21, %s5308_s21 }
  0x24   : > { %p5739_p6 = pnand %p5100_p5, %p6652_p1 }
  0x25   : > { %p5318_p13 = por %p5317_p12, %p5316_p11 }
  0x26   : > { %p5747_p7 = pneg %p5739_p6 }
  0x28   : > { %p5311_p9 = pnand %p5309_p8, %p5747_p7 }
  0x2a   : > { %p5312_p10 = pneg %p5311_p9 }
  0x2c   : > { %p5319_p0 = pnand %p5318_p13, %p5312_p10 }
  0x2e   : > { %5322 = shalt.err (!%p5319_p0)
}
  0x2f   : > { %s6686_s29 = sld [smem:[#allocation32_spill]]  ;;  %s5334_s20 = scalar_lea.vmem %s543_s28, 32 }
  0x30   : > { %p5335_p2 = scmp.ne.s32.totalorder %s543_s28, %s5334_s20  ;;  %p5342_p1 = scmp.lt.s32.totalorder %s543_s28, %s543_s28 }
  0x31   : > { %p5343_p8 = scmp.lt.s32.totalorder %s5334_s20, %s5334_s20 }
  0x32   : > { %p5337_p5 = pnand %p5335_p2, %p5747_p7 }
  0x33   : > { %p5344_p9 = por %p5343_p8, %p5342_p1 }
  0x34   : > { %p5338_p4 = pneg %p5337_p5 }
  0x35   : > { %5106 = dma.hbm_to_vmem [thread:$0]  (!%p5739_p6), %s6686_s29, 32, %s529_s25, [#allocation7]  }
  0x36   : > { %p5345_p3 = pnand %p5344_p9, %p5338_p4 }
  0x38   : > { %5348 = shalt.err (!%p5345_p3)
}
  0x39   : > { %s6687_s6 = sld [smem:[#allocation33_spill]]  ;;  %s5360_s25 = scalar_lea.vmem %s5743_s30, 512 }
  0x3a   : > { %p5361_p10 = scmp.ne.s32.totalorder %s5743_s30, %s5360_s25  ;;  %p5368_p13 = scmp.lt.s32.totalorder %s5743_s30, %s5743_s30 }
  0x3b   : > { %p5369_p1 = scmp.lt.s32.totalorder %s5360_s25, %s5360_s25 }
  0x3c   : > { %p5363_p11 = pnand %p5361_p10, %p5747_p7 }
  0x3d   : > { %p5370_p4 = por %p5369_p1, %p5368_p13 }
  0x3e   : > { %p5364_p12 = pneg %p5363_p11 }
  0x3f   : > { %5109 = dma.hbm_to_vmem [thread:$0]  (!%p5739_p6), %s6687_s6, 32, %s543_s28, [#allocation11]  }
  0x40   : > { %p5371_p3 = pnand %p5370_p4, %p5364_p12 }
  0x42   : > { %5374 = shalt.err (!%p5371_p3)
}
  0x43   : > { %s5583_s20 = smov 64   ;;  %s5584_s19 = smov 4  }
  0x44   : > { %s6688_s12 = sld [smem:[#allocation35_spill]]  ;;  %s5585_s27 = smov [#allocation8]  }
  0x45   : > { %s6689_s25 = sld [smem:[#allocation30_spill]]  ;;  %s5586_s6 = smov [#allocation12]  }
  0x46   : > { %s561_s18 = sshll.u32 %s5586_s6, 4  ;;  %s5587_s16 = smov [#allocation15]   ;;  %s562_s18 = int_to_ptr.vmem [resolvable:$true] %s561_s18 }
  0x47   : > { %s596_s17 = sshll.u32 %s5587_s16, 4  ;;  %s5397_s14 = scalar_lea.vmem %s562_s18, 512  ;;  %s597_s17 = int_to_ptr.vmem [resolvable:$true] %s596_s17 }
  0x48   : > { %p5398_p0 = scmp.ne.s32.totalorder %s562_s18, %s5397_s14  ;;  %p5405_p8 = scmp.lt.s32.totalorder %s562_s18, %s562_s18 }
  0x49   : > { %p5406_p9 = scmp.lt.s32.totalorder %s5397_s14, %s5397_s14 }
  0x4a   : > { %5115 = dma.hbm_to_vmem [thread:$0]  (!%p5739_p6), %s6688_s12, 512, %s5743_s30, [#allocation14], %s5583_s20, %s5583_s20, %s5584_s19  }
  0x4b   : > { %5103 = dma.hbm_to_smem (!%p5739_p6), %s6689_s25, 32, %s5585_s27, [#allocation5]  }
  0x4c   : > { %p5400_p2 = pnand %p5398_p0, %p5747_p7  ;;  %p5407_p10 = por %p5406_p9, %p5405_p8 }
  0x4e   : > { %p5401_p5 = pneg %p5400_p2 }
  0x50   : > { %p5408_p11 = pnand %p5407_p10, %p5401_p5 }
  0x52   : > { %5411 = shalt.err (!%p5408_p11)
}
  0x53   : > { %s6690_s10 = sld [smem:[#allocation34_spill]]  ;;  %s5423_s16 = scalar_lea.vmem %s597_s17, 512 }
  0x54   : > { %p5424_p12 = scmp.ne.s32.totalorder %s597_s17, %s5423_s16  ;;  %p5431_p4 = scmp.lt.s32.totalorder %s597_s17, %s597_s17 }
  0x55   : > { %p5432_p3 = scmp.lt.s32.totalorder %s5423_s16, %s5423_s16 }
  0x56   : > { %p5426_p13 = pnand %p5424_p12, %p5747_p7 }
  0x57   : > { %p5433_p0 = por %p5432_p3, %p5431_p4 }
  0x58   : > { %p5427_p1 = pneg %p5426_p13 }
  0x59   : > { %5112 = dma.hbm_to_vmem [thread:$0]  (!%p5739_p6), %s6690_s10, 512, %s562_s18, [#allocation11], %s5583_s20, %s5583_s20, %s5584_s19  }
  0x5a   : > { %p5434_p2 = pnand %p5433_p0, %p5427_p1 }
  0x5c   : > { %5437 = shalt.err (!%p5434_p2)
}
  0x5d   : > { %s6691_s15 = sld [smem:[#allocation37_spill]]  ;;  %s4417_s18 = sadd.s32 4294967294, %s5578_s24  }
  0x5e   : > { %s5807_s4 = sadd.s32 1, %s5578_s24   ;;  %s49_s2 = sadd.s32 1, %s5574_s23 }
  0x5f   : > { %6692 = sst [smem:[#allocation25_spill]] %s5807_s4  ;;  %s46_s0 = ssub.s32 %s5578_s24, %s5807_s4 }
  0x60   : > { %p47_p7 = scmp.eq.s32.totalorder %s46_s0, 0  ;;  %p56_p5 = scmp.ne.s32.totalorder %s5574_s23, %s5570_s22 }
  0x61   : > { %p57_p8 = scmp.eq.s32.totalorder %s5578_s24, 0  ;;  %p62_p9 = scmp.ne.s32.totalorder %s5570_s22, %s5566_s1 }
  0x62   : > { %s5818_s27 = scalar_select %p47_p7, %s5574_s23, %s49_s2  }
  0x63   : > { %5118 = dma.hbm_to_vmem [thread:$0]  (!%p5739_p6), %s6691_s15, 512, %s597_s17, [#allocation14], %s5583_s20, %s5583_s20, %s5584_s19  }
  0x64   : > { %6693 = sst [smem:[#allocation26_spill]] %s5818_s27  ;;  %p5820_p10 = por %p57_p8, %p56_p5 }
  0x65   : > { %p6695_p11 = scmp.eq.s32.totalorder %s5725_s3, 0  ;;  %p490_p12 = scmp.eq.s32.totalorder %s5725_s3, 1 }
  0x66   : > { %p496_p13 = scmp.eq.s32.totalorder %s4417_s18, 1  ;;  %p5136_p1 = scmp.lt.s32.totalorder %s5578_s24, 2 }
  0x67   : > { %p5826_p6 = por %p6695_p11, %p62_p9  ;;  %s622_s20 = sand.u32 1, %s5574_s23  }
  0x68   : > { %p5833_p4 = por %p490_p12, %p56_p5  ;;  %p5837_p3 = por %p496_p13, %p62_p9 }
  0x69   : > { %s6696_s17 = scalar_select %p5826_p6, 1, 0 }
  0x6a   : > { %s6697_s19 = scalar_select %p5833_p4, 1, 0 }
  0x6b   : > { %s6698_s21 = scalar_select %p5837_p3, 1, 0 }
  0x6c   : > { %s5841_s25 = sshll.u32 %s622_s20, 3  ;;  %s4427_s6 = sshll.u32 %s5578_s24, 7 }
  0x6d   : > { %6699 = sst [smem:[#allocation27_spill]] %s6698_s21  ;;  %s626_s18 = scalar_lea.vmem [#allocation2], %s5841_s25 }
  0x6e   : > { %s6700_s14 = sld [smem:[#allocation28_spill]]  ;;  %s633_s0 = sshll.u32 %s626_s18, 4  ;;  %s5850_s0 = int_to_ptr.vmem [resolvable:$true] %s633_s0 }
  0x6f   : > { %p5854_p0 = pnand %p5136_p1, %p5820_p10  ;;  %s6702_s15 = sld [smem:[#allocation29_spill]] }
  0x70   : > { %s640_s16 = sand.u32 1, %s5578_s24   ;;  %s623_s27 = scalar_lea.sflag [#allocation3], %s622_s20 }
  0x71   : > { %p5440_p7 = pneg %p5854_p0 }
  0x74   : > { %s5847_s28 = scalar_lea.hbm %s6700_s14, %s4427_s6  ;;  %s5443_s4 = scalar_lea.hbm %s6700_s14, 256 }
  0x75   : > { %s5861_s30 = scalar_lea.hbm %s6702_s15, %s4427_s6  ;;  %s5438_s23 = scalar_lea.hbm %s5847_s28, 128 }
  0x76   : > { %p5439_p2 = scmp.ne.s32.totalorder %s5847_s28, %s5438_s23  ;;  %p5444_p9 = scmp.lt.s32.totalorder %s5847_s28, %s6700_s14 }
  0x77   : > { %p5445_p10 = scmp.lt.s32.totalorder %s5443_s4, %s5438_s23 }
  0x78   : > { %p5441_p5 = pnand %p5440_p7, %p5439_p2 }
  0x79   : > { %p5446_p11 = por %p5445_p10, %p5444_p9 }
  0x7a   : > { %p5442_p8 = pneg %p5441_p5 }
  0x7c   : > { %p5447_p12 = pnand %p5446_p11, %p5442_p8 }
  0x7e   : > { %5450 = shalt.err (!%p5447_p12)
}
  0x7f   : > { %s5451_s12 = scalar_lea.vmem %s5850_s0, 128  ;;  %s5588_s20 = smov [#allocation2]  }
  0x80   : > { %p5452_p13 = scmp.ne.s32.totalorder %s5850_s0, %s5451_s12  ;;  %s5456_s6 = sshll.u32 %s5588_s20, 4  ;;  %s5457_s6 = int_to_ptr.vmem [resolvable:$false] %s5456_s6 }
  0x81   : > { %s5458_s29 = scalar_lea.vmem %s5457_s6, 256  ;;  %p5459_p5 = scmp.lt.s32.totalorder %s5850_s0, %s5457_s6 }
  0x82   : > { %p5454_p1 = pnand %p5452_p13, %p5440_p7  ;;  %p5460_p3 = scmp.lt.s32.totalorder %s5458_s29, %s5451_s12 }
  0x84   : > { %p5455_p2 = pneg %p5454_p1  ;;  %p5461_p4 = por %p5460_p3, %p5459_p5 }
  0x86   : > { %p5462_p9 = pnand %p5461_p4, %p5455_p2 }
  0x88   : > { %5465 = shalt.err (!%p5462_p9)
}
  0x89   : > { %5122 = dma.hbm_to_vmem [thread:$0]  (!%p5854_p0), %s5847_s28, 128, %s5850_s0, %s623_s27  }
  0x8a   : > { %s644_s23 = scalar_lea.vmem [#allocation6], %s5841_s25  ;;  %s641_s21 = scalar_lea.sflag [#allocation7], %s640_s16 }
  0x8b   : > { %s651_s4 = sshll.u32 %s644_s23, 4  ;;  %s5466_s18 = scalar_lea.hbm %s5861_s30, 128  ;;  %s652_s4 = int_to_ptr.vmem [resolvable:$true] %s651_s4 }
  0x8c   : > { %p5467_p3 = scmp.ne.s32.totalorder %s5861_s30, %s5466_s18  ;;  %s5471_s20 = scalar_lea.hbm %s6702_s15, 256 }
  0x8d   : > { %p5472_p10 = scmp.lt.s32.totalorder %s5861_s30, %s6702_s15  ;;  %p5473_p11 = scmp.lt.s32.totalorder %s5471_s20, %s5466_s18 }
  0x8e   : > { %p5469_p4 = pnand %p5467_p3, %p5440_p7 }
  0x8f   : > { %p5474_p12 = por %p5473_p11, %p5472_p10 }
  0x90   : > { %p5470_p8 = pneg %p5469_p4 }
  0x92   : > { %p5475_p13 = pnand %p5474_p12, %p5470_p8 }
  0x94   : > { %5478 = shalt.err (!%p5475_p13)
}
  0x95   : > { %s5479_s27 = scalar_lea.vmem %s652_s4, 128  ;;  %s5589_s25 = smov [#allocation6]  }
  0x96   : > { %p5480_p1 = scmp.ne.s32.totalorder %s652_s4, %s5479_s27  ;;  %s5484_s28 = sshll.u32 %s5589_s25, 4  ;;  %s5485_s28 = int_to_ptr.vmem [resolvable:$false] %s5484_s28 }
  0x97   : > { %s5486_s0 = scalar_lea.vmem %s5485_s28, 256  ;;  %p5487_p9 = scmp.lt.s32.totalorder %s652_s4, %s5485_s28 }
  0x98   : > { %p5482_p2 = pnand %p5480_p1, %p5440_p7  ;;  %p5488_p3 = scmp.lt.s32.totalorder %s5486_s0, %s5479_s27 }
  0x9a   : > { %p5483_p5 = pneg %p5482_p2  ;;  %p5489_p4 = por %p5488_p3, %p5487_p9 }
  0x9c   : > { %p5490_p6 = pnand %p5489_p4, %p5483_p5 }
  0x9e   : > { %5493 = shalt.err (!%p5490_p6)
}
  0x9f   : > { %5125 = dma.hbm_to_vmem [thread:$0]  (!%p5854_p0), %s5861_s30, 128, %s652_s4, %s641_s21  }
  0xa0   : > { %p6703_p8 = scmp.ne.s32.totalorder %s6683_s26, 0 }
  0xa1   : > { %s5912_s16 = sand.u32 (!%p6703_p8), 1, %s5570_s22   ;;  %p6704_p7 = scmp.ne.s32.totalorder (!%p6703_p8), %s6696_s17, 0 }
  0xa2   : > { %660 = sbr.rel (%p6703_p8) target bundleno = 7343 (0x1caf), region = 100  ;;  %s5915_s23 = sshll.u32 (!%p6703_p8), %s5912_s16, 3 }
  0xa3   : > { %s663_s18 = scalar_lea.sflag (!%p6703_p8), [#allocation3], %s5912_s16  ;;  %s6665_s10 = scalar_lea.vmem (!%p6703_p8), [#allocation2], %s5915_s23 }
  0xa7   : > { %5537 = dma.done.wait (%p6704_p7), %s663_s18, 128  }
  0xa8   : > { %5539 = vsyncadd (%p6704_p7), %s663_s18, 4294967168  ;;  %s671_s26 = sand.u32 1, %s5725_s3   ;;  %s675_s30 = scalar_lea.vmem [#allocation6], %s5915_s23 }
  0xa9   : > { %s672_s2 = scalar_lea.sflag [#allocation7], %s671_s26 }
  0xaa   : > { %5541 = dma.done.wait (%p6704_p7), %s672_s2, 128  }
  0xab   : > { %5543 = vsyncadd (%p6704_p7), %s672_s2, 4294967168  ;;  %p6705_p6 = scmp.eq.s32.totalorder %s5725_s3, 0 }
  0xad   : > { %5545 = dma.done.wait (%p6705_p6), [#allocation5], 32   ;;  %p6706_p0 = pmov %p6705_p6 }
  0xaf   : > { %5547 = vsyncadd (%p6706_p0), [#allocation5], 4294967264  ;;  %p6707_p10 = pmov %p6706_p0 }
  0xb0   : > { %p6708_p11 = pmov %p6706_p0 }
  0xb1   : > { %5549 = dma.done.wait (%p6707_p10), [#allocation7], 32  }
  0xb2   : > { %5551 = vsyncadd (%p6708_p11), [#allocation7], 4294967264  ;;  %p6709_p12 = pmov %p6706_p0 }
  0xb3   : > { %p6710_p13 = pmov %p6706_p0 }
  0xb4   : > { %5553 = dma.done.wait (%p6709_p12), [#allocation11], 544  }
  0xb5   : > { %5555 = vsyncadd (%p6710_p13), [#allocation11], 4294966752  ;;  %p6711_p1 = pmov %p6706_p0 }
  0xb6   : > { %p6712_p2 = pmov %p6706_p0 }
  0xb7   : > { %5557 = dma.done.wait (%p6711_p1), [#allocation14], 1024  }
  0xb8   : > { %5559 = vsyncadd (%p6712_p2), [#allocation14], 4294966272 }
  0xb9   : > { %704 = sfence }
  0xba   : > { %s6713_s21 = sld [smem:[#allocation31_spill]]  ;;  %v5590_v1 = vmov 0.0   ;;  %vm5591_vm0 = vmmov 0   ;;  %v5957_v3 = vld [vmem:[%s6665_s10] sm:$0xff]  ;;  %vm793_vm1 = vcmask 261120   ;;  %s5592_s6 = smov 104   ;;  %v765_v26 = vlaneseq }
  0xbb   : > { %4694 = vmatprep.subr.bf16.mxu1 %v5590_v1  ;;  %4708 = vmatprep.subr.bf16.mxu0 %v5590_v1  ;;  %v5964_v4 = vpack.c.bf16 %v5957_v3, %v5957_v3  ;;  %v4440_v5 = vld [vmem:[#allocation9] ss:$0 sm:$0xff]  ;;  %s5593_s29 = smov 120   ;;  %s5594_s27 = smov 112   ;;  %vm859_vm2 = vcmask 64512   ;;  %vm1106_vm4 = vcmask 1043456  }
  0xbc   : > { %4698 = vmatprep.mubr.msk.bf16.mxu1 %vm5591_vm0, %v5590_v1  ;;  %4710 = vmatprep.mubr.msk.bf16.mxu0 %vm5591_vm0, %v5590_v1  ;;  %s5595_s25 = smov 96   ;;  %v6014_v27 = vshrl.u32 %v765_v26, 7  ;;  %v768_v28 = vand.u32 127, %v765_v26  ;;  %v5596_v29 = vmov -1e+09   ;;  %s5597_s28 = smov 64  }
  0xbd   : > { %s6714_s17 = sld [smem:[#allocation36_spill]]  ;;  %vm2438_vm5 = vcmask 523264   ;;  %s6717_s10 = scalar_lea.vmem [#allocation2], %s5915_s23 }
  0xbe   : > { %vm769_vm3 = vcmp.ge.s32.totalorder %v6014_v27, %v768_v28  ;;  %s6715_s2 = sld [smem:[#allocation39_spill]]  ;;  %s4488_s4 = sshll.u32 %s5725_s3, 7 }
  0xbf   : > { %v6017_v30 = vsel %vm769_vm3, 0.0, %v5596_v29  ;;  %s761_s3 = scalar_lea.vmem [#allocation16], %s5915_s23  ;;  %p6721_p9 = scmp.ne.s32.totalorder %s6697_s19, 0 }
  0xc0   : > { %v5192_v0 = vld [vmem:[%s6713_s21 + $0x8] sm:$0xff]   ;;  %v5193_v2 = vld [vmem:[%s6713_s21] sm:$0xff]   ;;  %s4265_s0 = sshll.u32 %s761_s3, 4  ;;  %s4266_s0 = int_to_ptr.vmem [resolvable:$true] %s4265_s0 }
  0xc1   : > { %4695 = vmatpush3.bf16.msra.mxu1 %v5192_v0  ;;  %s5494_s12 = scalar_lea.vmem %s4266_s0, 128 }
  0xc2   : > { %4696 = vmatprep.subr.bf16.mxu1 %v5590_v1  ;;  %p5495_p5 = scmp.ne.s32.totalorder %s4266_s0, %s5494_s12 }
  0xc4   : > { %p5496_p3 = pnand %p5495_p5, %p6721_p9 }
  0xc5   : > { %4697 = vmatpush3.bf16.msra.mxu1 %v5193_v2 }
  0xc6   : > { %4702 = vmatprep.subr.bf16.mxu1 %v5590_v1  ;;  %p5497_p4 = pneg %p5496_p3 }
  0xc8   : > { %4699 = vmatmul.mubr.msk.bf16.vlgmr.msra.gmra.mxu1 %vm793_vm1, %v5964_v4 }
  0xc9   : > { %4704 = vmatprep.mubr.msk.bf16.mxu1 %vm5591_vm0, %v5590_v1 }
 0x188   : > { %v831_v6 = vpop.f32.mrf.mxu1 }
 0x189   : > { %v832_v7 = vadd.f32 %v4440_v5, %v831_v6 }
 0x18a   : > { %v4700_v8 = vpop.f32.mrf.mxu1 }
 0x18b   : > { %849 = vrot.lane.b32.xlu1 %v832_v7, %s5592_s6  ;;  %843 = vrot.lane.b32.xlu0 %v832_v7, %s5593_s29  ;;  %v5973_v10 = vpack.c.bf16 %v832_v7, %v832_v7 }
 0x18c   : > { %v834_v9 = vpop.f32.mrf.mxu1 }
 0x18e   : > { %v4701_v11 = vpop.f32.mrf.mxu1 }
 0x18f   : > { %846 = vrot.lane.b32.xlu0 %v832_v7, %s5594_s27  ;;  %857 = vrot.lane.b32.xlu1 %v5973_v10, %s5595_s25 }
 0x1fd   : > { %v850_v12 = vpop.permute.xlu1 %849  ;;  %v844_v13 = vpop.permute.xlu0 %843 }
 0x1fe   : > { %v5978_v14 = vpack.c.bf16 %v844_v13, %v844_v13  ;;  %v5982_v17 = vpack.c.bf16 %v850_v12, %v850_v12 }
 0x200   : > { %907 = vrot.lane.b32.xlu0 %v5978_v14, %s5595_s25 }
 0x201   : > { %v847_v15 = vpop.permute.xlu0 %846  ;;  %v858_v16 = vpop.permute.xlu1 %857 }
 0x202   : > { %v5984_v18 = vpack.c.bf16 %v847_v15, %v847_v15  ;;  %v864_v19 = vsel %vm859_vm2, %v858_v16, 0 }
 0x203   : > { %4703 = vmatpush3.bf16.xpose.msra.mxu1 %v864_v19 }
 0x204   : > { %1005 = vrot.lane.b32.xlu0 %v5982_v17, %s5595_s25  ;;  %956 = vrot.lane.b32.xlu1 %v5984_v18, %s5595_s25 }
 0x205   : > { %4714 = vmatprep.subr.bf16.mxu1 %v5590_v1 }
 0x20a   : > { %4705 = vmatmul.mubr.msk.bf16.vlgmr.msra.gmra.mxu1 %vm859_vm2, %v5973_v10 }
 0x20b   : > { %4716 = vmatprep.mubr.msk.bf16.mxu1 %vm5591_vm0, %v5590_v1 }
 0x272   : > { %v908_v20 = vpop.permute.xlu0 %907 }
 0x273   : > { %v913_v21 = vsel %vm859_vm2, %v908_v20, 0 }
 0x274   : > { %4709 = vmatpush3.bf16.xpose.msra.mxu0 %v913_v21 }
 0x275   : > { %4720 = vmatprep.subr.bf16.mxu0 %v5590_v1 }
 0x276   : > { %v957_v22 = vpop.permute.xlu1 %956  ;;  %v1006_v24 = vpop.permute.xlu0 %1005 }
 0x277   : > { %v962_v23 = vsel %vm859_vm2, %v957_v22, 0  ;;  %v1011_v25 = vsel %vm859_vm2, %v1006_v24, 0 }
 0x278   : > { %4715 = vmatpush3.bf16.xpose.msra.mxu1 %v962_v23 }
 0x279   : > { %4726 = vmatprep.subr.bf16.mxu1 %v5590_v1 }
 0x27b   : > { %4711 = vmatmul.mubr.msk.bf16.vlgmr.msra.gmra.mxu0 %vm859_vm2, %v5978_v14 }
 0x27c   : > { %4721 = vmatpush3.bf16.xpose.msra.mxu0 %v1011_v25  ;;  %4722 = vmatprep.mubr.msk.bf16.mxu0 %vm5591_vm0, %v5590_v1 }
 0x27d   : > { %4732 = vmatprep.subr.bf16.mxu0 %v5590_v1 }
 0x27f   : > { %4717 = vmatmul.mubr.msk.bf16.vlgmr.msra.gmra.mxu1 %vm859_vm2, %v5984_v18 }
 0x280   : > { %4728 = vmatprep.mubr.msk.bf16.mxu1 %vm5591_vm0, %v5590_v1 }
 0x283   : > { %4723 = vmatmul.mubr.msk.bf16.vlgmr.msra.gmra.mxu0 %vm859_vm2, %v5982_v17 }
 0x284   : > { %4734 = vmatprep.mubr.msk.bf16.mxu0 %vm5591_vm0, %v5590_v1 }
 0x2ca   : > { %v900_v31 = vpop.f32.mrf.mxu1 }
 0x2cb   : > { %v901_v32 = vadd.f32 %v900_v31, %v6017_v30 }
 0x2cc   : > { %v4706_v33 = vpop.f32.mrf.mxu1 }
 0x2cd   : > { %v1053_v34 = vsel %vm859_vm2, %v901_v32, -inf }
 0x2ce   : > { %1054 = vmax.xlane.f32.xlu1 %v1053_v34  ;;  %v903_v35 = vpop.f32.mrf.mxu1 }
 0x2d0   : > { %v4707_v36 = vpop.f32.mrf.mxu1 }
 0x33b   : > { %v949_v37 = vpop.f32.mrf.mxu0 }
 0x33c   : > { %v950_v38 = vadd.f32 %v949_v37, %v6017_v30 }
 0x33d   : > { %v4712_v39 = vpop.f32.mrf.mxu0 }
 0x33e   : > { %v1056_v40 = vsel %vm859_vm2, %v950_v38, -inf }
 0x33f   : > { %1057 = vmax.xlane.f32.xlu0 %v1056_v40  ;;  %v952_v41 = vpop.f32.mrf.mxu0  ;;  %v998_v42 = vpop.f32.mrf.mxu1 }
 0x340   : > { %v999_v43 = vadd.f32 %v998_v42, %v6017_v30  ;;  %v838_v42 = vld [vmem:[%s6632_s5 + $0x4] sm:$0xf] }
 0x341   : > { %v4713_v44 = vpop.f32.mrf.mxu0  ;;  %v4718_v45 = vpop.f32.mrf.mxu1 }
 0x342   : > { %v1059_v46 = vsel %vm859_vm2, %v999_v43, -inf  ;;  %v840_v44 = vld [vmem:[%s6632_s5 + $0xc] sm:$0xf] }
 0x343   : > { %v1047_v47 = vpop.f32.mrf.mxu0  ;;  %1060 = vmax.xlane.f32.xlu0 %v1059_v46  ;;  %v1001_v48 = vpop.f32.mrf.mxu1 }
 0x344   : > { %v1048_v49 = vadd.f32 %v1047_v47, %v6017_v30  ;;  %v1441_v47 = vsel %vm1106_vm4, %v840_v44, 0 }
 0x345   : > { %v4719_v50 = vpop.f32.mrf.mxu1  ;;  %v4724_v51 = vpop.f32.mrf.mxu0 }
 0x346   : > { %v1062_v52 = vsel %vm859_vm2, %v1048_v49, -inf  ;;  %v839_v51 = vld [vmem:[%s6632_s5 + $0x8] sm:$0xf] }
 0x347   : > { %v1050_v53 = vpop.f32.mrf.mxu0  ;;  %1063 = vmax.xlane.f32.xlu1 %v1062_v52 }
 0x349   : > { %v4725_v54 = vpop.f32.mrf.mxu0 }
 0x34a   : > { %v1393_v54 = vsel %vm1106_vm4, %v839_v51, 0 }
 0x357   : > { %v1055_v55 = vpop.xlane.xlu1 %1054 }
 0x358   : > { %v1065_v56 = vsub.f32 %v901_v32, %v1055_v55  ;;  %1150 = vrot.lane.b32.xlu1 %v5978_v14, %s5597_s28 }
 0x35a   : > { %v1069_v57 = vmul.f32 1.442695, %v1065_v56 }
 0x35c   : > { %5216 = vpow2.f32 %v1069_v57 }
 0x369   : > { %v5217_v58 = vpop.eup %5216 }
 0x36a   : > { %v1077_v59 = vsel %vm859_vm2, %v5217_v58, 0.0 }
 0x36b   : > { %1078 = vadd.xlane.f32.xlu0 %v1077_v59 }
 0x381   : > { %1101 = vrot.lane.b32.xlu0 %v5973_v10, %s5597_s28 }
 0x3c8   : > { %v1058_v60 = vpop.xlane.xlu0 %1057 }
 0x3c9   : > { %v1066_v61 = vsub.f32 %v950_v38, %v1058_v60  ;;  %v837_v38 = vld [vmem:[%s6632_s5] sm:$0xf] }
 0x3ca   : > { %v1346_v41 = vsel %vm1106_vm4, %v837_v38, 0  ;;  %v5195_v38 = vld [vmem:[#allocation12] sm:$0xff]  }
 0x3cb   : > { %v1071_v62 = vmul.f32 1.442695, %v1066_v61 }
 0x3cc   : > { %v1061_v63 = vpop.xlane.xlu0 %1060 }
 0x3cd   : > { %5218 = vpow2.f32 %v1071_v62  ;;  %v1067_v0 = vsub.f32 %v999_v43, %v1061_v63  ;;  %v1300_v43 = vsel %vm1106_vm4, %v838_v42, 0 }
 0x3cf   : > { %v1073_v2 = vmul.f32 1.442695, %v1067_v0 }
 0x3d0   : > { %v1064_v5 = vpop.xlane.xlu1 %1063 }
 0x3d1   : > { %5220 = vpow2.f32 %v1073_v2  ;;  %v1068_v6 = vsub.f32 %v1048_v49, %v1064_v5 }
 0x3d3   : > { %v1075_v7 = vmul.f32 1.442695, %v1068_v6 }
 0x3d4   : > { %v1151_v8 = vpop.permute.xlu1 %1150 }
 0x3d5   : > { %5222 = vpow2.f32 %v1075_v7  ;;  %v1156_v9 = vsel %vm1106_vm4, %v1151_v8, 0 }
 0x3d6   : > { %4733 = vmatpush3.bf16.msra.mxu0 %v1156_v9 }
 0x3d7   : > { %4744 = vmatprep.subr.bf16.mxu0 %v5590_v1 }
 0x3da   : > { %v5219_v10 = vpop.eup %5218 }
 0x3db   : > { %v1080_v11 = vsel %vm859_vm2, %v5219_v10, 0.0 }
 0x3dc   : > { %1081 = vadd.xlane.f32.xlu1 %v1080_v11 }
 0x3de   : > { %v5221_v12 = vpop.eup %5220 }
 0x3df   : > { %v1083_v13 = vsel %vm859_vm2, %v5221_v12, 0.0 }
 0x3e0   : > { %1084 = vadd.xlane.f32.xlu0 %v1083_v13 }
 0x3e2   : > { %v5223_v14 = vpop.eup %5222 }
 0x3e3   : > { %v1086_v15 = vsel %vm859_vm2, %v5223_v14, 0.0 }
 0x3e4   : > { %1087 = vadd.xlane.f32.xlu1 %v1086_v15 }
 0x3f4   : > { %v1079_v16 = vpop.xlane.xlu0 %1078 }
 0x3f5   : > { %5224 = vrcp.f32 %v1079_v16  ;;  %1198 = vrot.lane.b32.xlu1 %v5984_v18, %s5597_s28 }
 0x3f6   : > { %1246 = vrot.lane.b32.xlu0 %v5982_v17, %s5597_s28 }
 0x3f8   : > { %v1102_v19 = vpop.permute.xlu0 %1101 }
 0x3f9   : > { %v1108_v20 = vsel %vm1106_vm4, %v1102_v19, 0 }
 0x3fa   : > { %4727 = vmatpush3.bf16.msra.mxu1 %v1108_v20 }
 0x3fb   : > { %4738 = vmatprep.subr.bf16.mxu1 %v5590_v1 }
 0x402   : > { %v5225_v21 = vpop.eup %5224 }
 0x403   : > { %v1093_v22 = vmul.f32 %v5225_v21, %v5217_v58  ;;  %v4456_v21 = vld [vmem:[#allocation10] ss:$0 sm:$0xff] }
 0x405   : > { %v1097_v23 = vpack.c.bf16 %v1093_v22, %v1093_v22 }
 0x407   : > { %4729 = vmatmul.mubr.msk.bf16.vlgmr.msra.gmra.mxu1 %vm859_vm2, %v1097_v23 }
 0x408   : > { %4740 = vmatprep.mubr.msk.bf16.mxu1 %vm5591_vm0, %v5590_v1 }
 0x465   : > { %v1082_v24 = vpop.xlane.xlu1 %1081 }
 0x466   : > { %5226 = vrcp.f32 %v1082_v24 }
 0x469   : > { %v1085_v18 = vpop.xlane.xlu0 %1084 }
 0x46a   : > { %5228 = vrcp.f32 %v1085_v18 }
 0x46d   : > { %v1088_v25 = vpop.xlane.xlu1 %1087  ;;  %v1247_v31 = vpop.permute.xlu0 %1246 }
 0x46e   : > { %5230 = vrcp.f32 %v1088_v25  ;;  %v1252_v34 = vsel %vm1106_vm4, %v1247_v31, 0 }
 0x471   : > { %v1199_v17 = vpop.permute.xlu1 %1198 }
 0x472   : > { %v1204_v26 = vsel %vm1106_vm4, %v1199_v17, 0 }
 0x473   : > { %v5227_v28 = vpop.eup %5226  ;;  %4739 = vmatpush3.bf16.msra.mxu1 %v1204_v26 }
 0x474   : > { %v1094_v29 = vmul.f32 %v5227_v28, %v5219_v10  ;;  %4750 = vmatprep.subr.bf16.mxu1 %v5590_v1 }
 0x476   : > { %v1098_v32 = vpack.c.bf16 %v1094_v29, %v1094_v29 }
 0x477   : > { %v5229_v33 = vpop.eup %5228 }
 0x478   : > { %4735 = vmatmul.mubr.msk.bf16.vlgmr.msra.gmra.mxu0 %vm859_vm2, %v1098_v32  ;;  %v1095_v35 = vmul.f32 %v5229_v33, %v5221_v12 }
 0x479   : > { %4745 = vmatpush3.bf16.msra.mxu0 %v1252_v34  ;;  %4746 = vmatprep.mubr.msk.bf16.mxu0 %vm5591_vm0, %v5590_v1 }
 0x47a   : > { %v1099_v36 = vpack.c.bf16 %v1095_v35, %v1095_v35  ;;  %4756 = vmatprep.subr.bf16.mxu0 %v5590_v1 }
 0x47b   : > { %v5231_v37 = vpop.eup %5230 }
 0x47c   : > { %4741 = vmatmul.mubr.msk.bf16.vlgmr.msra.gmra.mxu1 %vm859_vm2, %v1099_v36  ;;  %v1096_v39 = vmul.f32 %v5231_v37, %v5223_v14  ;;  %v5194_v37 = vld [vmem:[#allocation12 + $0x8] sm:$0xff]  }
 0x47d   : > { %4752 = vmatprep.mubr.msk.bf16.mxu1 %vm5591_vm0, %v5590_v1  ;;  %4751 = vmatpush3.bf16.msra.mxu1 %v1300_v43 }
 0x47e   : > { %v1100_v40 = vpack.c.bf16 %v1096_v39, %v1096_v39  ;;  %4762 = vmatprep.subr.bf16.mxu1 %v5590_v1  ;;  %v764_v39 = vld [vmem:[%s675_s30] sm:$0xff]  ;;  %s6716_s30 = sld [smem:[#allocation38_spill]] }
 0x480   : > { %4747 = vmatmul.mubr.msk.bf16.vlgmr.msra.gmra.mxu0 %vm859_vm2, %v1100_v40  ;;  %v6097_v40 = vpack.c.bf16 %v764_v39, %v764_v39 }
 0x481   : > { %4757 = vmatpush3.bf16.msra.mxu0 %v1346_v41  ;;  %4758 = vmatprep.mubr.msk.bf16.mxu0 %vm5591_vm0, %v5590_v1  ;;  %v5197_v41 = vld [vmem:[%s6635_s8] sm:$0xff]  }
 0x482   : > { %4768 = vmatprep.subr.bf16.mxu0 %v5590_v1 }
 0x4c7   : > { %v1144_v45 = vpop.f32.mrf.mxu1 }
 0x4c8   : > { %v1294_v46 = vpack.c.bf16 %v1144_v45, %v1144_v45  ;;  %v6113_v45 = vsub.s32 0, %v6014_v27 }
 0x4c9   : > { %v4730_v48 = vpop.f32.mrf.mxu1 }
 0x4ca   : > { %4759 = vmatmul.mubr.msk.bf16.vlgmr.msra.gmra.mxu0 %vm859_vm2, %v1294_v46  ;;  %v1489_v46 = vld [vmem:[%s6634_s7] sm:$0x3] }
 0x4cb   : > { %v1147_v49 = vpop.f32.mrf.mxu1  ;;  %4769 = vmatpush3.bf16.msra.mxu0 %v1441_v47  ;;  %4770 = vmatprep.mubr.msk.bf16.mxu0 %vm5591_vm0, %v5590_v1  ;;  %v6119_v47 = vsub.s32 1, %v6014_v27  ;;  %v1508_v48 = vrot.slane %v1489_v46, %v6113_v45  ;;  %v4461_v27 = vld [vmem:[%s6638_s11] ss:$0 sm:$0xff] }
 0x4cc   : > { %4782 = vmatprep.subr.bf16.mxu0 %v5590_v1 }
 0x4cd   : > { %v4731_v50 = vpop.f32.mrf.mxu1  ;;  %v1513_v51 = vrot.slane %v1489_v46, %v6119_v47 }
 0x538   : > { %v1192_v52 = vpop.f32.mrf.mxu0 }
 0x539   : > { %v1295_v53 = vpack.c.bf16 %v1192_v52, %v1192_v52 }
 0x53a   : > { %v4736_v55 = vpop.f32.mrf.mxu0 }
 0x53b   : > { %4753 = vmatmul.mubr.msk.bf16.vlgmr.msra.gmra.mxu1 %vm859_vm2, %v1295_v53 }
 0x53c   : > { %v1195_v56 = vpop.f32.mrf.mxu0  ;;  %v1240_v57 = vpop.f32.mrf.mxu1  ;;  %4763 = vmatpush3.bf16.msra.mxu1 %v1393_v54  ;;  %4764 = vmatprep.mubr.msk.bf16.mxu1 %vm5591_vm0, %v5590_v1 }
 0x53d   : > { %4774 = vmatprep.subr.bf16.mxu1 %v5590_v1  ;;  %v1388_v62 = vpack.c.bf16 %v1240_v57, %v1240_v57 }
 0x53e   : > { %v4737_v58 = vpop.f32.mrf.mxu0  ;;  %v4742_v59 = vpop.f32.mrf.mxu1 }
 0x540   : > { %v1243_v60 = vpop.f32.mrf.mxu1  ;;  %v1288_v61 = vpop.f32.mrf.mxu0 }
 0x541   : > { %v1436_v63 = vpack.c.bf16 %v1288_v61, %v1288_v61 }
 0x542   : > { %v4743_v0 = vpop.f32.mrf.mxu1  ;;  %v4748_v2 = vpop.f32.mrf.mxu0 }
 0x543   : > { %4765 = vmatmul.mubr.msk.bf16.vlgmr.msra.gmra.mxu1 %vm859_vm2, %v1388_v62  ;;  %4771 = vmatmul.mubr.msk.bf16.vlgmr.msra.gmra.mxu0 %vm859_vm2, %v1436_v63  ;;  %v4457_v2 = vld [vmem:[%s6636_s9] ss:$0 sm:$0xff] }
 0x544   : > { %v1291_v5 = vpop.f32.mrf.mxu0  ;;  %4786 = vmatprep.mubr.msk.bf16.mxu0 %vm5591_vm0, %v5590_v1  ;;  %4778 = vmatprep.mubr.msk.bf16.mxu1 %vm5591_vm0, %v5590_v1 }
 0x545   : > { %4783 = vmatpush3.bf16.msra.mxu0 %v5194_v37 }
 0x546   : > { %v4749_v6 = vpop.f32.mrf.mxu0  ;;  %4784 = vmatprep.subr.bf16.mxu0 %v5590_v1 }
 0x549   : > { %4785 = vmatpush3.bf16.msra.mxu0 %v5195_v38 }
 0x54a   : > { %4796 = vmatprep.subr.bf16.mxu0 %v5590_v1 }
 0x54c   : > { %4787 = vmatmul.mubr.msk.bf16.vlgmr.msra.gmra.mxu0 %vm793_vm1, %v6097_v40 }
 0x54d   : > { %4798 = vmatprep.mubr.msk.bf16.mxu0 %vm5591_vm0, %v5590_v1 }
 0x58a   : > { %v1382_v7 = vpop.f32.mrf.mxu0 }
 0x58c   : > { %v4760_v8 = vpop.f32.mrf.mxu0 }
 0x58e   : > { %v1385_v9 = vpop.f32.mrf.mxu0 }
 0x590   : > { %v4761_v10 = vpop.f32.mrf.mxu0 }
 0x5fb   : > { %v1336_v11 = vpop.f32.mrf.mxu1 }
 0x5fc   : > { %v1383_v15 = vadd.f32 %v1382_v7, %v1336_v11 }
 0x5fd   : > { %v4754_v12 = vpop.f32.mrf.mxu1 }
 0x5ff   : > { %v1339_v13 = vpop.f32.mrf.mxu1 }
 0x601   : > { %v4755_v14 = vpop.f32.mrf.mxu1 }
 0x603   : > { %v1429_v16 = vpop.f32.mrf.mxu1  ;;  %v1477_v19 = vpop.f32.mrf.mxu0 }
 0x604   : > { %v1435_v20 = vadd.f32 %v1429_v16, %v1383_v15 }
 0x605   : > { %v4766_v22 = vpop.f32.mrf.mxu1  ;;  %v4772_v23 = vpop.f32.mrf.mxu0 }
 0x606   : > { %v1483_v24 = vadd.f32 %v1477_v19, %v1435_v20 }
 0x607   : > { %v1432_v18 = vpop.f32.mrf.mxu1  ;;  %v1480_v25 = vpop.f32.mrf.mxu0 }
 0x608   : > { %v1488_v17 = vadd.f32 %v4456_v21, %v1483_v24 }
 0x609   : > { %v4767_v26 = vpop.f32.mrf.mxu1  ;;  %v4773_v28 = vpop.f32.mrf.mxu0 }
 0x60a   : > { %v1490_v29 = vadd.f32 %v1488_v17, %v5957_v3  ;;  %v5196_v3 = vld [vmem:[%s6635_s8 + $0x8] sm:$0xff]  }
 0x60b   : > { %4775 = vmatpush3.bf16.msra.mxu1 %v5196_v3 }
 0x60c   : > { %v1491_v31 = vsel %vm793_vm1, %v1490_v29, 0.0  ;;  %4776 = vmatprep.subr.bf16.mxu1 %v5590_v1  ;;  %v1639_v55 = vpop.f32.mrf.mxu0 }
 0x60d   : > { %1492 = vadd.xlane.f32.xlu1 %v1491_v31  ;;  %v1640_v56 = vadd.f32 %v4461_v27, %v1639_v55 }
 0x60e   : > { %v4788_v57 = vpop.f32.mrf.mxu0 }
 0x60f   : > { %4777 = vmatpush3.bf16.msra.mxu1 %v5197_v41  ;;  %v6134_v58 = vpack.c.bf16 %v1640_v56, %v1640_v56 }
 0x610   : > { %4790 = vmatprep.subr.bf16.mxu1 %v5590_v1  ;;  %v1642_v59 = vpop.f32.mrf.mxu0 }
 0x611   : > { %v1682_v60 = vsel %vm859_vm2, %v6134_v58, 0 }
 0x612   : > { %v4789_v61 = vpop.f32.mrf.mxu0 }
 0x696   : > { %v1493_v32 = vpop.xlane.xlu1 %1492 }
 0x697   : > { %v1495_v33 = vmul.f32 0.03125, %v1493_v32 }
 0x699   : > { %v1496_v34 = vsub.f32 %v1490_v29, %v1495_v33 }
 0x69b   : > { %v1497_v35 = vmul.f32 %v1496_v34, %v1496_v34 }
 0x69d   : > { %v1498_v36 = vsel %vm793_vm1, %v1497_v35, 0.0 }
 0x69e   : > { %1499 = vadd.xlane.f32.xlu0 %v1498_v36 }
 0x6b4   : > { %1661 = vrot.lane.b32.xlu0 %v1640_v56, %s5593_s29 }
 0x6b8   : > { %1667 = vrot.lane.b32.xlu0 %v1640_v56, %s5592_s6 }
 0x727   : > { %v1500_v42 = vpop.xlane.xlu0 %1499 }
 0x728   : > { %v1501_v43 = vmul.f32 0.03125, %v1500_v42 }
 0x72a   : > { %v1502_v44 = vadd.f32 1e-05, %v1501_v43 }
 0x72b   : > { %v1662_v62 = vpop.permute.xlu0 %1661 }
 0x72c   : > { %5232 = vrsqrt.f32 %v1502_v44  ;;  %v6140_v63 = vpack.c.bf16 %v1662_v62, %v1662_v62 }
 0x72e   : > { %v1728_v0 = vsel %vm859_vm2, %v6140_v63, 0 }
 0x72f   : > { %4797 = vmatpush3.bf16.xpose.msra.mxu0 %v1728_v0  ;;  %v1668_v11 = vpop.permute.xlu0 %1667 }
 0x730   : > { %4808 = vmatprep.subr.bf16.mxu0 %v5590_v1  ;;  %v6155_v12 = vpack.c.bf16 %v1668_v11, %v1668_v11 }
 0x732   : > { %v1820_v15 = vsel %vm859_vm2, %v6155_v12, 0 }
 0x739   : > { %v5233_v49 = vpop.eup %5232 }
 0x73a   : > { %v1504_v50 = vmul.f32 %v5233_v49, %v1496_v34 }
 0x73c   : > { %v1509_v52 = vmul.f32 %v1508_v48, %v1504_v50 }
 0x73e   : > { %v6123_v53 = vadd.f32 %v1513_v51, %v1509_v52 }
 0x740   : > { %v1519_v54 = vpack.c.bf16 %v6123_v53, %v6123_v53 }
 0x742   : > { %4779 = vmatmul.mubr.msk.bf16.vlgmr.msra.gmra.mxu1 %vm793_vm1, %v1519_v54 }
 0x743   : > { %4792 = vmatprep.mubr.msk.bf16.mxu1 %vm5591_vm0, %v5590_v1  ;;  %4791 = vmatpush3.bf16.xpose.msra.mxu1 %v1682_v60 }
 0x744   : > { %4802 = vmatprep.subr.bf16.mxu1 %v5590_v1 }
 0x802   : > { %v1574_v5 = vpop.f32.mrf.mxu1 }
 0x803   : > { %v1575_v6 = vadd.f32 %v4457_v2, %v1574_v5 }
 0x804   : > { %v4780_v7 = vpop.f32.mrf.mxu1 }
 0x805   : > { %v1670_v8 = vpack.c.bf16 %v1575_v6, %v1575_v6  ;;  %1657 = vrot.lane.b32.xlu0 %v1575_v6, %s5592_s6  ;;  %1651 = vrot.lane.b32.xlu1 %v1575_v6, %s5593_s29 }
 0x806   : > { %v1577_v9 = vpop.f32.mrf.mxu1 }
 0x807   : > { %4793 = vmatmul.mubr.msk.bf16.vlgmr.msra.gmra.mxu1 %vm859_vm2, %v1670_v8 }
 0x808   : > { %v4781_v10 = vpop.f32.mrf.mxu1  ;;  %4804 = vmatprep.mubr.msk.bf16.mxu1 %vm5591_vm0, %v5590_v1 }
 0x809   : > { %1664 = vrot.lane.b32.xlu1 %v1640_v56, %s5594_s27 }
 0x80d   : > { %1654 = vrot.lane.b32.xlu1 %v1575_v6, %s5594_s27 }
 0x877   : > { %v1652_v13 = vpop.permute.xlu1 %1651  ;;  %v1658_v20 = vpop.permute.xlu0 %1657 }
 0x878   : > { %v1671_v14 = vpack.c.bf16 %v1652_v13, %v1652_v13  ;;  %v1673_v22 = vpack.c.bf16 %v1658_v20, %v1658_v20 }
 0x87a   : > { %4799 = vmatmul.mubr.msk.bf16.vlgmr.msra.gmra.mxu0 %vm859_vm2, %v1671_v14 }
 0x87b   : > { %4809 = vmatpush3.bf16.xpose.msra.mxu0 %v1820_v15  ;;  %v1665_v16 = vpop.permute.xlu1 %1664  ;;  %4810 = vmatprep.mubr.msk.bf16.mxu0 %vm5591_vm0, %v5590_v1 }
 0x87c   : > { %v6162_v19 = vpack.c.bf16 %v1665_v16, %v1665_v16  ;;  %4820 = vmatprep.subr.bf16.mxu0 %v5590_v1 }
 0x87e   : > { %v1774_v21 = vsel %vm859_vm2, %v6162_v19, 0 }
 0x87f   : > { %4803 = vmatpush3.bf16.xpose.msra.mxu1 %v1774_v21  ;;  %v1655_v23 = vpop.permute.xlu1 %1654 }
 0x880   : > { %4814 = vmatprep.subr.bf16.mxu1 %v5590_v1  ;;  %v1672_v24 = vpack.c.bf16 %v1655_v23, %v1655_v23 }
 0x882   : > { %4811 = vmatmul.mubr.msk.bf16.vlgmr.msra.gmra.mxu0 %vm859_vm2, %v1673_v22 }
 0x883   : > { %4822 = vmatprep.mubr.msk.bf16.mxu0 %vm5591_vm0, %v5590_v1 }
 0x886   : > { %4805 = vmatmul.mubr.msk.bf16.vlgmr.msra.gmra.mxu1 %vm859_vm2, %v1672_v24 }
 0x887   : > { %4816 = vmatprep.mubr.msk.bf16.mxu1 %vm5591_vm0, %v5590_v1 }
 0x8c7   : > { %v1718_v18 = vpop.f32.mrf.mxu1 }
 0x8c8   : > { %v1862_v25 = vsel %vm859_vm2, %v1718_v18, -inf }
 0x8c9   : > { %1863 = vmax.xlane.f32.xlu1 %v1862_v25  ;;  %v4794_v17 = vpop.f32.mrf.mxu1 }
 0x8ca   : > { %v1645_v17 = vld [vmem:[#allocation13] sm:$0xf] }
 0x8cb   : > { %v1721_v26 = vpop.f32.mrf.mxu1 }
 0x8cd   : > { %v4795_v28 = vpop.f32.mrf.mxu1 }
 0x93a   : > { %v1764_v29 = vpop.f32.mrf.mxu0 }
 0x93b   : > { %v1865_v31 = vsel %vm859_vm2, %v1764_v29, -inf }
 0x93c   : > { %1866 = vmax.xlane.f32.xlu0 %v1865_v31  ;;  %v4800_v32 = vpop.f32.mrf.mxu0 }
 0x93e   : > { %v1767_v33 = vpop.f32.mrf.mxu0 }
 0x940   : > { %v4801_v34 = vpop.f32.mrf.mxu0 }
 0x941   : > { %v1646_v34 = vld [vmem:[#allocation13 + $0x4] sm:$0xf] }
 0x942   : > { %v1856_v35 = vpop.f32.mrf.mxu0 }
 0x943   : > { %v1871_v36 = vsel %vm859_vm2, %v1856_v35, -inf }
 0x944   : > { %v4812_v37 = vpop.f32.mrf.mxu0  ;;  %1872 = vmax.xlane.f32.xlu1 %v1871_v36  ;;  %v1648_v36 = vld [vmem:[#allocation13 + $0xc] sm:$0xf] }
 0x946   : > { %v1810_v38 = vpop.f32.mrf.mxu1  ;;  %v1859_v39 = vpop.f32.mrf.mxu0 }
 0x947   : > { %v1868_v3 = vsel %vm859_vm2, %v1810_v38, -inf  ;;  %v2253_v39 = vsel %vm1106_vm4, %v1648_v36, 0 }
 0x948   : > { %v4813_v41 = vpop.f32.mrf.mxu0  ;;  %1869 = vmax.xlane.f32.xlu0 %v1868_v3  ;;  %v4806_v42 = vpop.f32.mrf.mxu1 }
 0x94a   : > { %v1813_v43 = vpop.f32.mrf.mxu1 }
 0x94b   : > { %v1647_v43 = vld [vmem:[#allocation13 + $0x8] sm:$0xf] }
 0x94c   : > { %v4807_v44 = vpop.f32.mrf.mxu1 }
 0x952   : > { %v1864_v46 = vpop.xlane.xlu1 %1863 }
 0x953   : > { %v1874_v48 = vsub.f32 %v1718_v18, %v1864_v46 }
 0x955   : > { %v1878_v49 = vmul.f32 1.442695, %v1874_v48  ;;  %1960 = vrot.lane.b32.xlu1 %v6140_v63, %s5595_s25  ;;  %v2205_v48 = vsel %vm1106_vm4, %v1647_v43, 0 }
 0x957   : > { %5234 = vpow2.f32 %v1878_v49 }
 0x964   : > { %v5235_v50 = vpop.eup %5234 }
 0x965   : > { %v1886_v51 = vsel %vm859_vm2, %v5235_v50, 0.0 }
 0x966   : > { %1887 = vadd.xlane.f32.xlu0 %v1886_v51 }
 0x97c   : > { %1911 = vrot.lane.b32.xlu0 %v6134_v58, %s5595_s25 }
 0x9c5   : > { %v1867_v52 = vpop.xlane.xlu0 %1866 }
 0x9c6   : > { %v1875_v54 = vsub.f32 %v1764_v29, %v1867_v52  ;;  %v2158_v29 = vsel %vm1106_vm4, %v1645_v17, 0 }
 0x9c8   : > { %v1880_v27 = vmul.f32 1.442695, %v1875_v54 }
 0x9ca   : > { %5236 = vpow2.f32 %v1880_v27 }
 0x9cd   : > { %v1873_v55 = vpop.xlane.xlu1 %1872 }
 0x9ce   : > { %v1877_v56 = vsub.f32 %v1856_v35, %v1873_v55  ;;  %v2112_v35 = vsel %vm1106_vm4, %v1646_v34, 0 }
 0x9d0   : > { %v1884_v57 = vmul.f32 1.442695, %v1877_v56 }
 0x9d1   : > { %v1961_v59 = vpop.permute.xlu1 %1960  ;;  %v1870_v60 = vpop.xlane.xlu0 %1869 }
 0x9d2   : > { %5238 = vpow2.f32 %v1884_v57  ;;  %v1966_v61 = vsel %vm1106_vm4, %v1961_v59, 0  ;;  %v1876_v62 = vsub.f32 %v1810_v38, %v1870_v60 }
 0x9d3   : > { %4821 = vmatpush3.bf16.msra.mxu0 %v1966_v61 }
 0x9d4   : > { %v1882_v63 = vmul.f32 1.442695, %v1876_v62  ;;  %4832 = vmatprep.subr.bf16.mxu0 %v5590_v1 }
 0x9d6   : > { %5240 = vpow2.f32 %v1882_v63 }
 0x9d7   : > { %v5237_v0 = vpop.eup %5236 }
 0x9d8   : > { %v1889_v58 = vsel %vm859_vm2, %v5237_v0, 0.0 }
 0x9d9   : > { %1890 = vadd.xlane.f32.xlu1 %v1889_v58 }
 0x9df   : > { %v5239_v2 = vpop.eup %5238 }
 0x9e0   : > { %v1895_v5 = vsel %vm859_vm2, %v5239_v2, 0.0 }
 0x9e1   : > { %1896 = vadd.xlane.f32.xlu1 %v1895_v5 }
 0x9e3   : > { %v5241_v6 = vpop.eup %5240 }
 0x9e4   : > { %v1892_v7 = vsel %vm859_vm2, %v5241_v6, 0.0 }
 0x9e5   : > { %1893 = vadd.xlane.f32.xlu0 %v1892_v7 }
 0x9ef   : > { %v1888_v8 = vpop.xlane.xlu0 %1887 }
 0x9f0   : > { %5242 = vrcp.f32 %v1888_v8 }
 0x9f2   : > { %2009 = vrot.lane.b32.xlu1 %v6162_v19, %s5595_s25 }
 0x9f3   : > { %v1912_v9 = vpop.permute.xlu0 %1911 }
 0x9f4   : > { %v1917_v10 = vsel %vm1106_vm4, %v1912_v9, 0 }
 0x9f5   : > { %4815 = vmatpush3.bf16.msra.mxu1 %v1917_v10 }
 0x9f6   : > { %4826 = vmatprep.subr.bf16.mxu1 %v5590_v1 }
 0x9fb   : > { %2058 = vrot.lane.b32.xlu0 %v6155_v12, %s5595_s25 }
 0x9fd   : > { %v5243_v11 = vpop.eup %5242 }
 0x9fe   : > { %v1902_v13 = vmul.f32 %v5243_v11, %v5235_v50 }
 0xa00   : > { %v1906_v14 = vpack.c.bf16 %v1902_v13, %v1902_v13 }
 0xa02   : > { %4817 = vmatmul.mubr.msk.bf16.vlgmr.msra.gmra.mxu1 %vm859_vm2, %v1906_v14 }
 0xa03   : > { %4828 = vmatprep.mubr.msk.bf16.mxu1 %vm5591_vm0, %v5590_v1 }
 0xa62   : > { %v1891_v15 = vpop.xlane.xlu1 %1890 }
 0xa63   : > { %5244 = vrcp.f32 %v1891_v15 }
 0xa6a   : > { %v1897_v16 = vpop.xlane.xlu1 %1896 }
 0xa6b   : > { %5246 = vrcp.f32 %v1897_v16 }
 0xa6e   : > { %v2010_v19 = vpop.permute.xlu1 %2009  ;;  %v1894_v20 = vpop.xlane.xlu0 %1893 }
 0xa6f   : > { %v2015_v21 = vsel %vm1106_vm4, %v2010_v19, 0  ;;  %5248 = vrcp.f32 %v1894_v20  ;;  %v4477_v20 = vld [vmem:[%s6640_s13] ss:$0 sm:$0xff] }
 0xa70   : > { %v5245_v22 = vpop.eup %5244  ;;  %4827 = vmatpush3.bf16.msra.mxu1 %v2015_v21 }
 0xa71   : > { %v1903_v12 = vmul.f32 %v5245_v22, %v5237_v0  ;;  %4838 = vmatprep.subr.bf16.mxu1 %v5590_v1 }
 0xa72   : > { %v2059_v23 = vpop.permute.xlu0 %2058 }
 0xa73   : > { %v2064_v24 = vsel %vm1106_vm4, %v2059_v23, 0  ;;  %v1907_v18 = vpack.c.bf16 %v1903_v12, %v1903_v12 }
 0xa75   : > { %4823 = vmatmul.mubr.msk.bf16.vlgmr.msra.gmra.mxu0 %vm859_vm2, %v1907_v18 }
 0xa76   : > { %4833 = vmatpush3.bf16.msra.mxu0 %v2064_v24  ;;  %4834 = vmatprep.mubr.msk.bf16.mxu0 %vm5591_vm0, %v5590_v1 }
 0xa77   : > { %4844 = vmatprep.subr.bf16.mxu0 %v5590_v1 }
 0xa78   : > { %v5247_v25 = vpop.eup %5246 }
 0xa79   : > { %v1905_v26 = vmul.f32 %v5247_v25, %v5239_v2 }
 0xa7b   : > { %v1909_v28 = vpack.c.bf16 %v1905_v26, %v1905_v26 }
 0xa7c   : > { %v5249_v31 = vpop.eup %5248 }
 0xa7d   : > { %4835 = vmatmul.mubr.msk.bf16.vlgmr.msra.gmra.mxu0 %vm859_vm2, %v1909_v28  ;;  %v1904_v32 = vmul.f32 %v5249_v31, %v5241_v6  ;;  %v5198_v31 = vld [vmem:[#allocation15 + $0x8] sm:$0xff]  }
 0xa7e   : > { %4845 = vmatpush3.bf16.msra.mxu0 %v2158_v29  ;;  %4846 = vmatprep.mubr.msk.bf16.mxu0 %vm5591_vm0, %v5590_v1 }
 0xa7f   : > { %v1908_v33 = vpack.c.bf16 %v1904_v32, %v1904_v32  ;;  %4856 = vmatprep.subr.bf16.mxu0 %v5590_v1  ;;  %v5199_v32 = vld [vmem:[#allocation15] sm:$0xff]  }
 0xa81   : > { %4829 = vmatmul.mubr.msk.bf16.vlgmr.msra.gmra.mxu1 %vm859_vm2, %v1908_v33 }
 0xa82   : > { %4840 = vmatprep.mubr.msk.bf16.mxu1 %vm5591_vm0, %v5590_v1  ;;  %4839 = vmatpush3.bf16.msra.mxu1 %v2112_v35  ;;  %v2301_v35 = vld [vmem:[%s6714_s17] sm:$0x3] }
 0xa83   : > { %4850 = vmatprep.subr.bf16.mxu1 %v5590_v1  ;;  %v2319_v36 = vrot.slane %v2301_v35, %v6113_v45 }
 0xac2   : > { %v1953_v37 = vpop.f32.mrf.mxu1 }
 0xac3   : > { %v2106_v38 = vpack.c.bf16 %v1953_v37, %v1953_v37 }
 0xac4   : > { %v4818_v3 = vpop.f32.mrf.mxu1 }
 0xac5   : > { %4847 = vmatmul.mubr.msk.bf16.vlgmr.msra.gmra.mxu0 %vm859_vm2, %v2106_v38 }
 0xac6   : > { %v1956_v41 = vpop.f32.mrf.mxu1  ;;  %4857 = vmatpush3.bf16.msra.mxu0 %v2253_v39  ;;  %4858 = vmatprep.mubr.msk.bf16.mxu0 %vm5591_vm0, %v5590_v1  ;;  %v2324_v39 = vrot.slane %v2301_v35, %v6119_v47 }
 0xac7   : > { %4870 = vmatprep.subr.bf16.mxu0 %v5590_v1 }
 0xac8   : > { %v4819_v42 = vpop.f32.mrf.mxu1 }
 0xac9   : > { %v5200_v42 = vld [vmem:[%s6713_s21 + $0x18] sm:$0xff]  }
 0xb35   : > { %v2002_v44 = vpop.f32.mrf.mxu0 }
 0xb36   : > { %v2107_v46 = vpack.c.bf16 %v2002_v44, %v2002_v44  ;;  %v5201_v44 = vld [vmem:[%s6713_s21 + $0x10] sm:$0xff]  }
 0xb37   : > { %v4824_v49 = vpop.f32.mrf.mxu0 }
 0xb38   : > { %4841 = vmatmul.mubr.msk.bf16.vlgmr.msra.gmra.mxu1 %vm859_vm2, %v2107_v46  ;;  %v5202_v46 = vld [vmem:[%s6715_s2 + $0x18] sm:$0xff]   ;;  %v5204_v49 = vld [vmem:[%s6715_s2 + $0x8] sm:$0xff]  }
 0xb39   : > { %v2005_v50 = vpop.f32.mrf.mxu0  ;;  %4851 = vmatpush3.bf16.msra.mxu1 %v2205_v48  ;;  %4852 = vmatprep.mubr.msk.bf16.mxu1 %vm5591_vm0, %v5590_v1  ;;  %v5203_v48 = vld [vmem:[%s6715_s2 + $0x10] sm:$0xff]  }
 0xb3a   : > { %4862 = vmatprep.subr.bf16.mxu1 %v5590_v1  ;;  %v4478_v50 = vld [vmem:[%s6716_s30] ss:$0 sm:$0xff] }
 0xb3b   : > { %v4825_v51 = vpop.f32.mrf.mxu0 }
 0xb3d   : > { %v2100_v52 = vpop.f32.mrf.mxu0 }
 0xb3e   : > { %v2248_v54 = vpack.c.bf16 %v2100_v52, %v2100_v52 }
 0xb3f   : > { %v4836_v27 = vpop.f32.mrf.mxu0 }
 0xb40   : > { %4859 = vmatmul.mubr.msk.bf16.vlgmr.msra.gmra.mxu0 %vm859_vm2, %v2248_v54 }
 0xb41   : > { %v2051_v55 = vpop.f32.mrf.mxu1  ;;  %v2103_v56 = vpop.f32.mrf.mxu0  ;;  %4878 = vmatprep.mubr.msk.bf16.mxu0 %vm5591_vm0, %v5590_v1  ;;  %4871 = vmatpush3.bf16.msra.mxu0 %v5202_v46 }
 0xb42   : > { %v2200_v57 = vpack.c.bf16 %v2051_v55, %v2051_v55  ;;  %4872 = vmatprep.subr.bf16.mxu0 %v5590_v1 }
 0xb43   : > { %v4830_v59 = vpop.f32.mrf.mxu1  ;;  %v4837_v60 = vpop.f32.mrf.mxu0 }
 0xb44   : > { %4853 = vmatmul.mubr.msk.bf16.vlgmr.msra.gmra.mxu1 %vm859_vm2, %v2200_v57  ;;  %v4493_v59 = vld [vmem:[#allocation9 + $0x1] ss:$0 sm:$0xff] }
 0xb45   : > { %v2054_v61 = vpop.f32.mrf.mxu1  ;;  %4866 = vmatprep.mubr.msk.bf16.mxu1 %vm5591_vm0, %v5590_v1  ;;  %4863 = vmatpush3.bf16.msra.mxu1 %v5198_v31 }
 0xb46   : > { %4864 = vmatprep.subr.bf16.mxu1 %v5590_v1  ;;  %4873 = vmatpush3.bf16.msra.mxu0 %v5203_v48 }
 0xb47   : > { %v4831_v62 = vpop.f32.mrf.mxu1  ;;  %4874 = vmatprep.subr.bf16.mxu0 %v5590_v1 }
 0xb49   : > { %4865 = vmatpush3.bf16.msra.mxu1 %v5199_v32 }
 0xb4a   : > { %4882 = vmatprep.subr.bf16.mxu1 %v5590_v1  ;;  %4875 = vmatpush3.bf16.msra.mxu0 %v5204_v49 }
 0xb4b   : > { %4876 = vmatprep.subr.bf16.mxu0 %v5590_v1 }
 0xb85   : > { %v2194_v63 = vpop.f32.mrf.mxu0 }
 0xb87   : > { %v4848_v0 = vpop.f32.mrf.mxu0 }
 0xb89   : > { %v2197_v58 = vpop.f32.mrf.mxu0 }
 0xb8b   : > { %v4849_v2 = vpop.f32.mrf.mxu0 }
 0xbf8   : > { %v2148_v5 = vpop.f32.mrf.mxu1 }
 0xbf9   : > { %v2195_v11 = vadd.f32 %v2194_v63, %v2148_v5 }
 0xbfa   : > { %v4842_v6 = vpop.f32.mrf.mxu1 }
 0xbfc   : > { %v2151_v7 = vpop.f32.mrf.mxu1 }
 0xbfe   : > { %v4843_v8 = vpop.f32.mrf.mxu1 }
 0xc00   : > { %v2289_v9 = vpop.f32.mrf.mxu0 }
 0xc02   : > { %v4860_v10 = vpop.f32.mrf.mxu0 }
 0xc04   : > { %v2241_v13 = vpop.f32.mrf.mxu1  ;;  %v2292_v14 = vpop.f32.mrf.mxu0 }
 0xc05   : > { %v2247_v15 = vadd.f32 %v2241_v13, %v2195_v11 }
 0xc06   : > { %v4854_v16 = vpop.f32.mrf.mxu1  ;;  %v4861_v19 = vpop.f32.mrf.mxu0 }
 0xc07   : > { %v2295_v21 = vadd.f32 %v2289_v9, %v2247_v15 }
 0xc08   : > { %v2244_v22 = vpop.f32.mrf.mxu1 }
 0xc09   : > { %v2300_v12 = vadd.f32 %v4477_v20, %v2295_v21 }
 0xc0a   : > { %v4855_v23 = vpop.f32.mrf.mxu1 }
 0xc0b   : > { %v2302_v24 = vadd.f32 %v2300_v12, %v6123_v53 }
 0xc0d   : > { %v2303_v18 = vsel %vm793_vm1, %v2302_v24, 0.0 }
 0xc0e   : > { %2304 = vadd.xlane.f32.xlu1 %v2303_v18 }
 0xc97   : > { %v2305_v25 = vpop.xlane.xlu1 %2304 }
 0xc98   : > { %v2306_v17 = vmul.f32 0.03125, %v2305_v25 }
 0xc9a   : > { %v2307_v26 = vsub.f32 %v2302_v24, %v2306_v17 }
 0xc9c   : > { %v2308_v28 = vmul.f32 %v2307_v26, %v2307_v26 }
 0xc9e   : > { %v2309_v29 = vsel %vm793_vm1, %v2308_v28, 0.0 }
 0xc9f   : > { %2310 = vadd.xlane.f32.xlu0 %v2309_v29 }
 0xd28   : > { %v2311_v33 = vpop.xlane.xlu0 %2310 }
 0xd29   : > { %v2312_v53 = vmul.f32 0.03125, %v2311_v33 }
 0xd2b   : > { %v2313_v34 = vadd.f32 1e-05, %v2312_v53 }
 0xd2d   : > { %5250 = vrsqrt.f32 %v2313_v34 }
 0xd3a   : > { %v5251_v37 = vpop.eup %5250 }
 0xd3b   : > { %v2315_v38 = vmul.f32 %v5251_v37, %v2307_v26 }
 0xd3d   : > { %v2320_v3 = vmul.f32 %v2319_v36, %v2315_v38 }
 0xd3f   : > { %v6243_v41 = vadd.f32 %v2324_v39, %v2320_v3 }
 0xd41   : > { %v2330_v43 = vpack.c.bf16 %v6243_v41, %v6243_v41 }
 0xd43   : > { %4867 = vmatmul.mubr.msk.bf16.vlgmr.msra.gmra.mxu1 %vm793_vm1, %v2330_v43 }
 0xd44   : > { %4883 = vmatpush3.bf16.msra.mxu1 %v5200_v42  ;;  %4886 = vmatprep.mubr.msk.bf16.mxu1 %vm5591_vm0, %v5590_v1 }
 0xd45   : > { %4884 = vmatprep.subr.bf16.mxu1 %v5590_v1 }
 0xd48   : > { %4885 = vmatpush3.bf16.msra.mxu1 %v5201_v44 }
 0xd49   : > { %4890 = vmatprep.subr.bf16.mxu1 %v5590_v1 }
 0xd4b   : > { %4887 = vmatmul.mubr.msk.bf16.vlgmr.msra.gmra.mxu1 %vm793_vm1, %v5964_v4  ;;  %v5205_v4 = vld [vmem:[%s6715_s2] sm:$0xff]  }
 0xd4c   : > { %4892 = vmatprep.mubr.msk.bf16.mxu1 %vm5591_vm0, %v5590_v1  ;;  %4877 = vmatpush3.bf16.msra.mxu0 %v5205_v4 }
 0xd4d   : > { %4896 = vmatprep.subr.bf16.mxu0 %v5590_v1 }
 0xe03   : > { %v2385_v51 = vpop.f32.mrf.mxu1 }
 0xe04   : > { %v2386_v52 = vadd.f32 %v4478_v50, %v2385_v51 }
 0xe05   : > { %v4868_v54 = vpop.f32.mrf.mxu1 }
 0xe06   : > { %v2392_v27 = vmul.f32 0.044715, %v2386_v52  ;;  %v2391_v8 = vmul.f32 0.5, %v2386_v52 }
 0xe07   : > { %v2388_v55 = vpop.f32.mrf.mxu1 }
 0xe08   : > { %v2393_v56 = vmul.f32 %v2392_v27, %v2386_v52 }
 0xe09   : > { %v4869_v57 = vpop.f32.mrf.mxu1 }
 0xe0a   : > { %v2394_v60 = vmul.f32 %v2393_v56, %v2386_v52 }
 0xe0b   : > { %v2568_v61 = vpop.f32.mrf.mxu1 }
 0xe0c   : > { %v2395_v62 = vadd.f32 %v2394_v60, %v2386_v52  ;;  %v2569_v63 = vadd.f32 %v4493_v59, %v2568_v61 }
 0xe0d   : > { %v4888_v0 = vpop.f32.mrf.mxu1 }
 0xe0e   : > { %v2396_v58 = vmul.f32 0.7978846, %v2395_v62  ;;  %2584 = vrot.lane.b32.xlu1 %v2569_v63, %s5594_s27  ;;  %2581 = vrot.lane.b32.xlu0 %v2569_v63, %s5593_s29  ;;  %v6283_v5 = vpack.c.bf16 %v2569_v63, %v2569_v63 }
 0xe0f   : > { %v2571_v2 = vpop.f32.mrf.mxu1 }
 0xe10   : > { %5252 = vtanh.f32 %v2396_v58 }
 0xe11   : > { %v4889_v6 = vpop.f32.mrf.mxu1 }
 0xe12   : > { %2587 = vrot.lane.b32.xlu1 %v2569_v63, %s5592_s6  ;;  %2595 = vrot.lane.b32.xlu0 %v6283_v5, %s5595_s25 }
 0xe1d   : > { %v5253_v7 = vpop.eup %5252 }
 0xe1e   : > { %v2398_v9 = vadd.f32 1.0, %v5253_v7 }
 0xe20   : > { %v2399_v10 = vmul.f32 %v2398_v9, %v2391_v8 }
 0xe22   : > { %v2408_v11 = vpack.c.bf16 %v2399_v10, %v2399_v10 }
 0xe24   : > { %4879 = vmatmul.mubr.msk.bf16.vlgmr.msra.gmra.mxu0 %vm2438_vm5, %v2408_v11 }
 0xe25   : > { %4898 = vmatprep.mubr.msk.bf16.mxu0 %vm5591_vm0, %v5590_v1 }
 0xe80   : > { %v2585_v13 = vpop.permute.xlu1 %2584  ;;  %v2582_v14 = vpop.permute.xlu0 %2581 }
 0xe81   : > { %v6291_v15 = vpack.c.bf16 %v2585_v13, %v2585_v13  ;;  %v6293_v16 = vpack.c.bf16 %v2582_v14, %v2582_v14 }
 0xe83   : > { %2644 = vrot.lane.b32.xlu1 %v6293_v16, %s5595_s25  ;;  %2693 = vrot.lane.b32.xlu0 %v6291_v15, %s5595_s25 }
 0xe84   : > { %v2588_v19 = vpop.permute.xlu1 %2587  ;;  %v2596_v20 = vpop.permute.xlu0 %2595 }
 0xe85   : > { %v6299_v21 = vpack.c.bf16 %v2588_v19, %v2588_v19  ;;  %v2601_v22 = vsel %vm859_vm2, %v2596_v20, 0 }
 0xe86   : > { %4891 = vmatpush3.bf16.xpose.msra.mxu1 %v2601_v22 }
 0xe87   : > { %2742 = vrot.lane.b32.xlu1 %v6299_v21, %s5595_s25  ;;  %4902 = vmatprep.subr.bf16.mxu1 %v5590_v1 }
 0xe8d   : > { %4893 = vmatmul.mubr.msk.bf16.vlgmr.msra.gmra.mxu1 %vm859_vm2, %v6283_v5 }
 0xe8e   : > { %4904 = vmatprep.mubr.msk.bf16.mxu1 %vm5591_vm0, %v5590_v1 }
 0xee4   : > { %v6309_v12 = vpop.f32.mrf.mxu0 }
 0xee6   : > { %v4880_v23 = vpop.f32.mrf.mxu0 }
 0xee8   : > { %v2479_v24 = vpop.f32.mrf.mxu0 }
 0xeea   : > { %v4881_v18 = vpop.f32.mrf.mxu0 }
 0xef5   : > { %v2645_v25 = vpop.permute.xlu1 %2644  ;;  %v2694_v17 = vpop.permute.xlu0 %2693 }
 0xef6   : > { %v2650_v26 = vsel %vm859_vm2, %v2645_v25, 0  ;;  %v2699_v28 = vsel %vm859_vm2, %v2694_v17, 0 }
 0xef7   : > { %4897 = vmatpush3.bf16.xpose.msra.mxu0 %v2650_v26  ;;  %4903 = vmatpush3.bf16.xpose.msra.mxu1 %v2699_v28 }
 0xef8   : > { %4908 = vmatprep.subr.bf16.mxu0 %v5590_v1  ;;  %4914 = vmatprep.subr.bf16.mxu1 %v5590_v1 }
 0xef9   : > { %v2743_v29 = vpop.permute.xlu1 %2742 }
 0xefa   : > { %v2748_v31 = vsel %vm859_vm2, %v2743_v29, 0 }
 0xefe   : > { %4899 = vmatmul.mubr.msk.bf16.vlgmr.msra.gmra.mxu0 %vm859_vm2, %v6293_v16  ;;  %4905 = vmatmul.mubr.msk.bf16.vlgmr.msra.gmra.mxu1 %vm859_vm2, %v6291_v15 }
 0xeff   : > { %4909 = vmatpush3.bf16.xpose.msra.mxu0 %v2748_v31  ;;  %4910 = vmatprep.mubr.msk.bf16.mxu0 %vm5591_vm0, %v5590_v1 }
 0xf00   : > { %4916 = vmatprep.mubr.msk.bf16.mxu1 %vm5591_vm0, %v5590_v1  ;;  %4920 = vmatprep.subr.bf16.mxu0 %v5590_v1 }
 0xf06   : > { %4911 = vmatmul.mubr.msk.bf16.vlgmr.msra.gmra.mxu0 %vm859_vm2, %v6299_v21 }
 0xf07   : > { %4922 = vmatprep.mubr.msk.bf16.mxu0 %vm5591_vm0, %v5590_v1 }
 0xf4d   : > { %v2637_v32 = vpop.f32.mrf.mxu1 }
 0xf4e   : > { %v2638_v33 = vadd.f32 %v2637_v32, %v6017_v30 }
 0xf4f   : > { %v4894_v53 = vpop.f32.mrf.mxu1 }
 0xf50   : > { %v2790_v34 = vsel %vm859_vm2, %v2638_v33, -inf }
 0xf51   : > { %2791 = vmax.xlane.f32.xlu0 %v2790_v34  ;;  %v2640_v35 = vpop.f32.mrf.mxu1 }
 0xf53   : > { %v4895_v36 = vpop.f32.mrf.mxu1 }
 0xfbe   : > { %v2686_v37 = vpop.f32.mrf.mxu0  ;;  %v2735_v38 = vpop.f32.mrf.mxu1 }
 0xfbf   : > { %v2687_v39 = vadd.f32 %v2686_v37, %v6017_v30  ;;  %v2736_v3 = vadd.f32 %v2735_v38, %v6017_v30 }
 0xfc0   : > { %v4900_v42 = vpop.f32.mrf.mxu0  ;;  %v4906_v43 = vpop.f32.mrf.mxu1 }
 0xfc1   : > { %v2793_v44 = vsel %vm859_vm2, %v2687_v39, -inf  ;;  %v2796_v46 = vsel %vm859_vm2, %v2736_v3, -inf }
 0xfc2   : > { %2794 = vmax.xlane.f32.xlu1 %v2793_v44  ;;  %v2689_v48 = vpop.f32.mrf.mxu0  ;;  %2797 = vmax.xlane.f32.xlu0 %v2796_v46  ;;  %v2738_v49 = vpop.f32.mrf.mxu1  ;;  %v4498_v44 = vld [vmem:[%s6632_s5 + $0x14] sm:$0xf] }
 0xfc3   : > { %v3036_v46 = vsel %vm1106_vm4, %v4498_v44, 0  ;;  %v4500_v48 = vld [vmem:[%s6632_s5 + $0x1c] sm:$0xf]  ;;  %v5209_v44 = vld [vmem:[%s6635_s8 + $0x10] sm:$0xff]  }
 0xfc4   : > { %v4901_v4 = vpop.f32.mrf.mxu0  ;;  %v4907_v50 = vpop.f32.mrf.mxu1 }
 0xfc5   : > { %v3177_v50 = vsel %vm1106_vm4, %v4500_v48, 0 }
 0xfc6   : > { %v2784_v51 = vpop.f32.mrf.mxu0 }
 0xfc7   : > { %v2785_v52 = vadd.f32 %v2784_v51, %v6017_v30 }
 0xfc8   : > { %v4912_v54 = vpop.f32.mrf.mxu0 }
 0xfc9   : > { %v2799_v27 = vsel %vm859_vm2, %v2785_v52, -inf }
 0xfca   : > { %v2787_v55 = vpop.f32.mrf.mxu0  ;;  %2800 = vmax.xlane.f32.xlu0 %v2799_v27  ;;  %v4499_v27 = vld [vmem:[%s6632_s5 + $0x18] sm:$0xf] }
 0xfcc   : > { %v4913_v56 = vpop.f32.mrf.mxu0 }
 0xfd3   : > { %2838 = vrot.lane.b32.xlu1 %v6283_v5, %s5597_s28 }
 0xfda   : > { %v2792_v57 = vpop.xlane.xlu0 %2791 }
 0xfdb   : > { %v2802_v59 = vsub.f32 %v2638_v33, %v2792_v57 }
 0xfdd   : > { %v2806_v60 = vmul.f32 1.442695, %v2802_v59  ;;  %v3129_v59 = vsel %vm1106_vm4, %v4499_v27, 0 }
 0xfdf   : > { %5254 = vpow2.f32 %v2806_v60 }
 0xfec   : > { %v5255_v61 = vpop.eup %5254 }
 0xfed   : > { %v2814_v62 = vsel %vm859_vm2, %v5255_v61, 0.0 }
 0xff7   : > { %2815 = vadd.xlane.f32.xlu1 %v2814_v62 }
0x104b   : > { %v2795_v63 = vpop.xlane.xlu1 %2794  ;;  %v2798_v0 = vpop.xlane.xlu0 %2797 }
0x104c   : > { %v2803_v30 = vsub.f32 %v2687_v39, %v2795_v63  ;;  %v2804_v58 = vsub.f32 %v2736_v3, %v2798_v0  ;;  %v4497_v39 = vld [vmem:[%s6632_s5 + $0x10] sm:$0xf] }
0x104d   : > { %v3082_v43 = vsel %vm1106_vm4, %v4497_v39, 0 }
0x104e   : > { %v2808_v2 = vmul.f32 1.442695, %v2803_v30  ;;  %v2810_v6 = vmul.f32 1.442695, %v2804_v58 }
0x104f   : > { %v2839_v7 = vpop.permute.xlu1 %2838 }
0x1050   : > { %5256 = vpow2.f32 %v2808_v2  ;;  %v2844_v8 = vsel %vm1106_vm4, %v2839_v7, 0 }
0x1051   : > { %5258 = vpow2.f32 %v2810_v6  ;;  %4915 = vmatpush3.bf16.msra.mxu1 %v2844_v8 }
0x1052   : > { %4926 = vmatprep.subr.bf16.mxu1 %v5590_v1 }
0x1053   : > { %v2801_v5 = vpop.xlane.xlu0 %2800 }
0x1054   : > { %v2805_v9 = vsub.f32 %v2785_v52, %v2801_v5 }
0x1056   : > { %v2812_v10 = vmul.f32 1.442695, %v2805_v9 }
0x1058   : > { %5260 = vpow2.f32 %v2812_v10 }
0x105d   : > { %v5257_v11 = vpop.eup %5256 }
0x105e   : > { %v5259_v13 = vpop.eup %5258  ;;  %v2817_v14 = vsel %vm859_vm2, %v5257_v11, 0.0 }
0x105f   : > { %2818 = vadd.xlane.f32.xlu0 %v2817_v14  ;;  %v2820_v19 = vsel %vm859_vm2, %v5259_v13, 0.0 }
0x1060   : > { %2821 = vadd.xlane.f32.xlu1 %v2820_v19 }
0x1065   : > { %v5261_v20 = vpop.eup %5260 }
0x1066   : > { %v2823_v22 = vsel %vm859_vm2, %v5261_v20, 0.0 }
0x1067   : > { %2824 = vadd.xlane.f32.xlu0 %v2823_v22 }
0x1071   : > { %2934 = vrot.lane.b32.xlu1 %v6291_v15, %s5597_s28 }
0x1075   : > { %2982 = vrot.lane.b32.xlu1 %v6299_v21, %s5597_s28 }
0x107d   : > { %2886 = vrot.lane.b32.xlu0 %v6293_v16, %s5597_s28  ;;  %s6719_s28 = sld [smem:[#allocation41_spill]] }
0x1080   : > { %v2816_v23 = vpop.xlane.xlu1 %2815 }
0x1081   : > { %5262 = vrcp.f32 %v2816_v23 }
0x108e   : > { %v5263_v24 = vpop.eup %5262 }
0x108f   : > { %v2830_v18 = vmul.f32 %v5263_v24, %v5255_v61 }
0x1091   : > { %v2834_v25 = vpack.c.bf16 %v2830_v18, %v2830_v18 }
0x1093   : > { %4917 = vmatmul.mubr.msk.bf16.vlgmr.msra.gmra.mxu1 %vm859_vm2, %v2834_v25 }
0x1094   : > { %4928 = vmatprep.mubr.msk.bf16.mxu1 %vm5591_vm0, %v5590_v1 }
0x10e8   : > { %v2819_v17 = vpop.xlane.xlu0 %2818 }
0x10e9   : > { %v2822_v26 = vpop.xlane.xlu1 %2821  ;;  %5264 = vrcp.f32 %v2819_v17  ;;  %v4513_v17 = vld [vmem:[#allocation10 + $0x1] ss:$0 sm:$0xff] }
0x10ea   : > { %5266 = vrcp.f32 %v2822_v26 }
0x10ed   : > { %v2935_v15 = vpop.permute.xlu1 %2934 }
0x10ee   : > { %v2940_v21 = vsel %vm1106_vm4, %v2935_v15, 0 }
0x10ef   : > { %4927 = vmatpush3.bf16.msra.mxu1 %v2940_v21 }
0x10f0   : > { %v2825_v28 = vpop.xlane.xlu0 %2824  ;;  %4938 = vmatprep.subr.bf16.mxu1 %v5590_v1 }
0x10f1   : > { %5268 = vrcp.f32 %v2825_v28  ;;  %v2983_v53 = vpop.permute.xlu1 %2982 }
0x10f2   : > { %v2988_v37 = vsel %vm1106_vm4, %v2983_v53, 0 }
0x10f4   : > { %v2887_v16 = vpop.permute.xlu0 %2886 }
0x10f5   : > { %v2892_v29 = vsel %vm1106_vm4, %v2887_v16, 0 }
0x10f6   : > { %v5265_v31 = vpop.eup %5264  ;;  %4921 = vmatpush3.bf16.msra.mxu0 %v2892_v29 }
0x10f7   : > { %v5267_v32 = vpop.eup %5266  ;;  %4932 = vmatprep.subr.bf16.mxu0 %v5590_v1  ;;  %v2831_v33 = vmul.f32 %v5265_v31, %v5257_v11 }
0x10f8   : > { %v2832_v34 = vmul.f32 %v5267_v32, %v5259_v13 }
0x10f9   : > { %v2835_v35 = vpack.c.bf16 %v2831_v33, %v2831_v33  ;;  %v5296_v33 = vld [vmem:[%s6717_s10] sm:$0xff]  ;;  %s6720_s10 = sld [smem:[#allocation42_spill]] }
0x10fa   : > { %v2836_v36 = vpack.c.bf16 %v2832_v34, %v2832_v34 }
0x10fb   : > { %4923 = vmatmul.mubr.msk.bf16.vlgmr.msra.gmra.mxu0 %vm859_vm2, %v2835_v35 }
0x10fc   : > { %4929 = vmatmul.mubr.msk.bf16.vlgmr.msra.gmra.mxu1 %vm859_vm2, %v2836_v36  ;;  %4933 = vmatpush3.bf16.msra.mxu0 %v2988_v37 }
0x10fd   : > { %4934 = vmatprep.mubr.msk.bf16.mxu0 %vm5591_vm0, %v5590_v1  ;;  %4944 = vmatprep.subr.bf16.mxu0 %v5590_v1 }
0x10fe   : > { %v5269_v38 = vpop.eup %5268  ;;  %4940 = vmatprep.mubr.msk.bf16.mxu1 %vm5591_vm0, %v5590_v1  ;;  %4939 = vmatpush3.bf16.msra.mxu1 %v3036_v46 }
0x10ff   : > { %v2833_v3 = vmul.f32 %v5269_v38, %v5261_v20  ;;  %4950 = vmatprep.subr.bf16.mxu1 %v5590_v1 }
0x1101   : > { %v2837_v42 = vpack.c.bf16 %v2833_v3, %v2833_v3  ;;  %v5206_v3 = vld [vmem:[#allocation12 + $0x18] sm:$0xff]  }
0x1103   : > { %4935 = vmatmul.mubr.msk.bf16.vlgmr.msra.gmra.mxu0 %vm859_vm2, %v2837_v42  ;;  %v5207_v42 = vld [vmem:[#allocation12 + $0x10] sm:$0xff]  }
0x1104   : > { %4945 = vmatpush3.bf16.msra.mxu0 %v3082_v43  ;;  %4946 = vmatprep.mubr.msk.bf16.mxu0 %vm5591_vm0, %v5590_v1  ;;  %v5208_v43 = vld [vmem:[%s6635_s8 + $0x18] sm:$0xff]  }
0x1105   : > { %4956 = vmatprep.subr.bf16.mxu0 %v5590_v1 }
0x1153   : > { %v2880_v49 = vpop.f32.mrf.mxu1 }
0x1154   : > { %v3030_v4 = vpack.c.bf16 %v2880_v49, %v2880_v49  ;;  %v4514_v49 = vld [vmem:[%s6634_s7 + $0x2] sm:$0x3] }
0x1155   : > { %v4918_v51 = vpop.f32.mrf.mxu1 }
0x1156   : > { %4947 = vmatmul.mubr.msk.bf16.vlgmr.msra.gmra.mxu0 %vm859_vm2, %v3030_v4  ;;  %v3244_v4 = vrot.slane %v4514_v49, %v6113_v45 }
0x1157   : > { %v2883_v52 = vpop.f32.mrf.mxu1  ;;  %4957 = vmatpush3.bf16.msra.mxu0 %v3177_v50  ;;  %4958 = vmatprep.mubr.msk.bf16.mxu0 %vm5591_vm0, %v5590_v1 }
0x1158   : > { %4970 = vmatprep.subr.bf16.mxu0 %v5590_v1  ;;  %v3249_v52 = vrot.slane %v4514_v49, %v6119_v47 }
0x1159   : > { %v4919_v54 = vpop.f32.mrf.mxu1 }
0x11bb   : > { %v2928_v55 = vpop.f32.mrf.mxu0 }
0x11bc   : > { %v3031_v56 = vpack.c.bf16 %v2928_v55, %v2928_v55  ;;  %v2976_v57 = vpop.f32.mrf.mxu1 }
0x11bd   : > { %v4924_v60 = vpop.f32.mrf.mxu0  ;;  %v3124_v2 = vpack.c.bf16 %v2976_v57, %v2976_v57 }
0x11be   : > { %v4930_v61 = vpop.f32.mrf.mxu1  ;;  %4941 = vmatmul.mubr.msk.bf16.vlgmr.msra.gmra.mxu1 %vm859_vm2, %v3031_v56  ;;  %v4523_v56 = vld [vmem:[%s6638_s11 + $0x1] ss:$0 sm:$0xff] }
0x11bf   : > { %v2931_v62 = vpop.f32.mrf.mxu0  ;;  %4951 = vmatpush3.bf16.msra.mxu1 %v3129_v59  ;;  %4952 = vmatprep.mubr.msk.bf16.mxu1 %vm5591_vm0, %v5590_v1 }
0x11c0   : > { %v2979_v63 = vpop.f32.mrf.mxu1  ;;  %4962 = vmatprep.subr.bf16.mxu1 %v5590_v1 }
0x11c1   : > { %v4925_v0 = vpop.f32.mrf.mxu0 }
0x11c2   : > { %v4931_v30 = vpop.f32.mrf.mxu1 }
0x11c3   : > { %v3024_v58 = vpop.f32.mrf.mxu0 }
0x11c4   : > { %v3172_v6 = vpack.c.bf16 %v3024_v58, %v3024_v58 }
0x11c5   : > { %v4936_v7 = vpop.f32.mrf.mxu0 }
0x11c6   : > { %4953 = vmatmul.mubr.msk.bf16.vlgmr.msra.gmra.mxu1 %vm859_vm2, %v3124_v2  ;;  %4959 = vmatmul.mubr.msk.bf16.vlgmr.msra.gmra.mxu0 %vm859_vm2, %v3172_v6  ;;  %v4519_v7 = vld [vmem:[%s6636_s9 + $0x1] ss:$0 sm:$0xff] }
0x11c7   : > { %v3027_v8 = vpop.f32.mrf.mxu0  ;;  %4974 = vmatprep.mubr.msk.bf16.mxu0 %vm5591_vm0, %v5590_v1  ;;  %4966 = vmatprep.mubr.msk.bf16.mxu1 %vm5591_vm0, %v5590_v1 }
0x11c8   : > { %4971 = vmatpush3.bf16.msra.mxu0 %v5206_v3  ;;  %4963 = vmatpush3.bf16.msra.mxu1 %v5208_v43 }
0x11c9   : > { %v4937_v5 = vpop.f32.mrf.mxu0  ;;  %4972 = vmatprep.subr.bf16.mxu0 %v5590_v1  ;;  %4964 = vmatprep.subr.bf16.mxu1 %v5590_v1 }
0x11cc   : > { %4973 = vmatpush3.bf16.msra.mxu0 %v5207_v42  ;;  %4965 = vmatpush3.bf16.msra.mxu1 %v5209_v44 }
0x11cd   : > { %4984 = vmatprep.subr.bf16.mxu0 %v5590_v1  ;;  %4978 = vmatprep.subr.bf16.mxu1 %v5590_v1 }
0x11cf   : > { %4975 = vmatmul.mubr.msk.bf16.vlgmr.msra.gmra.mxu0 %vm793_vm1, %v6097_v40 }
0x11d0   : > { %4986 = vmatprep.mubr.msk.bf16.mxu0 %vm5591_vm0, %v5590_v1 }
0x1216   : > { %v3118_v9 = vpop.f32.mrf.mxu0 }
0x1218   : > { %v4948_v10 = vpop.f32.mrf.mxu0 }
0x121a   : > { %v3121_v11 = vpop.f32.mrf.mxu0 }
0x121c   : > { %v4949_v13 = vpop.f32.mrf.mxu0 }
0x127e   : > { %v3072_v14 = vpop.f32.mrf.mxu1 }
0x127f   : > { %v3119_v23 = vadd.f32 %v3118_v9, %v3072_v14 }
0x1280   : > { %v4942_v19 = vpop.f32.mrf.mxu1 }
0x1282   : > { %v3075_v20 = vpop.f32.mrf.mxu1 }
0x1284   : > { %v4943_v22 = vpop.f32.mrf.mxu1 }
0x1286   : > { %v3165_v24 = vpop.f32.mrf.mxu1  ;;  %v3213_v18 = vpop.f32.mrf.mxu0 }
0x1287   : > { %v3171_v25 = vadd.f32 %v3165_v24, %v3119_v23 }
0x1288   : > { %v4954_v26 = vpop.f32.mrf.mxu1  ;;  %v4960_v15 = vpop.f32.mrf.mxu0 }
0x1289   : > { %v3219_v21 = vadd.f32 %v3213_v18, %v3171_v25 }
0x128a   : > { %v3168_v28 = vpop.f32.mrf.mxu1  ;;  %v3216_v16 = vpop.f32.mrf.mxu0 }
0x128b   : > { %v3224_v29 = vadd.f32 %v4513_v17, %v3219_v21 }
0x128c   : > { %v4955_v31 = vpop.f32.mrf.mxu1  ;;  %v4961_v32 = vpop.f32.mrf.mxu0 }
0x128d   : > { %v3227_v53 = vadd.f32 %v5296_v33, %v3224_v29 }
0x128f   : > { %v3228_v34 = vsel %vm793_vm1, %v3227_v53, 0.0  ;;  %v3373_v57 = vpop.f32.mrf.mxu0 }
0x1290   : > { %3229 = vadd.xlane.f32.xlu0 %v3228_v34  ;;  %v3374_v59 = vadd.f32 %v4523_v56, %v3373_v57 }
0x1291   : > { %v4976_v60 = vpop.f32.mrf.mxu0 }
0x1292   : > { %v6435_v61 = vpack.c.bf16 %v3374_v59, %v3374_v59 }
0x1293   : > { %v3376_v62 = vpop.f32.mrf.mxu0 }
0x1294   : > { %v3417_v63 = vsel %vm859_vm2, %v6435_v61, 0 }
0x1295   : > { %v4977_v0 = vpop.f32.mrf.mxu0 }
0x12a6   : > { %3396 = vrot.lane.b32.xlu0 %v3374_v59, %s5593_s29 }
0x12aa   : > { %3399 = vrot.lane.b32.xlu0 %v3374_v59, %s5594_s27 }
0x1319   : > { %v3230_v35 = vpop.xlane.xlu0 %3229 }
0x131a   : > { %v3231_v36 = vmul.f32 0.03125, %v3230_v35 }
0x131c   : > { %v3232_v37 = vsub.f32 %v3227_v53, %v3231_v36 }
0x131d   : > { %v3397_v30 = vpop.permute.xlu0 %3396 }
0x131e   : > { %v3233_v38 = vmul.f32 %v3232_v37, %v3232_v37  ;;  %v6441_v58 = vpack.c.bf16 %v3397_v30, %v3397_v30 }
0x1320   : > { %v3234_v39 = vsel %vm793_vm1, %v3233_v38, 0.0  ;;  %v3463_v2 = vsel %vm859_vm2, %v6441_v58, 0 }
0x1321   : > { %3235 = vadd.xlane.f32.xlu1 %v3234_v39  ;;  %4985 = vmatpush3.bf16.xpose.msra.mxu0 %v3463_v2  ;;  %v3400_v6 = vpop.permute.xlu0 %3399 }
0x1322   : > { %4996 = vmatprep.subr.bf16.mxu0 %v5590_v1  ;;  %v6449_v8 = vpack.c.bf16 %v3400_v6, %v3400_v6 }
0x1324   : > { %v3509_v13 = vsel %vm859_vm2, %v6449_v8, 0 }
0x13aa   : > { %v3236_v46 = vpop.xlane.xlu1 %3235 }
0x13ab   : > { %v3237_v48 = vmul.f32 0.03125, %v3236_v46 }
0x13ad   : > { %v3238_v40 = vadd.f32 1e-05, %v3237_v48 }
0x13af   : > { %5270 = vrsqrt.f32 %v3238_v40 }
0x13bc   : > { %v5271_v50 = vpop.eup %5270 }
0x13bd   : > { %v3240_v51 = vmul.f32 %v5271_v50, %v3232_v37 }
0x13bf   : > { %v3245_v54 = vmul.f32 %v3244_v4, %v3240_v51 }
0x13c1   : > { %v6424_v27 = vadd.f32 %v3249_v52, %v3245_v54 }
0x13c3   : > { %v3256_v55 = vpack.c.bf16 %v6424_v27, %v6424_v27 }
0x13c5   : > { %4967 = vmatmul.mubr.msk.bf16.vlgmr.msra.gmra.mxu1 %vm793_vm1, %v3256_v55 }
0x13c6   : > { %4980 = vmatprep.mubr.msk.bf16.mxu1 %vm5591_vm0, %v5590_v1  ;;  %4979 = vmatpush3.bf16.xpose.msra.mxu1 %v3417_v63 }
0x13c7   : > { %4990 = vmatprep.subr.bf16.mxu1 %v5590_v1 }
0x1485   : > { %v3311_v5 = vpop.f32.mrf.mxu1 }
0x1486   : > { %v3312_v9 = vadd.f32 %v4519_v7, %v3311_v5 }
0x1487   : > { %v4968_v10 = vpop.f32.mrf.mxu1 }
0x1488   : > { %v3405_v11 = vpack.c.bf16 %v3312_v9, %v3312_v9  ;;  %3389 = vrot.lane.b32.xlu0 %v3312_v9, %s5594_s27  ;;  %3386 = vrot.lane.b32.xlu1 %v3312_v9, %s5593_s29  ;;  %s6718_s27 = sld [smem:[#allocation40_spill]] }
0x1489   : > { %v3314_v14 = vpop.f32.mrf.mxu1  ;;  %s2508_s29 = sld [smem:[#allocation8 + %s4488_s4]] }
0x148a   : > { %4981 = vmatmul.mubr.msk.bf16.vlgmr.msra.gmra.mxu1 %vm859_vm2, %v3405_v11 }
0x148b   : > { %v4969_v19 = vpop.f32.mrf.mxu1  ;;  %4991 = vmatpush3.bf16.xpose.msra.mxu1 %v3509_v13  ;;  %4992 = vmatprep.mubr.msk.bf16.mxu1 %vm5591_vm0, %v5590_v1 }
0x148c   : > { %3402 = vrot.lane.b32.xlu1 %v3374_v59, %s5592_s6  ;;  %5002 = vmatprep.subr.bf16.mxu1 %v5590_v1 }
0x1490   : > { %3392 = vrot.lane.b32.xlu1 %v3312_v9, %s5592_s6  ;;  %s4245_s6 = sadd.s32 1, %s4488_s4 }
0x1491   : > { %s4246_s20 = sld [smem:[#allocation8 + %s4245_s6]]  ;;  %s4263_s6 = scalar_lea.hbm %s6720_s10, %s4488_s4 }
0x14fa   : > { %v3390_v20 = vpop.permute.xlu0 %3389  ;;  %v3387_v22 = vpop.permute.xlu1 %3386 }
0x14fb   : > { %v3407_v23 = vpack.c.bf16 %v3390_v20, %v3390_v20  ;;  %v3406_v24 = vpack.c.bf16 %v3387_v22, %v3387_v22 }
0x14fd   : > { %4987 = vmatmul.mubr.msk.bf16.vlgmr.msra.gmra.mxu0 %vm859_vm2, %v3406_v24  ;;  %4993 = vmatmul.mubr.msk.bf16.vlgmr.msra.gmra.mxu1 %vm859_vm2, %v3407_v23 }
0x14fe   : > { %v3403_v18 = vpop.permute.xlu1 %3402  ;;  %4998 = vmatprep.mubr.msk.bf16.mxu0 %vm5591_vm0, %v5590_v1  ;;  %5004 = vmatprep.mubr.msk.bf16.mxu1 %vm5591_vm0, %v5590_v1 }
0x14ff   : > { %v6467_v25 = vpack.c.bf16 %v3403_v18, %v3403_v18 }
0x1501   : > { %v3555_v17 = vsel %vm859_vm2, %v6467_v25, 0 }
0x1502   : > { %4997 = vmatpush3.bf16.xpose.msra.mxu0 %v3555_v17  ;;  %v3393_v26 = vpop.permute.xlu1 %3392 }
0x1503   : > { %5008 = vmatprep.subr.bf16.mxu0 %v5590_v1  ;;  %v3408_v15 = vpack.c.bf16 %v3393_v26, %v3393_v26 }
0x1509   : > { %4999 = vmatmul.mubr.msk.bf16.vlgmr.msra.gmra.mxu0 %vm859_vm2, %v3408_v15 }
0x150a   : > { %5010 = vmatprep.mubr.msk.bf16.mxu0 %vm5591_vm0, %v5590_v1 }
0x154a   : > { %v3453_v21 = vpop.f32.mrf.mxu1 }
0x154b   : > { %v3597_v28 = vsel %vm859_vm2, %v3453_v21, -inf }
0x154c   : > { %3598 = vmax.xlane.f32.xlu0 %v3597_v28  ;;  %v4982_v16 = vpop.f32.mrf.mxu1 }
0x154e   : > { %v3456_v29 = vpop.f32.mrf.mxu1 }
0x1550   : > { %v4983_v31 = vpop.f32.mrf.mxu1 }
0x1551   : > { %v3380_v31 = vld [vmem:[#allocation13 + $0x10] sm:$0xf] }
0x15bd   : > { %v3499_v32 = vpop.f32.mrf.mxu0  ;;  %v3545_v33 = vpop.f32.mrf.mxu1 }
0x15be   : > { %v3600_v53 = vsel %vm859_vm2, %v3499_v32, -inf  ;;  %v3603_v34 = vsel %vm859_vm2, %v3545_v33, -inf }
0x15bf   : > { %3601 = vmax.xlane.f32.xlu1 %v3600_v53  ;;  %v4988_v35 = vpop.f32.mrf.mxu0  ;;  %3604 = vmax.xlane.f32.xlu0 %v3603_v34  ;;  %v4994_v36 = vpop.f32.mrf.mxu1  ;;  %v3893_v53 = vsel %vm1106_vm4, %v3380_v31, 0  ;;  %v3381_v34 = vld [vmem:[#allocation13 + $0x14] sm:$0xf] }
0x15c0   : > { %v3847_v35 = vsel %vm1106_vm4, %v3381_v34, 0  ;;  %v3383_v36 = vld [vmem:[#allocation13 + $0x1c] sm:$0xf] }
0x15c1   : > { %v3502_v37 = vpop.f32.mrf.mxu0  ;;  %v3548_v38 = vpop.f32.mrf.mxu1 }
0x15c3   : > { %v4989_v39 = vpop.f32.mrf.mxu0  ;;  %v4995_v3 = vpop.f32.mrf.mxu1 }
0x15c4   : > { %v3988_v39 = vsel %vm1106_vm4, %v3383_v36, 0  ;;  %v5210_v36 = vld [vmem:[#allocation15 + $0x18] sm:$0xff]  }
0x15c9   : > { %v3591_v42 = vpop.f32.mrf.mxu0 }
0x15ca   : > { %v3606_v43 = vsel %vm859_vm2, %v3591_v42, -inf }
0x15cb   : > { %v5000_v44 = vpop.f32.mrf.mxu0  ;;  %3607 = vmax.xlane.f32.xlu0 %v3606_v43 }
0x15cc   : > { %v3382_v44 = vld [vmem:[#allocation13 + $0x18] sm:$0xf] }
0x15cd   : > { %v3594_v46 = vpop.f32.mrf.mxu0 }
0x15cf   : > { %v5001_v48 = vpop.f32.mrf.mxu0 }
0x15d0   : > { %3646 = vrot.lane.b32.xlu1 %v6435_v61, %s5595_s25 }
0x15d5   : > { %v3599_v40 = vpop.xlane.xlu0 %3598 }
0x15d6   : > { %v3609_v49 = vsub.f32 %v3453_v21, %v3599_v40 }
0x15d8   : > { %v3613_v4 = vmul.f32 1.442695, %v3609_v49 }
0x15da   : > { %5272 = vpow2.f32 %v3613_v4  ;;  %v3940_v4 = vsel %vm1106_vm4, %v3382_v44, 0 }
0x15e7   : > { %v5273_v50 = vpop.eup %5272 }
0x15e8   : > { %v3621_v51 = vsel %vm859_vm2, %v5273_v50, 0.0 }
0x15f4   : > { %3622 = vadd.xlane.f32.xlu1 %v3621_v51 }
0x1648   : > { %v3602_v52 = vpop.xlane.xlu1 %3601  ;;  %v3605_v54 = vpop.xlane.xlu0 %3604 }
0x1649   : > { %v3610_v55 = vsub.f32 %v3499_v32, %v3602_v52  ;;  %v3611_v56 = vsub.f32 %v3545_v33, %v3605_v54 }
0x164b   : > { %v3615_v57 = vmul.f32 1.442695, %v3610_v55  ;;  %v3617_v59 = vmul.f32 1.442695, %v3611_v56 }
0x164c   : > { %v3647_v60 = vpop.permute.xlu1 %3646 }
0x164d   : > { %5274 = vpow2.f32 %v3615_v57  ;;  %v3652_v62 = vsel %vm1106_vm4, %v3647_v60, 0 }
0x164e   : > { %5276 = vpow2.f32 %v3617_v59  ;;  %5003 = vmatpush3.bf16.msra.mxu1 %v3652_v62 }
0x164f   : > { %5014 = vmatprep.subr.bf16.mxu1 %v5590_v1 }
0x1654   : > { %v3608_v61 = vpop.xlane.xlu0 %3607 }
0x1655   : > { %v3612_v63 = vsub.f32 %v3591_v42, %v3608_v61 }
0x1657   : > { %v3619_v0 = vmul.f32 1.442695, %v3612_v63 }
0x1659   : > { %5278 = vpow2.f32 %v3619_v0 }
0x165a   : > { %v5275_v30 = vpop.eup %5274 }
0x165b   : > { %v5277_v2 = vpop.eup %5276  ;;  %v3624_v6 = vsel %vm859_vm2, %v5275_v30, 0.0 }
0x165c   : > { %3625 = vadd.xlane.f32.xlu0 %v3624_v6  ;;  %v3627_v7 = vsel %vm859_vm2, %v5277_v2, 0.0 }
0x165d   : > { %3628 = vadd.xlane.f32.xlu1 %v3627_v7 }
0x1666   : > { %v5279_v5 = vpop.eup %5278 }
0x1667   : > { %v3630_v9 = vsel %vm859_vm2, %v5279_v5, 0.0 }
0x1668   : > { %3631 = vadd.xlane.f32.xlu0 %v3630_v9 }
0x166e   : > { %3744 = vrot.lane.b32.xlu1 %v6449_v8, %s5595_s25 }
0x1672   : > { %3793 = vrot.lane.b32.xlu1 %v6467_v25, %s5595_s25 }
0x167d   : > { %v3623_v10 = vpop.xlane.xlu1 %3622 }
0x167e   : > { %5280 = vrcp.f32 %v3623_v10  ;;  %3695 = vrot.lane.b32.xlu0 %v6441_v58, %s5595_s25  ;;  %s4252_s25 = scalar_lea.sflag [#allocation4], %s5912_s16 }
0x168b   : > { %v5281_v11 = vpop.eup %5280 }
0x168c   : > { %v3637_v13 = vmul.f32 %v5281_v11, %v5273_v50 }
0x168e   : > { %v3641_v14 = vpack.c.bf16 %v3637_v13, %v3637_v13 }
0x1690   : > { %5005 = vmatmul.mubr.msk.bf16.vlgmr.msra.gmra.mxu1 %vm859_vm2, %v3641_v14  ;;  %v4482_v14 = vld [vmem:[%s6718_s27] ss:$0 sm:$0xff] }
0x1691   : > { %5016 = vmatprep.mubr.msk.bf16.mxu1 %vm5591_vm0, %v5590_v1 }
0x16e5   : > { %v3626_v19 = vpop.xlane.xlu0 %3625 }
0x16e6   : > { %v3629_v20 = vpop.xlane.xlu1 %3628  ;;  %5282 = vrcp.f32 %v3626_v19 }
0x16e7   : > { %5284 = vrcp.f32 %v3629_v20  ;;  %v4539_v20 = vld [vmem:[%s6640_s13 + $0x1] ss:$0 sm:$0xff] }
0x16ea   : > { %v3745_v8 = vpop.permute.xlu1 %3744 }
0x16eb   : > { %v3750_v22 = vsel %vm1106_vm4, %v3745_v8, 0 }
0x16ec   : > { %5015 = vmatpush3.bf16.msra.mxu1 %v3750_v22 }
0x16ed   : > { %5026 = vmatprep.subr.bf16.mxu1 %v5590_v1 }
0x16ee   : > { %v3794_v15 = vpop.permute.xlu1 %3793 }
0x16ef   : > { %v3799_v16 = vsel %vm1106_vm4, %v3794_v15, 0 }
0x16f1   : > { %v3632_v23 = vpop.xlane.xlu0 %3631 }
0x16f2   : > { %5286 = vrcp.f32 %v3632_v23 }
0x16f3   : > { %v5283_v58 = vpop.eup %5282 }
0x16f4   : > { %v5285_v24 = vpop.eup %5284  ;;  %v3638_v18 = vmul.f32 %v5283_v58, %v5275_v30 }
0x16f5   : > { %v3696_v25 = vpop.permute.xlu0 %3695  ;;  %v3639_v17 = vmul.f32 %v5285_v24, %v5277_v2  ;;  %v2477_v24 = vadd.f32 %v4482_v14, %v6309_v12 }
0x16f6   : > { %v3701_v26 = vsel %vm1106_vm4, %v3696_v25, 0  ;;  %v3642_v28 = vpack.c.bf16 %v3638_v18, %v3638_v18 }
0x16f7   : > { %5009 = vmatpush3.bf16.msra.mxu0 %v3701_v26  ;;  %v3643_v21 = vpack.c.bf16 %v3639_v17, %v3639_v17 }
0x16f8   : > { %5020 = vmatprep.subr.bf16.mxu0 %v5590_v1 }
0x16f9   : > { %5017 = vmatmul.mubr.msk.bf16.vlgmr.msra.gmra.mxu1 %vm859_vm2, %v3643_v21 }
0x16fa   : > { %5011 = vmatmul.mubr.msk.bf16.vlgmr.msra.gmra.mxu0 %vm859_vm2, %v3642_v28  ;;  %5028 = vmatprep.mubr.msk.bf16.mxu1 %vm5591_vm0, %v5590_v1  ;;  %v2483_v28 = vadd.f32 %v2477_v24, %v6243_v41 }
0x16fb   : > { %5021 = vmatpush3.bf16.msra.mxu0 %v3799_v16  ;;  %5022 = vmatprep.mubr.msk.bf16.mxu0 %vm5591_vm0, %v5590_v1 }
0x16fc   : > { %5032 = vmatprep.subr.bf16.mxu0 %v5590_v1  ;;  %5027 = vmatpush3.bf16.msra.mxu1 %v3847_v35  ;;  %v2484_v16 = vsel %vm793_vm1, %v2483_v28, 0.0 }
0x16fd   : > { %5038 = vmatprep.subr.bf16.mxu1 %v5590_v1 }
0x16ff   : > { %v5287_v29 = vpop.eup %5286 }
0x1700   : > { %v3640_v32 = vmul.f32 %v5287_v29, %v5279_v5 }
0x1702   : > { %v3644_v33 = vpack.c.bf16 %v3640_v32, %v3640_v32 }
0x1704   : > { %5023 = vmatmul.mubr.msk.bf16.vlgmr.msra.gmra.mxu0 %vm859_vm2, %v3644_v33 }
0x1705   : > { %5033 = vmatpush3.bf16.msra.mxu0 %v3893_v53  ;;  %5034 = vmatprep.mubr.msk.bf16.mxu0 %vm5591_vm0, %v5590_v1 }
0x1706   : > { %5044 = vmatprep.subr.bf16.mxu0 %v5590_v1 }
0x1750   : > { %v3688_v37 = vpop.f32.mrf.mxu1 }
0x1751   : > { %v3841_v38 = vpack.c.bf16 %v3688_v37, %v3688_v37  ;;  %v5211_v37 = vld [vmem:[#allocation15 + $0x10] sm:$0xff]  }
0x1752   : > { %v5006_v3 = vpop.f32.mrf.mxu1 }
0x1753   : > { %5035 = vmatmul.mubr.msk.bf16.vlgmr.msra.gmra.mxu0 %vm859_vm2, %v3841_v38 }
0x1754   : > { %v3691_v42 = vpop.f32.mrf.mxu1  ;;  %5045 = vmatpush3.bf16.msra.mxu0 %v3988_v39  ;;  %5046 = vmatprep.mubr.msk.bf16.mxu0 %vm5591_vm0, %v5590_v1 }
0x1755   : > { %5058 = vmatprep.subr.bf16.mxu0 %v5590_v1  ;;  %v4540_v42 = vld [vmem:[%s6714_s17 + $0x2] sm:$0x3] }
0x1756   : > { %v5007_v43 = vpop.f32.mrf.mxu1 }
0x1757   : > { %v4055_v43 = vrot.slane %v4540_v42, %v6113_v45 }
0x17b9   : > { %v3786_v46 = vpop.f32.mrf.mxu1 }
0x17ba   : > { %v3737_v48 = vpop.f32.mrf.mxu0  ;;  %v3935_v56 = vpack.c.bf16 %v3786_v46, %v3786_v46 }
0x17bb   : > { %v3842_v40 = vpack.c.bf16 %v3737_v48, %v3737_v48  ;;  %v5018_v49 = vpop.f32.mrf.mxu1  ;;  %v4060_v48 = vrot.slane %v4540_v42, %v6119_v47 }
0x17bc   : > { %v5012_v50 = vpop.f32.mrf.mxu0 }
0x17bd   : > { %v3789_v51 = vpop.f32.mrf.mxu1  ;;  %5029 = vmatmul.mubr.msk.bf16.vlgmr.msra.gmra.mxu1 %vm859_vm2, %v3842_v40  ;;  %v5212_v50 = vld [vmem:[%s6715_s2 + $0x38] sm:$0xff]  }
0x17be   : > { %v3740_v52 = vpop.f32.mrf.mxu0  ;;  %5039 = vmatpush3.bf16.msra.mxu1 %v3940_v4  ;;  %5040 = vmatprep.mubr.msk.bf16.mxu1 %vm5591_vm0, %v5590_v1  ;;  %v5213_v51 = vld [vmem:[%s6715_s2 + $0x30] sm:$0xff]  }
0x17bf   : > { %v5019_v54 = vpop.f32.mrf.mxu1  ;;  %5050 = vmatprep.subr.bf16.mxu1 %v5590_v1  ;;  %v5214_v52 = vld [vmem:[%s6715_s2 + $0x28] sm:$0xff]  }
0x17c0   : > { %v5013_v55 = vpop.f32.mrf.mxu0  ;;  %v5215_v54 = vld [vmem:[%s6715_s2 + $0x20] sm:$0xff]  }
0x17c1   : > { %v4541_v55 = vld [vmem:[%s6716_s30 + $0x1] ss:$0 sm:$0xff] }
0x17c4   : > { %v3835_v57 = vpop.f32.mrf.mxu0 }
0x17c5   : > { %v3983_v59 = vpack.c.bf16 %v3835_v57, %v3835_v57  ;;  %5041 = vmatmul.mubr.msk.bf16.vlgmr.msra.gmra.mxu1 %vm859_vm2, %v3935_v56 }
0x17c6   : > { %v5024_v60 = vpop.f32.mrf.mxu0  ;;  %5054 = vmatprep.mubr.msk.bf16.mxu1 %vm5591_vm0, %v5590_v1  ;;  %5051 = vmatpush3.bf16.msra.mxu1 %v5210_v36 }
0x17c7   : > { %5047 = vmatmul.mubr.msk.bf16.vlgmr.msra.gmra.mxu0 %vm859_vm2, %v3983_v59  ;;  %5052 = vmatprep.subr.bf16.mxu1 %v5590_v1 }
0x17c8   : > { %v3838_v62 = vpop.f32.mrf.mxu0  ;;  %5066 = vmatprep.mubr.msk.bf16.mxu0 %vm5591_vm0, %v5590_v1  ;;  %5059 = vmatpush3.bf16.msra.mxu0 %v5212_v50 }
0x17c9   : > { %5060 = vmatprep.subr.bf16.mxu0 %v5590_v1 }
0x17ca   : > { %v5025_v61 = vpop.f32.mrf.mxu0  ;;  %5053 = vmatpush3.bf16.msra.mxu1 %v5211_v37 }
0x17cc   : > { %5061 = vmatpush3.bf16.msra.mxu0 %v5213_v51 }
0x17cd   : > { %5062 = vmatprep.subr.bf16.mxu0 %v5590_v1 }
0x17d0   : > { %5063 = vmatpush3.bf16.msra.mxu0 %v5214_v52 }
0x17d1   : > { %5064 = vmatprep.subr.bf16.mxu0 %v5590_v1 }
0x17d4   : > { %5065 = vmatpush3.bf16.msra.mxu0 %v5215_v54 }
0x1813   : > { %v3929_v63 = vpop.f32.mrf.mxu0 }
0x1815   : > { %v5036_v0 = vpop.f32.mrf.mxu0 }
0x1817   : > { %v3932_v30 = vpop.f32.mrf.mxu0 }
0x1819   : > { %v5037_v2 = vpop.f32.mrf.mxu0 }
0x187d   : > { %v3883_v6 = vpop.f32.mrf.mxu1 }
0x187e   : > { %v3930_v10 = vadd.f32 %v3929_v63, %v3883_v6 }
0x187f   : > { %v5030_v7 = vpop.f32.mrf.mxu1 }
0x1881   : > { %v3886_v5 = vpop.f32.mrf.mxu1 }
0x1883   : > { %v5031_v9 = vpop.f32.mrf.mxu1 }
0x1885   : > { %v3976_v11 = vpop.f32.mrf.mxu1 }
0x1886   : > { %v3982_v13 = vadd.f32 %v3976_v11, %v3930_v10  ;;  %v4553_v10 = vld [vmem:[%s6718_s27 + $0x1] ss:$0 sm:$0xff] }
0x1887   : > { %v5042_v19 = vpop.f32.mrf.mxu1  ;;  %v4024_v8 = vpop.f32.mrf.mxu0 }
0x1888   : > { %v4030_v22 = vadd.f32 %v4024_v8, %v3982_v13 }
0x1889   : > { %v3979_v23 = vpop.f32.mrf.mxu1  ;;  %v5048_v58 = vpop.f32.mrf.mxu0 }
0x188a   : > { %v4035_v18 = vadd.f32 %v4539_v20, %v4030_v22 }
0x188b   : > { %v5043_v25 = vpop.f32.mrf.mxu1  ;;  %v4027_v17 = vpop.f32.mrf.mxu0 }
0x188c   : > { %v4038_v26 = vadd.f32 %v4035_v18, %v6424_v27 }
0x188d   : > { %v5049_v15 = vpop.f32.mrf.mxu0 }
0x188e   : > { %v4039_v21 = vsel %vm793_vm1, %v4038_v26, 0.0 }
0x188f   : > { %4040 = vadd.xlane.f32.xlu0 %v4039_v21 }
0x1893   : > { %2485 = vadd.xlane.f32.xlu0 %v2484_v16 }
0x1918   : > { %v4041_v29 = vpop.xlane.xlu0 %4040 }
0x1919   : > { %v4042_v31 = vmul.f32 0.03125, %v4041_v29 }
0x191b   : > { %v4043_v32 = vsub.f32 %v4038_v26, %v4042_v31  ;;  %v2482_v31 = vld [vmem:[%s6719_s28] sm:$0x3] }
0x191c   : > { %v2486_v33 = vpop.xlane.xlu0 %2485 }
0x191d   : > { %v2487_v53 = vmul.f32 0.03125, %v2486_v33  ;;  %v4044_v12 = vmul.f32 %v4043_v32, %v4043_v32  ;;  %v2500_v33 = vrot.slane %v2482_v31, %v6113_v45 }
0x191f   : > { %v6542_v34 = vsub.f32 %v2483_v28, %v2487_v53  ;;  %v4045_v35 = vsel %vm793_vm1, %v4044_v12, 0.0  ;;  %v4559_v53 = vld [vmem:[%s6719_s28 + $0x2] sm:$0x3] }
0x1920   : > { %4046 = vadd.xlane.f32.xlu1 %v4045_v35  ;;  %v2505_v35 = vrot.slane %v2482_v31, %v6119_v47  ;;  %v4243_v37 = vrot.slane %v4559_v53, %v6119_v47 }
0x1921   : > { %v2489_v27 = vmul.f32 %v6542_v34, %v6542_v34 }
0x1923   : > { %v2490_v41 = vsel %vm793_vm1, %v2489_v27, 0.0  ;;  %v4238_v27 = vrot.slane %v4559_v53, %v6113_v45 }
0x1924   : > { %2491 = vadd.xlane.f32.xlu1 %v2490_v41 }
0x19a9   : > { %v4047_v38 = vpop.xlane.xlu1 %4046 }
0x19aa   : > { %v4048_v39 = vmul.f32 0.03125, %v4047_v38 }
0x19ac   : > { %v4049_v3 = vadd.f32 1e-05, %v4048_v39  ;;  %v2509_v39 = vstv %s2508_s29  ;;  %s5598_s29 = smov [#allocation16]  }
0x19ad   : > { %v2492_v17 = vpop.xlane.xlu1 %2491 }
0x19ae   : > { %5288 = vrsqrt.f32 %v4049_v3  ;;  %v2493_v26 = vmul.f32 0.03125, %v2492_v17  ;;  %v4247_v3 = vstv %s4246_s20  ;;  %s5498_s20 = sshll.u32 %s5598_s29, 4  ;;  %s5499_s20 = int_to_ptr.vmem [resolvable:$false] %s5498_s20 }
0x19af   : > { %s5500_s23 = scalar_lea.vmem %s5499_s20, 256  ;;  %p5501_p8 = scmp.lt.s32.totalorder %s4266_s0, %s5499_s20 }
0x19b0   : > { %v2494_v15 = vadd.f32 1e-05, %v2493_v26  ;;  %p5502_p7 = scmp.lt.s32.totalorder %s5500_s23, %s5494_s12 }
0x19b2   : > { %p5503_p6 = por %p5502_p7, %p5501_p8 }
0x19b4   : > { %p5504_p0 = pnand %p5503_p6, %p5497_p4 }
0x19bb   : > { %v5289_v44 = vpop.eup %5288 }
0x19bc   : > { %v4051_v46 = vmul.f32 %v5289_v44, %v4043_v32 }
0x19be   : > { %v4056_v40 = vmul.f32 %v4055_v43, %v4051_v46 }
0x19c0   : > { %v4061_v49 = vadd.f32 %v4060_v48, %v4056_v40 }
0x19c2   : > { %v4067_v4 = vpack.c.bf16 %v4061_v49, %v4061_v49 }
0x19c4   : > { %5055 = vmatmul.mubr.msk.bf16.vlgmr.msra.gmra.mxu1 %vm793_vm1, %v4067_v4 }
0x1a84   : > { %v4122_v56 = vpop.f32.mrf.mxu1 }
0x1a85   : > { %v4123_v57 = vadd.f32 %v4541_v55, %v4122_v56 }
0x1a86   : > { %v5056_v59 = vpop.f32.mrf.mxu1 }
0x1a87   : > { %v4129_v60 = vmul.f32 0.044715, %v4123_v57  ;;  %v4128_v7 = vmul.f32 0.5, %v4123_v57 }
0x1a88   : > { %v4125_v62 = vpop.f32.mrf.mxu1 }
0x1a89   : > { %v4130_v61 = vmul.f32 %v4129_v60, %v4123_v57 }
0x1a8a   : > { %v5057_v63 = vpop.f32.mrf.mxu1 }
0x1a8b   : > { %v4131_v0 = vmul.f32 %v4130_v61, %v4123_v57 }
0x1a8d   : > { %v4132_v30 = vadd.f32 %v4131_v0, %v4123_v57 }
0x1a8f   : > { %v4133_v2 = vmul.f32 0.7978846, %v4132_v30 }
0x1a91   : > { %5290 = vtanh.f32 %v4133_v2 }
0x1a92   : > { %5292 = vrsqrt.f32 %v2494_v15 }
0x1a9e   : > { %v5291_v6 = vpop.eup %5290 }
0x1a9f   : > { %v4135_v5 = vadd.f32 1.0, %v5291_v6  ;;  %v5293_v29 = vpop.eup %5292 }
0x1aa0   : > { %v2496_v32 = vmul.f32 %v5293_v29, %v6542_v34 }
0x1aa1   : > { %v4136_v1 = vmul.f32 %v4135_v5, %v4128_v7 }
0x1aa2   : > { %v2501_v12 = vmul.f32 %v2500_v33, %v2496_v32 }
0x1aa3   : > { %v4146_v9 = vpack.c.bf16 %v4136_v1, %v4136_v1 }
0x1aa4   : > { %v2506_v34 = vadd.f32 %v2505_v35, %v2501_v12 }
0x1aa5   : > { %5067 = vmatmul.mubr.msk.bf16.vlgmr.msra.gmra.mxu0 %vm2438_vm5, %v4146_v9 }
0x1aa6   : > { %v2510_v43 = vmul.f32 %v2509_v39, %v2506_v34 }
0x1b65   : > { %v4213_v11 = vpop.f32.mrf.mxu0 }
0x1b66   : > { %v4214_v13 = vadd.f32 %v4553_v10, %v4213_v11 }
0x1b67   : > { %v5068_v14 = vpop.f32.mrf.mxu0 }
0x1b68   : > { %v4221_v19 = vadd.f32 %v4214_v13, %v4061_v49 }
0x1b69   : > { %v4216_v20 = vpop.f32.mrf.mxu0 }
0x1b6a   : > { %v4222_v8 = vsel %vm793_vm1, %v4221_v19, 0.0 }
0x1b6b   : > { %4223 = vadd.xlane.f32.xlu0 %v4222_v8  ;;  %v5069_v22 = vpop.f32.mrf.mxu0 }
0x1bf4   : > { %v4224_v23 = vpop.xlane.xlu0 %4223 }
0x1bf5   : > { %v4225_v58 = vmul.f32 0.03125, %v4224_v23 }
0x1bf7   : > { %v4226_v24 = vsub.f32 %v4221_v19, %v4225_v58 }
0x1bf9   : > { %v4227_v18 = vmul.f32 %v4226_v24, %v4226_v24 }
0x1bfb   : > { %v4228_v25 = vsel %vm793_vm1, %v4227_v18, 0.0 }
0x1bfc   : > { %4229 = vadd.xlane.f32.xlu0 %v4228_v25 }
0x1c85   : > { %v4230_v21 = vpop.xlane.xlu0 %4229 }
0x1c86   : > { %v4231_v28 = vmul.f32 0.03125, %v4230_v21 }
0x1c88   : > { %v4232_v16 = vadd.f32 1e-05, %v4231_v28 }
0x1c8a   : > { %5294 = vrsqrt.f32 %v4232_v16 }
0x1c97   : > { %v5295_v41 = vpop.eup %5294 }
0x1c98   : > { %v4234_v36 = vmul.f32 %v5295_v41, %v4226_v24 }
0x1c9a   : > { %v4239_v38 = vmul.f32 %v4238_v27, %v4234_v36 }
0x1c9c   : > { %v4244_v42 = vadd.f32 %v4243_v37, %v4239_v38 }
0x1c9e   : > { %v4248_v44 = vmul.f32 %v4247_v3, %v4244_v42 }
0x1ca0   : > { %v4249_v46 = vadd.f32 %v4248_v44, %v2510_v43 }
0x1ca2   : > { %4250 = vst.msk [vmem:[%s761_s3] sm:$0xff] %vm793_vm1, %v4249_v46 }
0x1ca3   : > { %5507 = shalt.err (!%p5504_p0)
}
0x1ca4   : > { %s5508_s18 = scalar_lea.hbm %s4263_s6, 128  ;;  %s5512_s3 = scalar_lea.hbm %s6720_s10, 256 }
0x1ca5   : > { %p5509_p10 = scmp.ne.s32.totalorder %s4263_s6, %s5508_s18  ;;  %p5513_p13 = scmp.lt.s32.totalorder %s4263_s6, %s6720_s10 }
0x1ca6   : > { %p5514_p1 = scmp.lt.s32.totalorder %s5512_s3, %s5508_s18 }
0x1ca7   : > { %p5510_p11 = pnand %p5509_p10, %p6721_p9 }
0x1ca8   : > { %p5515_p2 = por %p5514_p1, %p5513_p13 }
0x1ca9   : > { %p5511_p12 = pneg %p5510_p11 }
0x1cab   : > { %p5516_p5 = pnand %p5515_p2, %p5511_p12 }
0x1cad   : > { %5519 = shalt.err (!%p5516_p5)
}
0x1cae   : > { %5098 = dma.vmem_to_hbm [thread:$0]  (%p6721_p9), %s4266_s0, 128, %s4263_s6, %s4252_s25  }
0x1caf PF: > { %s6722_s12 = sld [smem:[#allocation27_spill]]  ;;  %s4277_s29 = sand.u32 1, %s5566_s1  }
0x1cb0   : > { %p6724_p4 = scmp.ge.s32.totalorder %s5578_s24, 2  ;;  %s4278_s20 = scalar_lea.sflag [#allocation4], %s4277_s29 }
0x1cb5   : > { %p6723_p3 = scmp.ne.s32.totalorder %s6722_s12, 0 }
0x1cb7   : > { %p5127_p8 = pnand %p6724_p4, %p6723_p3 }
0x1cb9   : > { %p5128_p7 = pneg %p5127_p8 }
0x1cbb   : > { %5561 = dma.done.wait (%p5128_p7), %s4278_s20, 128  }
0x1cbc   : > { %5563 = vsyncadd (%p5128_p7), %s4278_s20, 4294967168  ;;  %s6725_s24 = sld [smem:[#allocation25_spill]]  ;;  %s6728_s1 = smov %s5570_s22 }
0x1cbd   : > { %s6726_s2 = sld [smem:[#allocation24_spill]] }
0x1cbe   : > { %s6727_s23 = sld [smem:[#allocation26_spill]] }
0x1cc2   : > { %p39_p6 = scmp.ge.s32.totalorder %s6725_s24, 4  }
0x1cc3   : > { %s6729_s22 = smov %s6726_s2 }
0x1cc4   :  { %41 = sbr.rel (!%p39_p6) target bundleno = 26 (0x1a), region = 193 }
0x1cc9   :  { %4283 = vsyncpa [#allocation3], 1 }
0x1cca   :  { %4285 = vsyncpa [#allocation3 + $0x1], 1 }
0x1ccb   :  { %4286 = vsyncpa [#allocation7], 1 }
0x1ccc   :  { %4288 = vsyncpa [#allocation7 + $0x1], 1 }
0x1ccd   :  { %4289 = vsyncpa [#allocation11], 1 }
0x1cce   :  { %4290 = vsyncpa [#allocation14], 1 }
0x1ccf   :  { %4291 = vsyncpa [#allocation4], 1 }
0x1cd0   :  { %4293 = vsyncpa [#allocation4 + $0x1], 1 }
0x1cd1   :  { %4294 = vsyncpa [#allocation5], 1 }
0x1cd2   :  { %4296 = vsyncpa [#allocation5 + $0x1], 1 }

</bundles_post_ra>
